<compile_context>
chip_gen: v7x
topology: tpu7x:2x2x1
jax: 0.10.0
libtpu: 0.0.40
codegen_flags: <defaults>
</compile_context>

<pallas_src>
import jax
import jax.numpy as jnp
from jax.experimental import pallas as pl
from jax.experimental.pallas import tpu as pltpu

# ---- model hyper-parameters (match the PyTorch module) ----------------------
INPUT_SIZE = 39        # input_size
HIDDEN = 128           # hidden_size = 128 (real size -> lane-aligned gate slices)
NUM_LAYERS = 2         # fixed 2-layer stack (hard-coded in the kernel)
NUM_CLASSES = 10       # stand-in for len(train.csv['note'].unique())
BATCH = 2
SEQ = 8

# ---- hardware-friendly padded sizes -----------------------------------------
I_PAD = 128            # 39  -> 128 (zero-padded features / zero weight rows)
C_PAD = 128            # 10  -> 128 (zero-padded classes, sliced off outside)
B_TILE = 8             # one sublane tile of batch per grid step


def _round_up(x, m):
    return (x + m - 1) // m * m


def audio_rnn_kernel(x_ref, wih1_ref, whh1_ref, b1_ref,
                     w2_ref, b2_ref, wfc_ref, bfc_ref, out_ref):
    """One batch tile of the 2-layer LSTM + last-step Linear.

    x_ref   : (T, Bt, I_pad)   time-major input tile
    wih1_ref: (I_pad, 4H)      layer-0 input weights (pre-transposed, zero-padded rows)
    whh1_ref: (H, 4H)          layer-0 recurrent weights (pre-transposed)
    b1_ref  : (1, 4H)          b_ih_l0 + b_hh_l0
    w2_ref  : (2H, 4H)         [W_ih_l1 ; W_hh_l1] stacked (pre-transposed)
    b2_ref  : (1, 4H)          b_ih_l1 + b_hh_l1
    wfc_ref : (H, C_pad)       fc weight (pre-transposed, zero-padded cols)
    bfc_ref : (1, C_pad)
    out_ref : (Bt, C_pad)
    """
    T, Bt, I = x_ref.shape
    H = whh1_ref.shape[0]
    G = 4 * H

    # ---- hoisted out of the recurrence --------------------------------------
    # Layer-0 input projection for ALL timesteps in one MXU call, bias folded in.
    x_flat = x_ref[...].reshape(T * Bt, I)                    # (T*Bt, I)
    xw1 = (jnp.dot(x_flat, wih1_ref[...], preferred_element_type=jnp.float32)
           + b1_ref[...])                                     # (T*Bt, 4H)

    whh1 = whh1_ref[...]                                      # (H, 4H), resident
    w2 = w2_ref[...]                                          # (2H, 4H), resident
    b2 = jnp.broadcast_to(b2_ref[...], (Bt, G))               # broadcast once

    def activate(gates):
        # PyTorch gate order (i, f, g, o); H=128 -> each slice = full lane tile.
        i = jax.nn.sigmoid(gates[:, 0 * H:1 * H])
        f = jax.nn.sigmoid(gates[:, 1 * H:2 * H])
        g = jnp.tanh(gates[:, 2 * H:3 * H])
        o = jax.nn.sigmoid(gates[:, 3 * H:4 * H])
        return i, f, g, o

    h1 = jnp.zeros((Bt, H), jnp.float32)                      # h0 = c0 = 0
    c1 = jnp.zeros((Bt, H), jnp.float32)
    h2 = jnp.zeros((Bt, H), jnp.float32)
    c2 = jnp.zeros((Bt, H), jnp.float32)

    # Fully unrolled time loop (T static, small): lets the LLO scheduler overlap
    # layer-0(t+1)'s MXU push with layer-1(t)'s EUP/VPU work.
    for t in range(T):
        # layer 0: only the recurrent matmul sits on the serial chain
        g1 = xw1[t * Bt:(t + 1) * Bt, :] + jnp.dot(
            h1, whh1, preferred_element_type=jnp.float32)
        i1, f1, gg1, o1 = activate(g1)
        c1 = f1 * c1 + i1 * gg1
        h1 = o1 * jnp.tanh(c1)

        # layer 1: fused ih/hh matmul -> single MXU round trip per cell
        g2 = jnp.dot(jnp.concatenate([h1, h2], axis=1), w2,
                     preferred_element_type=jnp.float32) + b2
        i2, f2, gg2, o2 = activate(g2)
        c2 = f2 * c2 + i2 * gg2
        h2 = o2 * jnp.tanh(c2)

    # out[:, -1, :] == h2 after the last step.
    # Dropout(0.5) is identity at inference time (eval mode).
    out_ref[...] = (jnp.dot(h2, wfc_ref[...], preferred_element_type=jnp.float32)
                    + bfc_ref[...])


def audio_rnn_forward(x_btI, params):
    """x_btI: (B, T, input_size) f32, PyTorch batch_first layout -> (B, num_classes)."""
    (w_ih_l0, w_hh_l0, b_l0, w_ih_l1, w_hh_l1, b_l1, w_fc, b_fc) = params
    B, T, I = x_btI.shape
    H = w_hh_l0.shape[1]            # w_hh_l0: (4H, H)
    C = w_fc.shape[0]               # w_fc:    (C, H)

    B_pad = _round_up(max(B, B_TILE), B_TILE)

    # ---- pad & repack parameters outside the kernel (padded dims contribute 0)
    wih1 = jnp.zeros((I_PAD, 4 * H), jnp.float32).at[:I, :].set(w_ih_l0.T)
    whh1 = w_hh_l0.T.astype(jnp.float32)                         # (H, 4H)
    b1 = b_l0[None, :].astype(jnp.float32)                       # (1, 4H)
    w2 = jnp.concatenate([w_ih_l1.T, w_hh_l1.T], axis=0).astype(jnp.float32)  # (2H, 4H)
    b2 = b_l1[None, :].astype(jnp.float32)                       # (1, 4H)
    wfc = jnp.zeros((H, C_PAD), jnp.float32).at[:, :C].set(w_fc.T)
    bfc = jnp.zeros((1, C_PAD), jnp.float32).at[:, :C].set(b_fc[None, :])

    # ---- time-major, feature- and batch-padded input
    x_tbi = jnp.transpose(x_btI, (1, 0, 2))                      # (T, B, I)
    x_pad = jnp.zeros((T, B_pad, I_PAD), jnp.float32).at[:, :B, :I].set(x_tbi)

    n_btiles = B_pad // B_TILE
    const = lambda b: (0, 0)

    out = pl.pallas_call(
        audio_rnn_kernel,
        out_shape=jax.ShapeDtypeStruct((B_pad, C_PAD), jnp.float32),
        grid=(n_btiles,),
        in_specs=[
            pl.BlockSpec((T, B_TILE, I_PAD), lambda b: (0, b, 0)),   # x tile per step
            pl.BlockSpec((I_PAD, 4 * H), const),                     # weights stay resident
            pl.BlockSpec((H, 4 * H), const),
            pl.BlockSpec((1, 4 * H), const),
            pl.BlockSpec((2 * H, 4 * H), const),
            pl.BlockSpec((1, 4 * H), const),
            pl.BlockSpec((H, C_PAD), const),
            pl.BlockSpec((1, C_PAD), const),
        ],
        out_specs=pl.BlockSpec((B_TILE, C_PAD), lambda b: (b, 0)),
        compiler_params=pltpu.CompilerParams(
            dimension_semantics=("parallel",)),                      # megacore over batch tiles
    )(x_pad, wih1, whh1, b1, w2, b2, wfc, bfc)

    return out[:B, :C]                                           # drop padded rows/classes


def init_params(key, input_size, hidden, num_classes):
    """PyTorch-style init U(-1/sqrt(H), 1/sqrt(H)); layouts match nn.LSTM / nn.Linear."""
    ks = jax.random.split(key, 10)
    s = 1.0 / jnp.sqrt(hidden)

    def u(k, shape):
        return jax.random.uniform(k, shape, jnp.float32, -s, s)

    w_ih_l0 = u(ks[0], (4 * hidden, input_size))
    w_hh_l0 = u(ks[1], (4 * hidden, hidden))
    b_l0 = u(ks[2], (4 * hidden,)) + u(ks[3], (4 * hidden,))     # b_ih + b_hh
    w_ih_l1 = u(ks[4], (4 * hidden, hidden))
    w_hh_l1 = u(ks[5], (4 * hidden, hidden))
    b_l1 = u(ks[6], (4 * hidden,)) + u(ks[7], (4 * hidden,))
    w_fc = u(ks[8], (num_classes, hidden))
    b_fc = u(ks[9], (num_classes,))
    return (w_ih_l0, w_hh_l0, b_l0, w_ih_l1, w_hh_l1, b_l1, w_fc, b_fc)


def reference_forward(x_btI, params):
    """Pure-JAX reference with identical (unpadded) semantics."""
    (w_ih_l0, w_hh_l0, b_l0, w_ih_l1, w_hh_l1, b_l1, w_fc, b_fc) = params
    B, T, I = x_btI.shape
    H = w_hh_l0.shape[1]

    def cell(x_t, h, c, wih, whh, b):
        gates = x_t @ wih.T + h @ whh.T + b
        i = jax.nn.sigmoid(gates[:, 0 * H:1 * H])
        f = jax.nn.sigmoid(gates[:, 1 * H:2 * H])
        g = jnp.tanh(gates[:, 2 * H:3 * H])
        o = jax.nn.sigmoid(gates[:, 3 * H:4 * H])
        c = f * c + i * g
        return o * jnp.tanh(c), c

    h1 = c1 = h2 = c2 = jnp.zeros((B, H), jnp.float32)
    for t in range(T):
        x_t = x_btI[:, t, :]
        h1, c1 = cell(x_t, h1, c1, w_ih_l0, w_hh_l0, b_l0)
        h2, c2 = cell(h1, h2, c2, w_ih_l1, w_hh_l1, b_l1)
    return h2 @ w_fc.T + b_fc[None, :]


if __name__ == "__main__":
    key = jax.random.PRNGKey(0)
    kx, kp = jax.random.split(key)

    x = jax.random.normal(kx, (BATCH, SEQ, INPUT_SIZE), jnp.float32)
    params = init_params(kp, INPUT_SIZE, HIDDEN, NUM_CLASSES)

    out = jax.block_until_ready(audio_rnn_forward(x, params))
    ref = reference_forward(x, params)

    assert out.shape == (BATCH, NUM_CLASSES)
    max_diff = jnp.max(jnp.abs(out - ref))
    assert jnp.allclose(out, ref, atol=1e-4, rtol=1e-4), (
        f"mismatch vs JAX reference, max abs diff = {max_diff}")

    print("KERNEL_OK")
</pallas_src>

<mosaic_0001>
module attributes {stable_mosaic.version = 11 : i64} {
  func.func @audio_rnn_kernel(%arg0: i32, %arg1: memref<8x8x128xf32, #tpu.memory_space<vmem>>, %arg2: memref<128x512xf32, #tpu.memory_space<vmem>>, %arg3: memref<128x512xf32, #tpu.memory_space<vmem>>, %arg4: memref<1x512xf32, #tpu.memory_space<vmem>>, %arg5: memref<256x512xf32, #tpu.memory_space<vmem>>, %arg6: memref<1x512xf32, #tpu.memory_space<vmem>>, %arg7: memref<128x128xf32, #tpu.memory_space<vmem>>, %arg8: memref<1x128xf32, #tpu.memory_space<vmem>>, %arg9: memref<8x128xf32, #tpu.memory_space<vmem>>) attributes {dimension_semantics = [#tpu.dimension_semantics<parallel>], iteration_bounds = array<i64: 1>, scalar_prefetch = 0 : i64, scratch_operands = 0 : i64, tpu.core_type = #tpu.core_type<tc>, window_params = [{transform_indices = @transform_0, window_bounds = array<i64: 8, 8, 128>}, {pipeline_mode = #tpu.pipeline_mode<synchronous>, transform_indices = @transform_1, window_bounds = array<i64: 128, 512>}, {pipeline_mode = #tpu.pipeline_mode<synchronous>, transform_indices = @transform_2, window_bounds = array<i64: 128, 512>}, {pipeline_mode = #tpu.pipeline_mode<synchronous>, transform_indices = @transform_3, window_bounds = array<i64: 1, 512>}, {pipeline_mode = #tpu.pipeline_mode<synchronous>, transform_indices = @transform_4, window_bounds = array<i64: 256, 512>}, {pipeline_mode = #tpu.pipeline_mode<synchronous>, transform_indices = @transform_5, window_bounds = array<i64: 1, 512>}, {pipeline_mode = #tpu.pipeline_mode<synchronous>, transform_indices = @transform_6, window_bounds = array<i64: 128, 128>}, {pipeline_mode = #tpu.pipeline_mode<synchronous>, transform_indices = @transform_7, window_bounds = array<i64: 1, 128>}, {transform_indices = @transform_8, window_bounds = array<i64: 8, 128>}]} {
    %c0 = arith.constant 0 : index
    %c0_0 = arith.constant 0 : index
    %c0_1 = arith.constant 0 : index
    %0 = vector.load %arg1[%c0, %c0_0, %c0_1] : memref<8x8x128xf32, #tpu.memory_space<vmem>>, vector<8x8x128xf32>
    %1 = vector.shape_cast %0 : vector<8x8x128xf32> to vector<64x128xf32>
    %c0_2 = arith.constant 0 : index
    %c0_3 = arith.constant 0 : index
    %2 = vector.load %arg2[%c0_2, %c0_3] : memref<128x512xf32, #tpu.memory_space<vmem>>, vector<128x512xf32>
    %cst = arith.constant dense<0.000000e+00> : vector<64x512xf32>
    %3 = tpu.matmul %1, %2, %cst {dimension_numbers = #tpu.dot_dimension_numbers<[1], [0], [0], [1], [0, 0, 1, 1], [], []>} : vector<64x128xf32>, vector<128x512xf32>, vector<64x512xf32> -> vector<64x512xf32>
    %c0_4 = arith.constant 0 : index
    %c0_5 = arith.constant 0 : index
    %4 = vector.load %arg4[%c0_4, %c0_5] : memref<1x512xf32, #tpu.memory_space<vmem>>, vector<1x512xf32>
    %5 = vector.broadcast %4 : vector<1x512xf32> to vector<64x512xf32>
    %6 = arith.addf %3, %5 : vector<64x512xf32>
    %c0_6 = arith.constant 0 : index
    %c0_7 = arith.constant 0 : index
    %7 = vector.load %arg3[%c0_6, %c0_7] : memref<128x512xf32, #tpu.memory_space<vmem>>, vector<128x512xf32>
    %c0_8 = arith.constant 0 : index
    %c0_9 = arith.constant 0 : index
    %8 = vector.load %arg5[%c0_8, %c0_9] : memref<256x512xf32, #tpu.memory_space<vmem>>, vector<256x512xf32>
    %c0_10 = arith.constant 0 : index
    %c0_11 = arith.constant 0 : index
    %9 = vector.load %arg6[%c0_10, %c0_11] : memref<1x512xf32, #tpu.memory_space<vmem>>, vector<1x512xf32>
    %10 = vector.shape_cast %9 : vector<1x512xf32> to vector<1x512xf32>
    %11 = vector.broadcast %10 : vector<1x512xf32> to vector<8x512xf32>
    %cst_12 = arith.constant 0.000000e+00 : f32
    %12 = vector.broadcast %cst_12 : f32 to vector<8x128xf32>
    %cst_13 = arith.constant 0.000000e+00 : f32
    %13 = vector.broadcast %cst_13 : f32 to vector<8x128xf32>
    %cst_14 = arith.constant 0.000000e+00 : f32
    %14 = vector.broadcast %cst_14 : f32 to vector<8x128xf32>
    %cst_15 = arith.constant 0.000000e+00 : f32
    %15 = vector.broadcast %cst_15 : f32 to vector<8x128xf32>
    %16 = vector.extract_strided_slice %6 {offsets = [0, 0], sizes = [8, 512], strides = [1, 1]} : vector<64x512xf32> to vector<8x512xf32>
    %cst_16 = arith.constant dense<0.000000e+00> : vector<8x512xf32>
    %17 = tpu.matmul %12, %7, %cst_16 {dimension_numbers = #tpu.dot_dimension_numbers<[1], [0], [0], [1], [0, 0, 1, 1], [], []>} : vector<8x128xf32>, vector<128x512xf32>, vector<8x512xf32> -> vector<8x512xf32>
    %18 = arith.addf %16, %17 : vector<8x512xf32>
    %19 = vector.extract_strided_slice %18 {offsets = [0, 0], sizes = [8, 128], strides = [1, 1]} : vector<8x512xf32> to vector<8x128xf32>
    %20 = arith.negf %19 : vector<8x128xf32>
    %21 = math.exp %20 : vector<8x128xf32>
    %cst_17 = arith.constant 1.000000e+00 : f32
    %22 = vector.broadcast %cst_17 : f32 to vector<8x128xf32>
    %23 = arith.addf %22, %21 : vector<8x128xf32>
    %24 = arith.divf %22, %23 : vector<8x128xf32>
    %25 = vector.extract_strided_slice %18 {offsets = [0, 128], sizes = [8, 128], strides = [1, 1]} : vector<8x512xf32> to vector<8x128xf32>
    %26 = arith.negf %25 : vector<8x128xf32>
    %27 = math.exp %26 : vector<8x128xf32>
    %cst_18 = arith.constant 1.000000e+00 : f32
    %28 = vector.broadcast %cst_18 : f32 to vector<8x128xf32>
    %29 = arith.addf %28, %27 : vector<8x128xf32>
    %30 = arith.divf %28, %29 : vector<8x128xf32>
    %31 = vector.extract_strided_slice %18 {offsets = [0, 256], sizes = [8, 128], strides = [1, 1]} : vector<8x512xf32> to vector<8x128xf32>
    %32 = math.tanh %31 : vector<8x128xf32>
    %33 = vector.extract_strided_slice %18 {offsets = [0, 384], sizes = [8, 128], strides = [1, 1]} : vector<8x512xf32> to vector<8x128xf32>
    %34 = arith.negf %33 : vector<8x128xf32>
    %35 = math.exp %34 : vector<8x128xf32>
    %cst_19 = arith.constant 1.000000e+00 : f32
    %36 = vector.broadcast %cst_19 : f32 to vector<8x128xf32>
    %37 = arith.addf %36, %35 : vector<8x128xf32>
    %38 = arith.divf %36, %37 : vector<8x128xf32>
    %39 = arith.mulf %30, %13 : vector<8x128xf32>
    %40 = arith.mulf %24, %32 : vector<8x128xf32>
    %41 = arith.addf %39, %40 : vector<8x128xf32>
    %42 = math.tanh %41 : vector<8x128xf32>
    %43 = arith.mulf %38, %42 : vector<8x128xf32>
    %44 = tpu.concatenate %43, %14 in 1 : vector<8x128xf32>, vector<8x128xf32> -> vector<8x256xf32>
    %cst_20 = arith.constant dense<0.000000e+00> : vector<8x512xf32>
    %45 = tpu.matmul %44, %8, %cst_20 {dimension_numbers = #tpu.dot_dimension_numbers<[1], [0], [0], [1], [0, 0, 1, 1], [], []>} : vector<8x256xf32>, vector<256x512xf32>, vector<8x512xf32> -> vector<8x512xf32>
    %46 = arith.addf %45, %11 : vector<8x512xf32>
    %47 = vector.extract_strided_slice %46 {offsets = [0, 0], sizes = [8, 128], strides = [1, 1]} : vector<8x512xf32> to vector<8x128xf32>
    %48 = arith.negf %47 : vector<8x128xf32>
    %49 = math.exp %48 : vector<8x128xf32>
    %cst_21 = arith.constant 1.000000e+00 : f32
    %50 = vector.broadcast %cst_21 : f32 to vector<8x128xf32>
    %51 = arith.addf %50, %49 : vector<8x128xf32>
    %52 = arith.divf %50, %51 : vector<8x128xf32>
    %53 = vector.extract_strided_slice %46 {offsets = [0, 128], sizes = [8, 128], strides = [1, 1]} : vector<8x512xf32> to vector<8x128xf32>
    %54 = arith.negf %53 : vector<8x128xf32>
    %55 = math.exp %54 : vector<8x128xf32>
    %cst_22 = arith.constant 1.000000e+00 : f32
    %56 = vector.broadcast %cst_22 : f32 to vector<8x128xf32>
    %57 = arith.addf %56, %55 : vector<8x128xf32>
    %58 = arith.divf %56, %57 : vector<8x128xf32>
    %59 = vector.extract_strided_slice %46 {offsets = [0, 256], sizes = [8, 128], strides = [1, 1]} : vector<8x512xf32> to vector<8x128xf32>
    %60 = math.tanh %59 : vector<8x128xf32>
    %61 = vector.extract_strided_slice %46 {offsets = [0, 384], sizes = [8, 128], strides = [1, 1]} : vector<8x512xf32> to vector<8x128xf32>
    %62 = arith.negf %61 : vector<8x128xf32>
    %63 = math.exp %62 : vector<8x128xf32>
    %cst_23 = arith.constant 1.000000e+00 : f32
    %64 = vector.broadcast %cst_23 : f32 to vector<8x128xf32>
    %65 = arith.addf %64, %63 : vector<8x128xf32>
    %66 = arith.divf %64, %65 : vector<8x128xf32>
    %67 = arith.mulf %58, %15 : vector<8x128xf32>
    %68 = arith.mulf %52, %60 : vector<8x128xf32>
    %69 = arith.addf %67, %68 : vector<8x128xf32>
    %70 = math.tanh %69 : vector<8x128xf32>
    %71 = arith.mulf %66, %70 : vector<8x128xf32>
    %72 = vector.extract_strided_slice %6 {offsets = [8, 0], sizes = [8, 512], strides = [1, 1]} : vector<64x512xf32> to vector<8x512xf32>
    %cst_24 = arith.constant dense<0.000000e+00> : vector<8x512xf32>
    %73 = tpu.matmul %43, %7, %cst_24 {dimension_numbers = #tpu.dot_dimension_numbers<[1], [0], [0], [1], [0, 0, 1, 1], [], []>} : vector<8x128xf32>, vector<128x512xf32>, vector<8x512xf32> -> vector<8x512xf32>
    %74 = arith.addf %72, %73 : vector<8x512xf32>
    %75 = vector.extract_strided_slice %74 {offsets = [0, 0], sizes = [8, 128], strides = [1, 1]} : vector<8x512xf32> to vector<8x128xf32>
    %76 = arith.negf %75 : vector<8x128xf32>
    %77 = math.exp %76 : vector<8x128xf32>
    %cst_25 = arith.constant 1.000000e+00 : f32
    %78 = vector.broadcast %cst_25 : f32 to vector<8x128xf32>
    %79 = arith.addf %78, %77 : vector<8x128xf32>
    %80 = arith.divf %78, %79 : vector<8x128xf32>
    %81 = vector.extract_strided_slice %74 {offsets = [0, 128], sizes = [8, 128], strides = [1, 1]} : vector<8x512xf32> to vector<8x128xf32>
    %82 = arith.negf %81 : vector<8x128xf32>
    %83 = math.exp %82 : vector<8x128xf32>
    %cst_26 = arith.constant 1.000000e+00 : f32
    %84 = vector.broadcast %cst_26 : f32 to vector<8x128xf32>
    %85 = arith.addf %84, %83 : vector<8x128xf32>
    %86 = arith.divf %84, %85 : vector<8x128xf32>
    %87 = vector.extract_strided_slice %74 {offsets = [0, 256], sizes = [8, 128], strides = [1, 1]} : vector<8x512xf32> to vector<8x128xf32>
    %88 = math.tanh %87 : vector<8x128xf32>
    %89 = vector.extract_strided_slice %74 {offsets = [0, 384], sizes = [8, 128], strides = [1, 1]} : vector<8x512xf32> to vector<8x128xf32>
    %90 = arith.negf %89 : vector<8x128xf32>
    %91 = math.exp %90 : vector<8x128xf32>
    %cst_27 = arith.constant 1.000000e+00 : f32
    %92 = vector.broadcast %cst_27 : f32 to vector<8x128xf32>
    %93 = arith.addf %92, %91 : vector<8x128xf32>
    %94 = arith.divf %92, %93 : vector<8x128xf32>
    %95 = arith.mulf %86, %41 : vector<8x128xf32>
    %96 = arith.mulf %80, %88 : vector<8x128xf32>
    %97 = arith.addf %95, %96 : vector<8x128xf32>
    %98 = math.tanh %97 : vector<8x128xf32>
    %99 = arith.mulf %94, %98 : vector<8x128xf32>
    %100 = tpu.concatenate %99, %71 in 1 : vector<8x128xf32>, vector<8x128xf32> -> vector<8x256xf32>
    %cst_28 = arith.constant dense<0.000000e+00> : vector<8x512xf32>
    %101 = tpu.matmul %100, %8, %cst_28 {dimension_numbers = #tpu.dot_dimension_numbers<[1], [0], [0], [1], [0, 0, 1, 1], [], []>} : vector<8x256xf32>, vector<256x512xf32>, vector<8x512xf32> -> vector<8x512xf32>
    %102 = arith.addf %101, %11 : vector<8x512xf32>
    %103 = vector.extract_strided_slice %102 {offsets = [0, 0], sizes = [8, 128], strides = [1, 1]} : vector<8x512xf32> to vector<8x128xf32>
    %104 = arith.negf %103 : vector<8x128xf32>
    %105 = math.exp %104 : vector<8x128xf32>
    %cst_29 = arith.constant 1.000000e+00 : f32
    %106 = vector.broadcast %cst_29 : f32 to vector<8x128xf32>
    %107 = arith.addf %106, %105 : vector<8x128xf32>
    %108 = arith.divf %106, %107 : vector<8x128xf32>
    %109 = vector.extract_strided_slice %102 {offsets = [0, 128], sizes = [8, 128], strides = [1, 1]} : vector<8x512xf32> to vector<8x128xf32>
    %110 = arith.negf %109 : vector<8x128xf32>
    %111 = math.exp %110 : vector<8x128xf32>
    %cst_30 = arith.constant 1.000000e+00 : f32
    %112 = vector.broadcast %cst_30 : f32 to vector<8x128xf32>
    %113 = arith.addf %112, %111 : vector<8x128xf32>
    %114 = arith.divf %112, %113 : vector<8x128xf32>
    %115 = vector.extract_strided_slice %102 {offsets = [0, 256], sizes = [8, 128], strides = [1, 1]} : vector<8x512xf32> to vector<8x128xf32>
    %116 = math.tanh %115 : vector<8x128xf32>
    %117 = vector.extract_strided_slice %102 {offsets = [0, 384], sizes = [8, 128], strides = [1, 1]} : vector<8x512xf32> to vector<8x128xf32>
    %118 = arith.negf %117 : vector<8x128xf32>
    %119 = math.exp %118 : vector<8x128xf32>
    %cst_31 = arith.constant 1.000000e+00 : f32
    %120 = vector.broadcast %cst_31 : f32 to vector<8x128xf32>
    %121 = arith.addf %120, %119 : vector<8x128xf32>
    %122 = arith.divf %120, %121 : vector<8x128xf32>
    %123 = arith.mulf %114, %69 : vector<8x128xf32>
    %124 = arith.mulf %108, %116 : vector<8x128xf32>
    %125 = arith.addf %123, %124 : vector<8x128xf32>
    %126 = math.tanh %125 : vector<8x128xf32>
    %127 = arith.mulf %122, %126 : vector<8x128xf32>
    %128 = vector.extract_strided_slice %6 {offsets = [16, 0], sizes = [8, 512], strides = [1, 1]} : vector<64x512xf32> to vector<8x512xf32>
    %cst_32 = arith.constant dense<0.000000e+00> : vector<8x512xf32>
    %129 = tpu.matmul %99, %7, %cst_32 {dimension_numbers = #tpu.dot_dimension_numbers<[1], [0], [0], [1], [0, 0, 1, 1], [], []>} : vector<8x128xf32>, vector<128x512xf32>, vector<8x512xf32> -> vector<8x512xf32>
    %130 = arith.addf %128, %129 : vector<8x512xf32>
    %131 = vector.extract_strided_slice %130 {offsets = [0, 0], sizes = [8, 128], strides = [1, 1]} : vector<8x512xf32> to vector<8x128xf32>
    %132 = arith.negf %131 : vector<8x128xf32>
    %133 = math.exp %132 : vector<8x128xf32>
    %cst_33 = arith.constant 1.000000e+00 : f32
    %134 = vector.broadcast %cst_33 : f32 to vector<8x128xf32>
    %135 = arith.addf %134, %133 : vector<8x128xf32>
    %136 = arith.divf %134, %135 : vector<8x128xf32>
    %137 = vector.extract_strided_slice %130 {offsets = [0, 128], sizes = [8, 128], strides = [1, 1]} : vector<8x512xf32> to vector<8x128xf32>
    %138 = arith.negf %137 : vector<8x128xf32>
    %139 = math.exp %138 : vector<8x128xf32>
    %cst_34 = arith.constant 1.000000e+00 : f32
    %140 = vector.broadcast %cst_34 : f32 to vector<8x128xf32>
    %141 = arith.addf %140, %139 : vector<8x128xf32>
    %142 = arith.divf %140, %141 : vector<8x128xf32>
    %143 = vector.extract_strided_slice %130 {offsets = [0, 256], sizes = [8, 128], strides = [1, 1]} : vector<8x512xf32> to vector<8x128xf32>
    %144 = math.tanh %143 : vector<8x128xf32>
    %145 = vector.extract_strided_slice %130 {offsets = [0, 384], sizes = [8, 128], strides = [1, 1]} : vector<8x512xf32> to vector<8x128xf32>
    %146 = arith.negf %145 : vector<8x128xf32>
    %147 = math.exp %146 : vector<8x128xf32>
    %cst_35 = arith.constant 1.000000e+00 : f32
    %148 = vector.broadcast %cst_35 : f32 to vector<8x128xf32>
    %149 = arith.addf %148, %147 : vector<8x128xf32>
    %150 = arith.divf %148, %149 : vector<8x128xf32>
    %151 = arith.mulf %142, %97 : vector<8x128xf32>
    %152 = arith.mulf %136, %144 : vector<8x128xf32>
    %153 = arith.addf %151, %152 : vector<8x128xf32>
    %154 = math.tanh %153 : vector<8x128xf32>
    %155 = arith.mulf %150, %154 : vector<8x128xf32>
    %156 = tpu.concatenate %155, %127 in 1 : vector<8x128xf32>, vector<8x128xf32> -> vector<8x256xf32>
    %cst_36 = arith.constant dense<0.000000e+00> : vector<8x512xf32>
    %157 = tpu.matmul %156, %8, %cst_36 {dimension_numbers = #tpu.dot_dimension_numbers<[1], [0], [0], [1], [0, 0, 1, 1], [], []>} : vector<8x256xf32>, vector<256x512xf32>, vector<8x512xf32> -> vector<8x512xf32>
    %158 = arith.addf %157, %11 : vector<8x512xf32>
    %159 = vector.extract_strided_slice %158 {offsets = [0, 0], sizes = [8, 128], strides = [1, 1]} : vector<8x512xf32> to vector<8x128xf32>
    %160 = arith.negf %159 : vector<8x128xf32>
    %161 = math.exp %160 : vector<8x128xf32>
    %cst_37 = arith.constant 1.000000e+00 : f32
    %162 = vector.broadcast %cst_37 : f32 to vector<8x128xf32>
    %163 = arith.addf %162, %161 : vector<8x128xf32>
    %164 = arith.divf %162, %163 : vector<8x128xf32>
    %165 = vector.extract_strided_slice %158 {offsets = [0, 128], sizes = [8, 128], strides = [1, 1]} : vector<8x512xf32> to vector<8x128xf32>
    %166 = arith.negf %165 : vector<8x128xf32>
    %167 = math.exp %166 : vector<8x128xf32>
    %cst_38 = arith.constant 1.000000e+00 : f32
    %168 = vector.broadcast %cst_38 : f32 to vector<8x128xf32>
    %169 = arith.addf %168, %167 : vector<8x128xf32>
    %170 = arith.divf %168, %169 : vector<8x128xf32>
    %171 = vector.extract_strided_slice %158 {offsets = [0, 256], sizes = [8, 128], strides = [1, 1]} : vector<8x512xf32> to vector<8x128xf32>
    %172 = math.tanh %171 : vector<8x128xf32>
    %173 = vector.extract_strided_slice %158 {offsets = [0, 384], sizes = [8, 128], strides = [1, 1]} : vector<8x512xf32> to vector<8x128xf32>
    %174 = arith.negf %173 : vector<8x128xf32>
    %175 = math.exp %174 : vector<8x128xf32>
    %cst_39 = arith.constant 1.000000e+00 : f32
    %176 = vector.broadcast %cst_39 : f32 to vector<8x128xf32>
    %177 = arith.addf %176, %175 : vector<8x128xf32>
    %178 = arith.divf %176, %177 : vector<8x128xf32>
    %179 = arith.mulf %170, %125 : vector<8x128xf32>
    %180 = arith.mulf %164, %172 : vector<8x128xf32>
    %181 = arith.addf %179, %180 : vector<8x128xf32>
    %182 = math.tanh %181 : vector<8x128xf32>
    %183 = arith.mulf %178, %182 : vector<8x128xf32>
    %184 = vector.extract_strided_slice %6 {offsets = [24, 0], sizes = [8, 512], strides = [1, 1]} : vector<64x512xf32> to vector<8x512xf32>
    %cst_40 = arith.constant dense<0.000000e+00> : vector<8x512xf32>
    %185 = tpu.matmul %155, %7, %cst_40 {dimension_numbers = #tpu.dot_dimension_numbers<[1], [0], [0], [1], [0, 0, 1, 1], [], []>} : vector<8x128xf32>, vector<128x512xf32>, vector<8x512xf32> -> vector<8x512xf32>
    %186 = arith.addf %184, %185 : vector<8x512xf32>
    %187 = vector.extract_strided_slice %186 {offsets = [0, 0], sizes = [8, 128], strides = [1, 1]} : vector<8x512xf32> to vector<8x128xf32>
    %188 = arith.negf %187 : vector<8x128xf32>
    %189 = math.exp %188 : vector<8x128xf32>
    %cst_41 = arith.constant 1.000000e+00 : f32
    %190 = vector.broadcast %cst_41 : f32 to vector<8x128xf32>
    %191 = arith.addf %190, %189 : vector<8x128xf32>
    %192 = arith.divf %190, %191 : vector<8x128xf32>
    %193 = vector.extract_strided_slice %186 {offsets = [0, 128], sizes = [8, 128], strides = [1, 1]} : vector<8x512xf32> to vector<8x128xf32>
    %194 = arith.negf %193 : vector<8x128xf32>
    %195 = math.exp %194 : vector<8x128xf32>
    %cst_42 = arith.constant 1.000000e+00 : f32
    %196 = vector.broadcast %cst_42 : f32 to vector<8x128xf32>
    %197 = arith.addf %196, %195 : vector<8x128xf32>
    %198 = arith.divf %196, %197 : vector<8x128xf32>
    %199 = vector.extract_strided_slice %186 {offsets = [0, 256], sizes = [8, 128], strides = [1, 1]} : vector<8x512xf32> to vector<8x128xf32>
    %200 = math.tanh %199 : vector<8x128xf32>
    %201 = vector.extract_strided_slice %186 {offsets = [0, 384], sizes = [8, 128], strides = [1, 1]} : vector<8x512xf32> to vector<8x128xf32>
    %202 = arith.negf %201 : vector<8x128xf32>
    %203 = math.exp %202 : vector<8x128xf32>
    %cst_43 = arith.constant 1.000000e+00 : f32
    %204 = vector.broadcast %cst_43 : f32 to vector<8x128xf32>
    %205 = arith.addf %204, %203 : vector<8x128xf32>
    %206 = arith.divf %204, %205 : vector<8x128xf32>
    %207 = arith.mulf %198, %153 : vector<8x128xf32>
    %208 = arith.mulf %192, %200 : vector<8x128xf32>
    %209 = arith.addf %207, %208 : vector<8x128xf32>
    %210 = math.tanh %209 : vector<8x128xf32>
    %211 = arith.mulf %206, %210 : vector<8x128xf32>
    %212 = tpu.concatenate %211, %183 in 1 : vector<8x128xf32>, vector<8x128xf32> -> vector<8x256xf32>
    %cst_44 = arith.constant dense<0.000000e+00> : vector<8x512xf32>
    %213 = tpu.matmul %212, %8, %cst_44 {dimension_numbers = #tpu.dot_dimension_numbers<[1], [0], [0], [1], [0, 0, 1, 1], [], []>} : vector<8x256xf32>, vector<256x512xf32>, vector<8x512xf32> -> vector<8x512xf32>
    %214 = arith.addf %213, %11 : vector<8x512xf32>
    %215 = vector.extract_strided_slice %214 {offsets = [0, 0], sizes = [8, 128], strides = [1, 1]} : vector<8x512xf32> to vector<8x128xf32>
    %216 = arith.negf %215 : vector<8x128xf32>
    %217 = math.exp %216 : vector<8x128xf32>
    %cst_45 = arith.constant 1.000000e+00 : f32
    %218 = vector.broadcast %cst_45 : f32 to vector<8x128xf32>
    %219 = arith.addf %218, %217 : vector<8x128xf32>
    %220 = arith.divf %218, %219 : vector<8x128xf32>
    %221 = vector.extract_strided_slice %214 {offsets = [0, 128], sizes = [8, 128], strides = [1, 1]} : vector<8x512xf32> to vector<8x128xf32>
    %222 = arith.negf %221 : vector<8x128xf32>
    %223 = math.exp %222 : vector<8x128xf32>
    %cst_46 = arith.constant 1.000000e+00 : f32
    %224 = vector.broadcast %cst_46 : f32 to vector<8x128xf32>
    %225 = arith.addf %224, %223 : vector<8x128xf32>
    %226 = arith.divf %224, %225 : vector<8x128xf32>
    %227 = vector.extract_strided_slice %214 {offsets = [0, 256], sizes = [8, 128], strides = [1, 1]} : vector<8x512xf32> to vector<8x128xf32>
    %228 = math.tanh %227 : vector<8x128xf32>
    %229 = vector.extract_strided_slice %214 {offsets = [0, 384], sizes = [8, 128], strides = [1, 1]} : vector<8x512xf32> to vector<8x128xf32>
    %230 = arith.negf %229 : vector<8x128xf32>
    %231 = math.exp %230 : vector<8x128xf32>
    %cst_47 = arith.constant 1.000000e+00 : f32
    %232 = vector.broadcast %cst_47 : f32 to vector<8x128xf32>
    %233 = arith.addf %232, %231 : vector<8x128xf32>
    %234 = arith.divf %232, %233 : vector<8x128xf32>
    %235 = arith.mulf %226, %181 : vector<8x128xf32>
    %236 = arith.mulf %220, %228 : vector<8x128xf32>
    %237 = arith.addf %235, %236 : vector<8x128xf32>
    %238 = math.tanh %237 : vector<8x128xf32>
    %239 = arith.mulf %234, %238 : vector<8x128xf32>
    %240 = vector.extract_strided_slice %6 {offsets = [32, 0], sizes = [8, 512], strides = [1, 1]} : vector<64x512xf32> to vector<8x512xf32>
    %cst_48 = arith.constant dense<0.000000e+00> : vector<8x512xf32>
    %241 = tpu.matmul %211, %7, %cst_48 {dimension_numbers = #tpu.dot_dimension_numbers<[1], [0], [0], [1], [0, 0, 1, 1], [], []>} : vector<8x128xf32>, vector<128x512xf32>, vector<8x512xf32> -> vector<8x512xf32>
    %242 = arith.addf %240, %241 : vector<8x512xf32>
    %243 = vector.extract_strided_slice %242 {offsets = [0, 0], sizes = [8, 128], strides = [1, 1]} : vector<8x512xf32> to vector<8x128xf32>
    %244 = arith.negf %243 : vector<8x128xf32>
    %245 = math.exp %244 : vector<8x128xf32>
    %cst_49 = arith.constant 1.000000e+00 : f32
    %246 = vector.broadcast %cst_49 : f32 to vector<8x128xf32>
    %247 = arith.addf %246, %245 : vector<8x128xf32>
    %248 = arith.divf %246, %247 : vector<8x128xf32>
    %249 = vector.extract_strided_slice %242 {offsets = [0, 128], sizes = [8, 128], strides = [1, 1]} : vector<8x512xf32> to vector<8x128xf32>
    %250 = arith.negf %249 : vector<8x128xf32>
    %251 = math.exp %250 : vector<8x128xf32>
    %cst_50 = arith.constant 1.000000e+00 : f32
    %252 = vector.broadcast %cst_50 : f32 to vector<8x128xf32>
    %253 = arith.addf %252, %251 : vector<8x128xf32>
    %254 = arith.divf %252, %253 : vector<8x128xf32>
    %255 = vector.extract_strided_slice %242 {offsets = [0, 256], sizes = [8, 128], strides = [1, 1]} : vector<8x512xf32> to vector<8x128xf32>
    %256 = math.tanh %255 : vector<8x128xf32>
    %257 = vector.extract_strided_slice %242 {offsets = [0, 384], sizes = [8, 128], strides = [1, 1]} : vector<8x512xf32> to vector<8x128xf32>
    %258 = arith.negf %257 : vector<8x128xf32>
    %259 = math.exp %258 : vector<8x128xf32>
    %cst_51 = arith.constant 1.000000e+00 : f32
    %260 = vector.broadcast %cst_51 : f32 to vector<8x128xf32>
    %261 = arith.addf %260, %259 : vector<8x128xf32>
    %262 = arith.divf %260, %261 : vector<8x128xf32>
    %263 = arith.mulf %254, %209 : vector<8x128xf32>
    %264 = arith.mulf %248, %256 : vector<8x128xf32>
    %265 = arith.addf %263, %264 : vector<8x128xf32>
    %266 = math.tanh %265 : vector<8x128xf32>
    %267 = arith.mulf %262, %266 : vector<8x128xf32>
    %268 = tpu.concatenate %267, %239 in 1 : vector<8x128xf32>, vector<8x128xf32> -> vector<8x256xf32>
    %cst_52 = arith.constant dense<0.000000e+00> : vector<8x512xf32>
    %269 = tpu.matmul %268, %8, %cst_52 {dimension_numbers = #tpu.dot_dimension_numbers<[1], [0], [0], [1], [0, 0, 1, 1], [], []>} : vector<8x256xf32>, vector<256x512xf32>, vector<8x512xf32> -> vector<8x512xf32>
    %270 = arith.addf %269, %11 : vector<8x512xf32>
    %271 = vector.extract_strided_slice %270 {offsets = [0, 0], sizes = [8, 128], strides = [1, 1]} : vector<8x512xf32> to vector<8x128xf32>
    %272 = arith.negf %271 : vector<8x128xf32>
    %273 = math.exp %272 : vector<8x128xf32>
    %cst_53 = arith.constant 1.000000e+00 : f32
    %274 = vector.broadcast %cst_53 : f32 to vector<8x128xf32>
    %275 = arith.addf %274, %273 : vector<8x128xf32>
    %276 = arith.divf %274, %275 : vector<8x128xf32>
    %277 = vector.extract_strided_slice %270 {offsets = [0, 128], sizes = [8, 128], strides = [1, 1]} : vector<8x512xf32> to vector<8x128xf32>
    %278 = arith.negf %277 : vector<8x128xf32>
    %279 = math.exp %278 : vector<8x128xf32>
    %cst_54 = arith.constant 1.000000e+00 : f32
    %280 = vector.broadcast %cst_54 : f32 to vector<8x128xf32>
    %281 = arith.addf %280, %279 : vector<8x128xf32>
    %282 = arith.divf %280, %281 : vector<8x128xf32>
    %283 = vector.extract_strided_slice %270 {offsets = [0, 256], sizes = [8, 128], strides = [1, 1]} : vector<8x512xf32> to vector<8x128xf32>
    %284 = math.tanh %283 : vector<8x128xf32>
    %285 = vector.extract_strided_slice %270 {offsets = [0, 384], sizes = [8, 128], strides = [1, 1]} : vector<8x512xf32> to vector<8x128xf32>
    %286 = arith.negf %285 : vector<8x128xf32>
    %287 = math.exp %286 : vector<8x128xf32>
    %cst_55 = arith.constant 1.000000e+00 : f32
    %288 = vector.broadcast %cst_55 : f32 to vector<8x128xf32>
    %289 = arith.addf %288, %287 : vector<8x128xf32>
    %290 = arith.divf %288, %289 : vector<8x128xf32>
    %291 = arith.mulf %282, %237 : vector<8x128xf32>
    %292 = arith.mulf %276, %284 : vector<8x128xf32>
    %293 = arith.addf %291, %292 : vector<8x128xf32>
    %294 = math.tanh %293 : vector<8x128xf32>
    %295 = arith.mulf %290, %294 : vector<8x128xf32>
    %296 = vector.extract_strided_slice %6 {offsets = [40, 0], sizes = [8, 512], strides = [1, 1]} : vector<64x512xf32> to vector<8x512xf32>
    %cst_56 = arith.constant dense<0.000000e+00> : vector<8x512xf32>
    %297 = tpu.matmul %267, %7, %cst_56 {dimension_numbers = #tpu.dot_dimension_numbers<[1], [0], [0], [1], [0, 0, 1, 1], [], []>} : vector<8x128xf32>, vector<128x512xf32>, vector<8x512xf32> -> vector<8x512xf32>
    %298 = arith.addf %296, %297 : vector<8x512xf32>
    %299 = vector.extract_strided_slice %298 {offsets = [0, 0], sizes = [8, 128], strides = [1, 1]} : vector<8x512xf32> to vector<8x128xf32>
    %300 = arith.negf %299 : vector<8x128xf32>
    %301 = math.exp %300 : vector<8x128xf32>
    %cst_57 = arith.constant 1.000000e+00 : f32
    %302 = vector.broadcast %cst_57 : f32 to vector<8x128xf32>
    %303 = arith.addf %302, %301 : vector<8x128xf32>
    %304 = arith.divf %302, %303 : vector<8x128xf32>
    %305 = vector.extract_strided_slice %298 {offsets = [0, 128], sizes = [8, 128], strides = [1, 1]} : vector<8x512xf32> to vector<8x128xf32>
    %306 = arith.negf %305 : vector<8x128xf32>
    %307 = math.exp %306 : vector<8x128xf32>
    %cst_58 = arith.constant 1.000000e+00 : f32
    %308 = vector.broadcast %cst_58 : f32 to vector<8x128xf32>
    %309 = arith.addf %308, %307 : vector<8x128xf32>
    %310 = arith.divf %308, %309 : vector<8x128xf32>
    %311 = vector.extract_strided_slice %298 {offsets = [0, 256], sizes = [8, 128], strides = [1, 1]} : vector<8x512xf32> to vector<8x128xf32>
    %312 = math.tanh %311 : vector<8x128xf32>
    %313 = vector.extract_strided_slice %298 {offsets = [0, 384], sizes = [8, 128], strides = [1, 1]} : vector<8x512xf32> to vector<8x128xf32>
    %314 = arith.negf %313 : vector<8x128xf32>
    %315 = math.exp %314 : vector<8x128xf32>
    %cst_59 = arith.constant 1.000000e+00 : f32
    %316 = vector.broadcast %cst_59 : f32 to vector<8x128xf32>
    %317 = arith.addf %316, %315 : vector<8x128xf32>
    %318 = arith.divf %316, %317 : vector<8x128xf32>
    %319 = arith.mulf %310, %265 : vector<8x128xf32>
    %320 = arith.mulf %304, %312 : vector<8x128xf32>
    %321 = arith.addf %319, %320 : vector<8x128xf32>
    %322 = math.tanh %321 : vector<8x128xf32>
    %323 = arith.mulf %318, %322 : vector<8x128xf32>
    %324 = tpu.concatenate %323, %295 in 1 : vector<8x128xf32>, vector<8x128xf32> -> vector<8x256xf32>
    %cst_60 = arith.constant dense<0.000000e+00> : vector<8x512xf32>
    %325 = tpu.matmul %324, %8, %cst_60 {dimension_numbers = #tpu.dot_dimension_numbers<[1], [0], [0], [1], [0, 0, 1, 1], [], []>} : vector<8x256xf32>, vector<256x512xf32>, vector<8x512xf32> -> vector<8x512xf32>
    %326 = arith.addf %325, %11 : vector<8x512xf32>
    %327 = vector.extract_strided_slice %326 {offsets = [0, 0], sizes = [8, 128], strides = [1, 1]} : vector<8x512xf32> to vector<8x128xf32>
    %328 = arith.negf %327 : vector<8x128xf32>
    %329 = math.exp %328 : vector<8x128xf32>
    %cst_61 = arith.constant 1.000000e+00 : f32
    %330 = vector.broadcast %cst_61 : f32 to vector<8x128xf32>
    %331 = arith.addf %330, %329 : vector<8x128xf32>
    %332 = arith.divf %330, %331 : vector<8x128xf32>
    %333 = vector.extract_strided_slice %326 {offsets = [0, 128], sizes = [8, 128], strides = [1, 1]} : vector<8x512xf32> to vector<8x128xf32>
    %334 = arith.negf %333 : vector<8x128xf32>
    %335 = math.exp %334 : vector<8x128xf32>
    %cst_62 = arith.constant 1.000000e+00 : f32
    %336 = vector.broadcast %cst_62 : f32 to vector<8x128xf32>
    %337 = arith.addf %336, %335 : vector<8x128xf32>
    %338 = arith.divf %336, %337 : vector<8x128xf32>
    %339 = vector.extract_strided_slice %326 {offsets = [0, 256], sizes = [8, 128], strides = [1, 1]} : vector<8x512xf32> to vector<8x128xf32>
    %340 = math.tanh %339 : vector<8x128xf32>
    %341 = vector.extract_strided_slice %326 {offsets = [0, 384], sizes = [8, 128], strides = [1, 1]} : vector<8x512xf32> to vector<8x128xf32>
    %342 = arith.negf %341 : vector<8x128xf32>
    %343 = math.exp %342 : vector<8x128xf32>
    %cst_63 = arith.constant 1.000000e+00 : f32
    %344 = vector.broadcast %cst_63 : f32 to vector<8x128xf32>
    %345 = arith.addf %344, %343 : vector<8x128xf32>
    %346 = arith.divf %344, %345 : vector<8x128xf32>
    %347 = arith.mulf %338, %293 : vector<8x128xf32>
    %348 = arith.mulf %332, %340 : vector<8x128xf32>
    %349 = arith.addf %347, %348 : vector<8x128xf32>
    %350 = math.tanh %349 : vector<8x128xf32>
    %351 = arith.mulf %346, %350 : vector<8x128xf32>
    %352 = vector.extract_strided_slice %6 {offsets = [48, 0], sizes = [8, 512], strides = [1, 1]} : vector<64x512xf32> to vector<8x512xf32>
    %cst_64 = arith.constant dense<0.000000e+00> : vector<8x512xf32>
    %353 = tpu.matmul %323, %7, %cst_64 {dimension_numbers = #tpu.dot_dimension_numbers<[1], [0], [0], [1], [0, 0, 1, 1], [], []>} : vector<8x128xf32>, vector<128x512xf32>, vector<8x512xf32> -> vector<8x512xf32>
    %354 = arith.addf %352, %353 : vector<8x512xf32>
    %355 = vector.extract_strided_slice %354 {offsets = [0, 0], sizes = [8, 128], strides = [1, 1]} : vector<8x512xf32> to vector<8x128xf32>
    %356 = arith.negf %355 : vector<8x128xf32>
    %357 = math.exp %356 : vector<8x128xf32>
    %cst_65 = arith.constant 1.000000e+00 : f32
    %358 = vector.broadcast %cst_65 : f32 to vector<8x128xf32>
    %359 = arith.addf %358, %357 : vector<8x128xf32>
    %360 = arith.divf %358, %359 : vector<8x128xf32>
    %361 = vector.extract_strided_slice %354 {offsets = [0, 128], sizes = [8, 128], strides = [1, 1]} : vector<8x512xf32> to vector<8x128xf32>
    %362 = arith.negf %361 : vector<8x128xf32>
    %363 = math.exp %362 : vector<8x128xf32>
    %cst_66 = arith.constant 1.000000e+00 : f32
    %364 = vector.broadcast %cst_66 : f32 to vector<8x128xf32>
    %365 = arith.addf %364, %363 : vector<8x128xf32>
    %366 = arith.divf %364, %365 : vector<8x128xf32>
    %367 = vector.extract_strided_slice %354 {offsets = [0, 256], sizes = [8, 128], strides = [1, 1]} : vector<8x512xf32> to vector<8x128xf32>
    %368 = math.tanh %367 : vector<8x128xf32>
    %369 = vector.extract_strided_slice %354 {offsets = [0, 384], sizes = [8, 128], strides = [1, 1]} : vector<8x512xf32> to vector<8x128xf32>
    %370 = arith.negf %369 : vector<8x128xf32>
    %371 = math.exp %370 : vector<8x128xf32>
    %cst_67 = arith.constant 1.000000e+00 : f32
    %372 = vector.broadcast %cst_67 : f32 to vector<8x128xf32>
    %373 = arith.addf %372, %371 : vector<8x128xf32>
    %374 = arith.divf %372, %373 : vector<8x128xf32>
    %375 = arith.mulf %366, %321 : vector<8x128xf32>
    %376 = arith.mulf %360, %368 : vector<8x128xf32>
    %377 = arith.addf %375, %376 : vector<8x128xf32>
    %378 = math.tanh %377 : vector<8x128xf32>
    %379 = arith.mulf %374, %378 : vector<8x128xf32>
    %380 = tpu.concatenate %379, %351 in 1 : vector<8x128xf32>, vector<8x128xf32> -> vector<8x256xf32>
    %cst_68 = arith.constant dense<0.000000e+00> : vector<8x512xf32>
    %381 = tpu.matmul %380, %8, %cst_68 {dimension_numbers = #tpu.dot_dimension_numbers<[1], [0], [0], [1], [0, 0, 1, 1], [], []>} : vector<8x256xf32>, vector<256x512xf32>, vector<8x512xf32> -> vector<8x512xf32>
    %382 = arith.addf %381, %11 : vector<8x512xf32>
    %383 = vector.extract_strided_slice %382 {offsets = [0, 0], sizes = [8, 128], strides = [1, 1]} : vector<8x512xf32> to vector<8x128xf32>
    %384 = arith.negf %383 : vector<8x128xf32>
    %385 = math.exp %384 : vector<8x128xf32>
    %cst_69 = arith.constant 1.000000e+00 : f32
    %386 = vector.broadcast %cst_69 : f32 to vector<8x128xf32>
    %387 = arith.addf %386, %385 : vector<8x128xf32>
    %388 = arith.divf %386, %387 : vector<8x128xf32>
    %389 = vector.extract_strided_slice %382 {offsets = [0, 128], sizes = [8, 128], strides = [1, 1]} : vector<8x512xf32> to vector<8x128xf32>
    %390 = arith.negf %389 : vector<8x128xf32>
    %391 = math.exp %390 : vector<8x128xf32>
    %cst_70 = arith.constant 1.000000e+00 : f32
    %392 = vector.broadcast %cst_70 : f32 to vector<8x128xf32>
    %393 = arith.addf %392, %391 : vector<8x128xf32>
    %394 = arith.divf %392, %393 : vector<8x128xf32>
    %395 = vector.extract_strided_slice %382 {offsets = [0, 256], sizes = [8, 128], strides = [1, 1]} : vector<8x512xf32> to vector<8x128xf32>
    %396 = math.tanh %395 : vector<8x128xf32>
    %397 = vector.extract_strided_slice %382 {offsets = [0, 384], sizes = [8, 128], strides = [1, 1]} : vector<8x512xf32> to vector<8x128xf32>
    %398 = arith.negf %397 : vector<8x128xf32>
    %399 = math.exp %398 : vector<8x128xf32>
    %cst_71 = arith.constant 1.000000e+00 : f32
    %400 = vector.broadcast %cst_71 : f32 to vector<8x128xf32>
    %401 = arith.addf %400, %399 : vector<8x128xf32>
    %402 = arith.divf %400, %401 : vector<8x128xf32>
    %403 = arith.mulf %394, %349 : vector<8x128xf32>
    %404 = arith.mulf %388, %396 : vector<8x128xf32>
    %405 = arith.addf %403, %404 : vector<8x128xf32>
    %406 = math.tanh %405 : vector<8x128xf32>
    %407 = arith.mulf %402, %406 : vector<8x128xf32>
    %408 = vector.extract_strided_slice %6 {offsets = [56, 0], sizes = [8, 512], strides = [1, 1]} : vector<64x512xf32> to vector<8x512xf32>
    %cst_72 = arith.constant dense<0.000000e+00> : vector<8x512xf32>
    %409 = tpu.matmul %379, %7, %cst_72 {dimension_numbers = #tpu.dot_dimension_numbers<[1], [0], [0], [1], [0, 0, 1, 1], [], []>} : vector<8x128xf32>, vector<128x512xf32>, vector<8x512xf32> -> vector<8x512xf32>
    %410 = arith.addf %408, %409 : vector<8x512xf32>
    %411 = vector.extract_strided_slice %410 {offsets = [0, 0], sizes = [8, 128], strides = [1, 1]} : vector<8x512xf32> to vector<8x128xf32>
    %412 = arith.negf %411 : vector<8x128xf32>
    %413 = math.exp %412 : vector<8x128xf32>
    %cst_73 = arith.constant 1.000000e+00 : f32
    %414 = vector.broadcast %cst_73 : f32 to vector<8x128xf32>
    %415 = arith.addf %414, %413 : vector<8x128xf32>
    %416 = arith.divf %414, %415 : vector<8x128xf32>
    %417 = vector.extract_strided_slice %410 {offsets = [0, 128], sizes = [8, 128], strides = [1, 1]} : vector<8x512xf32> to vector<8x128xf32>
    %418 = arith.negf %417 : vector<8x128xf32>
    %419 = math.exp %418 : vector<8x128xf32>
    %cst_74 = arith.constant 1.000000e+00 : f32
    %420 = vector.broadcast %cst_74 : f32 to vector<8x128xf32>
    %421 = arith.addf %420, %419 : vector<8x128xf32>
    %422 = arith.divf %420, %421 : vector<8x128xf32>
    %423 = vector.extract_strided_slice %410 {offsets = [0, 256], sizes = [8, 128], strides = [1, 1]} : vector<8x512xf32> to vector<8x128xf32>
    %424 = math.tanh %423 : vector<8x128xf32>
    %425 = vector.extract_strided_slice %410 {offsets = [0, 384], sizes = [8, 128], strides = [1, 1]} : vector<8x512xf32> to vector<8x128xf32>
    %426 = arith.negf %425 : vector<8x128xf32>
    %427 = math.exp %426 : vector<8x128xf32>
    %cst_75 = arith.constant 1.000000e+00 : f32
    %428 = vector.broadcast %cst_75 : f32 to vector<8x128xf32>
    %429 = arith.addf %428, %427 : vector<8x128xf32>
    %430 = arith.divf %428, %429 : vector<8x128xf32>
    %431 = arith.mulf %422, %377 : vector<8x128xf32>
    %432 = arith.mulf %416, %424 : vector<8x128xf32>
    %433 = arith.addf %431, %432 : vector<8x128xf32>
    %434 = math.tanh %433 : vector<8x128xf32>
    %435 = arith.mulf %430, %434 : vector<8x128xf32>
    %436 = tpu.concatenate %435, %407 in 1 : vector<8x128xf32>, vector<8x128xf32> -> vector<8x256xf32>
    %cst_76 = arith.constant dense<0.000000e+00> : vector<8x512xf32>
    %437 = tpu.matmul %436, %8, %cst_76 {dimension_numbers = #tpu.dot_dimension_numbers<[1], [0], [0], [1], [0, 0, 1, 1], [], []>} : vector<8x256xf32>, vector<256x512xf32>, vector<8x512xf32> -> vector<8x512xf32>
    %438 = arith.addf %437, %11 : vector<8x512xf32>
    %439 = vector.extract_strided_slice %438 {offsets = [0, 0], sizes = [8, 128], strides = [1, 1]} : vector<8x512xf32> to vector<8x128xf32>
    %440 = arith.negf %439 : vector<8x128xf32>
    %441 = math.exp %440 : vector<8x128xf32>
    %cst_77 = arith.constant 1.000000e+00 : f32
    %442 = vector.broadcast %cst_77 : f32 to vector<8x128xf32>
    %443 = arith.addf %442, %441 : vector<8x128xf32>
    %444 = arith.divf %442, %443 : vector<8x128xf32>
    %445 = vector.extract_strided_slice %438 {offsets = [0, 128], sizes = [8, 128], strides = [1, 1]} : vector<8x512xf32> to vector<8x128xf32>
    %446 = arith.negf %445 : vector<8x128xf32>
    %447 = math.exp %446 : vector<8x128xf32>
    %cst_78 = arith.constant 1.000000e+00 : f32
    %448 = vector.broadcast %cst_78 : f32 to vector<8x128xf32>
    %449 = arith.addf %448, %447 : vector<8x128xf32>
    %450 = arith.divf %448, %449 : vector<8x128xf32>
    %451 = vector.extract_strided_slice %438 {offsets = [0, 256], sizes = [8, 128], strides = [1, 1]} : vector<8x512xf32> to vector<8x128xf32>
    %452 = math.tanh %451 : vector<8x128xf32>
    %453 = vector.extract_strided_slice %438 {offsets = [0, 384], sizes = [8, 128], strides = [1, 1]} : vector<8x512xf32> to vector<8x128xf32>
    %454 = arith.negf %453 : vector<8x128xf32>
    %455 = math.exp %454 : vector<8x128xf32>
    %cst_79 = arith.constant 1.000000e+00 : f32
    %456 = vector.broadcast %cst_79 : f32 to vector<8x128xf32>
    %457 = arith.addf %456, %455 : vector<8x128xf32>
    %458 = arith.divf %456, %457 : vector<8x128xf32>
    %459 = arith.mulf %450, %405 : vector<8x128xf32>
    %460 = arith.mulf %444, %452 : vector<8x128xf32>
    %461 = arith.addf %459, %460 : vector<8x128xf32>
    %462 = math.tanh %461 : vector<8x128xf32>
    %463 = arith.mulf %458, %462 : vector<8x128xf32>
    %c0_80 = arith.constant 0 : index
    %c0_81 = arith.constant 0 : index
    %464 = vector.load %arg7[%c0_80, %c0_81] : memref<128x128xf32, #tpu.memory_space<vmem>>, vector<128x128xf32>
    %cst_82 = arith.constant dense<0.000000e+00> : vector<8x128xf32>
    %465 = tpu.matmul %463, %464, %cst_82 {dimension_numbers = #tpu.dot_dimension_numbers<[1], [0], [0], [1], [0, 0, 1, 1], [], []>} : vector<8x128xf32>, vector<128x128xf32>, vector<8x128xf32> -> vector<8x128xf32>
    %c0_83 = arith.constant 0 : index
    %c0_84 = arith.constant 0 : index
    %466 = vector.load %arg8[%c0_83, %c0_84] : memref<1x128xf32, #tpu.memory_space<vmem>>, vector<1x128xf32>
    %467 = vector.broadcast %466 : vector<1x128xf32> to vector<8x128xf32>
    %468 = arith.addf %465, %467 : vector<8x128xf32>
    %c0_85 = arith.constant 0 : index
    %c0_86 = arith.constant 0 : index
    %469 = vector.load %arg9[%c0_85, %c0_86] : memref<8x128xf32, #tpu.memory_space<vmem>>, vector<8x128xf32>
    tpu.vector_store %arg9[%c0_85, %c0_86], %468 {strides = array<i32>} : memref<8x128xf32, #tpu.memory_space<vmem>>, vector<8x128xf32>,
    return
  }
  func.func @transform_0(%arg0: i32) -> (i32, i32, i32) {
    %c0_i32 = arith.constant 0 : i32
    %c0_i32_0 = arith.constant 0 : i32
    %c0_i32_1 = arith.constant 0 : i32
    return %c0_i32, %arg0, %c0_i32_0 : i32, i32, i32
  }
  func.func @transform_1(%arg0: i32) -> (i32, i32) {
    %c0_i32 = arith.constant 0 : i32
    %c0_i32_0 = arith.constant 0 : i32
    %c0_i32_1 = arith.constant 0 : i32
    return %c0_i32, %c0_i32_0 : i32, i32
  }
  func.func @transform_2(%arg0: i32) -> (i32, i32) {
    %c0_i32 = arith.constant 0 : i32
    %c0_i32_0 = arith.constant 0 : i32
    %c0_i32_1 = arith.constant 0 : i32
    return %c0_i32, %c0_i32_0 : i32, i32
  }
  func.func @transform_3(%arg0: i32) -> (i32, i32) {
    %c0_i32 = arith.constant 0 : i32
    %c0_i32_0 = arith.constant 0 : i32
    %c0_i32_1 = arith.constant 0 : i32
    return %c0_i32, %c0_i32_0 : i32, i32
  }
  func.func @transform_4(%arg0: i32) -> (i32, i32) {
    %c0_i32 = arith.constant 0 : i32
    %c0_i32_0 = arith.constant 0 : i32
    %c0_i32_1 = arith.constant 0 : i32
    return %c0_i32, %c0_i32_0 : i32, i32
  }
  func.func @transform_5(%arg0: i32) -> (i32, i32) {
    %c0_i32 = arith.constant 0 : i32
    %c0_i32_0 = arith.constant 0 : i32
    %c0_i32_1 = arith.constant 0 : i32
    return %c0_i32, %c0_i32_0 : i32, i32
  }
  func.func @transform_6(%arg0: i32) -> (i32, i32) {
    %c0_i32 = arith.constant 0 : i32
    %c0_i32_0 = arith.constant 0 : i32
    %c0_i32_1 = arith.constant 0 : i32
    return %c0_i32, %c0_i32_0 : i32, i32
  }
  func.func @transform_7(%arg0: i32) -> (i32, i32) {
    %c0_i32 = arith.constant 0 : i32
    %c0_i32_0 = arith.constant 0 : i32
    %c0_i32_1 = arith.constant 0 : i32
    return %c0_i32, %c0_i32_0 : i32, i32
  }
  func.func @transform_8(%arg0: i32) -> (i32, i32) {
    %c0_i32 = arith.constant 0 : i32
    %c0_i32_0 = arith.constant 0 : i32
    return %arg0, %c0_i32 : i32, i32
  }
}

</mosaic_0001>

<bundles_post_ra>
// kernel: tpu_custom_call.1
= control target key start
LH: loop header
LB: loop body
LE: loop exit
PB: predicated region body
PF: predicated region fallthrough
CT: control target
= control target key end

     0   :  { %13 = vsyncpa [#allocation3], 0  ;;  %s6938_s0 = inlined_call_operand.hbm [shape: f32[8,8,128], index: 0, kind: input, shape index: {}]   ;;  %s6939_s1 = inlined_call_operand.hbm [shape: f32[128,512], index: 1, kind: input, shape index: {}]   ;;  %s6940_s2 = inlined_call_operand.hbm [shape: f32[128,512], index: 2, kind: input, shape index: {}]   ;;  %s6941_s3 = inlined_call_operand.vmem [shape: f32[1,512], index: 3, kind: input, shape index: {}]   ;;  %s6942_s4 = inlined_call_operand.hbm [shape: f32[256,512], index: 4, kind: input, shape index: {}]   ;;  %s6943_s5 = inlined_call_operand.vmem [shape: f32[1,512], index: 5, kind: input, shape index: {}]   ;;  %s6944_s6 = inlined_call_operand.hbm [shape: f32[128,128], index: 6, kind: input, shape index: {}]   ;;  %s6945_s7 = inlined_call_operand.vmem [shape: f32[1,128], index: 7, kind: input, shape index: {}]   ;;  %s6946_s8 = inlined_call_operand.hbm [shape: f32[8,128], index: 8, kind: output, shape index: {}]  }
   0x1   :  { %14 = vsyncpa [#allocation6], 0 }
   0x2   :  { %15 = vsyncpa [#allocation9], 0 }
   0x3   :  { %16 = vsyncpa [#allocation4], 0  ;;  %s5629_s27 = smov [#allocation5]   ;;  %s5489_s9 = scalar_lea.hbm %s6939_s1, 8192 }
   0x4   :  { %s34_s28 = sshll.u32 %s5629_s27, 4  ;;  %p5490_p0 = scmp.ne.s32.totalorder %s6939_s1, %s5489_s9  ;;  %s35_s28 = int_to_ptr.vmem [resolvable:$true] %s34_s28 }
   0x5   :  { %p5493_p1 = scmp.lt.u32.totalorder %s5489_s9, %s6939_s1 }
   0x7   :  { %p5495_p2 = pnand %p5493_p1, %p5490_p0 }
   0x9   :  { %5498 = shalt.err (!%p5495_p2)
}
   0xa   :  { %s5499_s14 = scalar_lea.vmem %s35_s28, 8192  ;;  %p5504_p4 = scmp.lt.s32.totalorder %s35_s28, %s35_s28 }
   0xb   :  { %p5500_p3 = scmp.ne.s32.totalorder %s35_s28, %s5499_s14  ;;  %p5505_p5 = scmp.lt.s32.totalorder %s5499_s14, %s5499_s14 }
   0xd   :  { %p5506_p6 = por %p5505_p5, %p5504_p4 }
   0xf   :  { %p5507_p7 = pnand %p5506_p6, %p5500_p3 }
  0x11   :  { %5510 = shalt.err (!%p5507_p7)
}
  0x12   :  { %s5630_s15 = smov 512   ;;  %s5631_s16 = smov 32  }
  0x13   :  { %40 = dma.hbm_to_vmem [thread:$0]  %s6939_s1, 8192, %s35_s28, [#allocation6], %s5630_s15, %s5630_s15, %s5631_s16  }
  0x14   :  { %s5632_s19 = smov [#allocation8]   ;;  %s5633_s21 = smov [#allocation2]  }
  0x15   :  { %s60_s20 = sshll.u32 %s5632_s19, 4  ;;  %s22_s22 = sshll.u32 %s5633_s21, 4  ;;  %s61_s20 = int_to_ptr.vmem [resolvable:$true] %s60_s20  ;;  %s23_s22 = int_to_ptr.vmem [resolvable:$true] %s22_s22 }
  0x16   :  { %s5511_s25 = scalar_lea.hbm %s6942_s4, 16384 }
  0x17   :  { %p5512_p8 = scmp.ne.s32.totalorder %s6942_s4, %s5511_s25  ;;  %p5515_p9 = scmp.lt.u32.totalorder %s5511_s25, %s6942_s4 }
  0x19   :  { %p5517_p10 = pnand %p5515_p9, %p5512_p8 }
  0x1b   :  { %5520 = shalt.err (!%p5517_p10)
}
  0x1c   :  { %s5521_s1 = scalar_lea.vmem %s61_s20, 16384  ;;  %p5526_p12 = scmp.lt.s32.totalorder %s61_s20, %s61_s20 }
  0x1d   :  { %p5522_p11 = scmp.ne.s32.totalorder %s61_s20, %s5521_s1  ;;  %p5527_p13 = scmp.lt.s32.totalorder %s5521_s1, %s5521_s1 }
  0x1f   :  { %p5528_p0 = por %p5527_p13, %p5526_p12 }
  0x21   :  { %p5529_p1 = pnand %p5528_p0, %p5522_p11 }
  0x23   :  { %5532 = shalt.err (!%p5529_p1)
}
  0x24   :  { %66 = dma.hbm_to_vmem [thread:$0]  %s6942_s4, 16384, %s61_s20, [#allocation9], %s5630_s15, %s5630_s15, %s5631_s16  }
  0x25   :  { %s5533_s12 = scalar_lea.hbm %s6938_s0, 1024 }
  0x26   :  { %p5534_p2 = scmp.ne.s32.totalorder %s6938_s0, %s5533_s12  ;;  %p5537_p3 = scmp.lt.u32.totalorder %s5533_s12, %s6938_s0 }
  0x28   :  { %p5539_p4 = pnand %p5537_p3, %p5534_p2 }
  0x2a   :  { %5542 = shalt.err (!%p5539_p4)
}
  0x2b   :  { %s5543_s19 = scalar_lea.vmem %s23_s22, 1024  ;;  %p5548_p6 = scmp.lt.s32.totalorder %s23_s22, %s23_s22 }
  0x2c   :  { %p5544_p5 = scmp.ne.s32.totalorder %s23_s22, %s5543_s19  ;;  %p5549_p7 = scmp.lt.s32.totalorder %s5543_s19, %s5543_s19 }
  0x2e   :  { %p5550_p8 = por %p5549_p7, %p5548_p6 }
  0x30   :  { %p5551_p9 = pnand %p5550_p8, %p5544_p5 }
  0x32   :  { %5554 = shalt.err (!%p5551_p9)
}
  0x33   :  { %s5634_s4 = smov 128   ;;  %s5635_s20 = smov 8  }
  0x34   :  { %28 = dma.hbm_to_vmem [thread:$0]  %s6938_s0, 1024, %s23_s22, [#allocation3], %s5634_s4, %s5634_s4, %s5635_s20  }
  0x35   :  { %s5636_s24 = smov [#allocation7]   ;;  %s5637_s26 = smov [#allocation10]  }
  0x36   :  { %s46_s25 = sshll.u32 %s5636_s24, 4  ;;  %s74_s27 = sshll.u32 %s5637_s26, 4  ;;  %s47_s25 = int_to_ptr.vmem [resolvable:$true] %s46_s25  ;;  %s75_s27 = int_to_ptr.vmem [resolvable:$true] %s74_s27 }
  0x37   :  { %s5555_s1 = scalar_lea.hbm %s6940_s2, 8192 }
  0x38   :  { %p5556_p10 = scmp.ne.s32.totalorder %s6940_s2, %s5555_s1  ;;  %p5559_p11 = scmp.lt.u32.totalorder %s5555_s1, %s6940_s2 }
  0x3a   :  { %p5561_p12 = pnand %p5559_p11, %p5556_p10 }
  0x3c   :  { %5564 = shalt.err (!%p5561_p12)
}
  0x3d   :  { %s5565_s0 = scalar_lea.vmem %s47_s25, 8192  ;;  %p5570_p0 = scmp.lt.s32.totalorder %s47_s25, %s47_s25 }
  0x3e   :  { %p5566_p13 = scmp.ne.s32.totalorder %s47_s25, %s5565_s0  ;;  %p5571_p1 = scmp.lt.s32.totalorder %s5565_s0, %s5565_s0 }
  0x40   :  { %p5572_p2 = por %p5571_p1, %p5570_p0 }
  0x42   :  { %p5573_p3 = pnand %p5572_p2, %p5566_p13 }
  0x44   :  { %5576 = shalt.err (!%p5573_p3)
}
  0x45   :  { %52 = dma.hbm_to_vmem [thread:$0]  %s6940_s2, 8192, %s47_s25, [#allocation6], %s5630_s15, %s5630_s15, %s5631_s16  }
  0x46   :  { %s5577_s17 = scalar_lea.hbm %s6944_s6, 2048 }
  0x47   :  { %p5578_p4 = scmp.ne.s32.totalorder %s6944_s6, %s5577_s17  ;;  %p5581_p5 = scmp.lt.u32.totalorder %s5577_s17, %s6944_s6 }
  0x49   :  { %p5583_p6 = pnand %p5581_p5, %p5578_p4 }
  0x4b   :  { %5586 = shalt.err (!%p5583_p6)
}
  0x4c   :  { %s5587_s24 = scalar_lea.vmem %s75_s27, 2048  ;;  %p5592_p8 = scmp.lt.s32.totalorder %s75_s27, %s75_s27 }
  0x4d   :  { %p5588_p7 = scmp.ne.s32.totalorder %s75_s27, %s5587_s24  ;;  %p5593_p9 = scmp.lt.s32.totalorder %s5587_s24, %s5587_s24 }
  0x4f   :  { %p5594_p10 = por %p5593_p9, %p5592_p8 }
  0x51   :  { %p5595_p11 = pnand %p5594_p10, %p5588_p7 }
  0x53   :  { %5598 = shalt.err (!%p5595_p11)
}
  0x54   :  { %80 = dma.hbm_to_vmem [thread:$0]  %s6944_s6, 2048, %s75_s27, [#allocation9], %s5634_s4, %s5634_s4, %s5635_s20  }
  0x55   :  { %5621 = dma.done.wait [#allocation3], 1024  }
  0x56   :  { %5622 = vsyncadd [#allocation3], 4294966272 }
  0x57   :  { %5623 = dma.done.wait [#allocation6], 16384  }
  0x58   :  { %5624 = vsyncadd [#allocation6], 4294950912 }
  0x59   :  { %5625 = dma.done.wait [#allocation9], 18432  }
  0x5a   :  { %5626 = vsyncadd [#allocation9], 4294948864  ;;  %v6947_v0 = vmov 0.0   ;;  %v107_v1 = vld [vmem:[#allocation5 + $0x8] sm:$0xff]  ;;  %v109_v3 = vld [vmem:[#allocation5 + $0x18] sm:$0xff]  ;;  %vm5640_vm0 = vmmov 0  }
  0x5b   :  { %256 = vmatprep.mubr.f32.mxu0 %v6947_v0  ;;  %369 = vmatprep.mubr.f32.mxu1 %v6947_v0  ;;  %v111_v2 = vld [vmem:[#allocation5 + $0x28] sm:$0xff]  ;;  %v113_v5 = vld [vmem:[#allocation5 + $0x38] sm:$0xff]  ;;  %v106_v6 = vld [vmem:[#allocation5] sm:$0xff]  ;;  %s5641_s25 = smov [#allocation11]  }
  0x5c   :  { %v3532_v4 = vpack.c.bf16 %v111_v2, %v107_v1  ;;  %v110_v7 = vld [vmem:[#allocation5 + $0x20] sm:$0xff]  ;;  %v3564_v8 = vpack.c.bf16 %v113_v5, %v109_v3  ;;  %v108_v10 = vld [vmem:[#allocation5 + $0x10] sm:$0xff]  ;;  %v115_v12 = vld [vmem:[#allocation5 + $0x48] sm:$0xff]  ;;  %s3420_s26 = sshll.u32 %s5641_s25, 4  ;;  %s3421_s26 = int_to_ptr.vmem [resolvable:$true] %s3420_s26 }
  0x5d   :  { %v3534_v9 = vpack.c.bf16 %v110_v7, %v106_v6  ;;  %v112_v11 = vld [vmem:[#allocation5 + $0x30] sm:$0xff]  ;;  %v119_v14 = vld [vmem:[#allocation5 + $0x68] sm:$0xff]  ;;  %v117_v15 = vld [vmem:[#allocation5 + $0x58] sm:$0xff]  ;;  %s5599_s27 = scalar_lea.vmem %s3421_s26, 128  ;;  %p5604_p13 = scmp.lt.s32.totalorder %s3421_s26, %s3421_s26 }
  0x5e   :  { %3533 = vmatprep.subr.bf16.mxu0 %v3532_v4  ;;  %v3566_v13 = vpack.c.bf16 %v112_v11, %v108_v10  ;;  %v121_v16 = vld [vmem:[#allocation5 + $0x78] sm:$0xff]  ;;  %3565 = vmatprep.subr.bf16.mxu1 %v3564_v8  ;;  %v3536_v17 = vpack.c.bf16 %v119_v14, %v115_v12  ;;  %v114_v19 = vld [vmem:[#allocation5 + $0x40] sm:$0xff]  ;;  %v116_v21 = vld [vmem:[#allocation5 + $0x50] sm:$0xff]  ;;  %p5600_p12 = scmp.ne.s32.totalorder %s3421_s26, %s5599_s27  ;;  %p5605_p0 = scmp.lt.s32.totalorder %s5599_s27, %s5599_s27 }
  0x5f   :  { %3535 = vmatpush1.bf16.msra.mxu0 %v3534_v9  ;;  %v3568_v18 = vpack.c.bf16 %v121_v16, %v117_v15  ;;  %v118_v20 = vld [vmem:[#allocation5 + $0x60] sm:$0xff]  ;;  %v120_v23 = vld [vmem:[#allocation5 + $0x70] sm:$0xff]  ;;  %v123_v24 = vld [vmem:[#allocation5 + $0x88] sm:$0xff] }
  0x60   :  { %3567 = vmatpush1.bf16.msra.mxu1 %v3566_v13  ;;  %v3538_v22 = vpack.c.bf16 %v118_v20, %v114_v19  ;;  %v127_v25 = vld [vmem:[#allocation5 + $0xa8] sm:$0xff]  ;;  %3537 = vmatprep.subr.bf16.mxu0 %v3536_v17  ;;  %v3570_v26 = vpack.c.bf16 %v120_v23, %v116_v21  ;;  %v125_v28 = vld [vmem:[#allocation5 + $0x98] sm:$0xff]  ;;  %v122_v30 = vld [vmem:[#allocation5 + $0x80] sm:$0xff]  ;;  %p5606_p1 = por %p5605_p0, %p5604_p13 }
  0x61   :  { %3569 = vmatprep.subr.bf16.mxu1 %v3568_v18  ;;  %v3540_v27 = vpack.c.bf16 %v127_v25, %v123_v24  ;;  %v129_v29 = vld [vmem:[#allocation5 + $0xb8] sm:$0xff]  ;;  %v126_v32 = vld [vmem:[#allocation5 + $0xa0] sm:$0xff]  ;;  %v124_v33 = vld [vmem:[#allocation5 + $0x90] sm:$0xff] }
  0x62   :  { %v3572_v31 = vpack.c.bf16 %v129_v29, %v125_v28  ;;  %v128_v34 = vld [vmem:[#allocation5 + $0xb0] sm:$0xff]  ;;  %v3542_v35 = vpack.c.bf16 %v126_v32, %v122_v30  ;;  %v131_v36 = vld [vmem:[#allocation5 + $0xc8] sm:$0xff]  ;;  %v133_v38 = vld [vmem:[#allocation5 + $0xd8] sm:$0xff]  ;;  %p5607_p2 = pnand %p5606_p1, %p5600_p12 }
  0x63   :  { %3539 = vmatpush1.bf16.msra.mxu0 %v3538_v22  ;;  %v135_v37 = vld [vmem:[#allocation5 + $0xe8] sm:$0xff]  ;;  %v3574_v39 = vpack.c.bf16 %v128_v34, %v124_v33  ;;  %v137_v41 = vld [vmem:[#allocation5 + $0xf8] sm:$0xff]  ;;  %v130_v42 = vld [vmem:[#allocation5 + $0xc0] sm:$0xff] }
  0x64   :  { %3571 = vmatpush1.bf16.msra.mxu1 %v3570_v26  ;;  %3541 = vmatprep.subr.bf16.mxu0 %v3540_v27  ;;  %v3544_v40 = vpack.c.bf16 %v135_v37, %v131_v36  ;;  %v134_v43 = vld [vmem:[#allocation5 + $0xe0] sm:$0xff]  ;;  %v3576_v44 = vpack.c.bf16 %v137_v41, %v133_v38  ;;  %v132_v45 = vld [vmem:[#allocation5 + $0xd0] sm:$0xff]  ;;  %v139_v47 = vld [vmem:[#allocation5 + $0x108] sm:$0xff] }
  0x65   :  { %3573 = vmatprep.subr.bf16.mxu1 %v3572_v31  ;;  %v136_v46 = vld [vmem:[#allocation5 + $0xf0] sm:$0xff]  ;;  %v143_v48 = vld [vmem:[#allocation5 + $0x128] sm:$0xff]  ;;  %v141_v49 = vld [vmem:[#allocation5 + $0x118] sm:$0xff]  ;;  %v3546_v51 = vpack.c.bf16 %v134_v43, %v130_v42 }
  0x66   :  { %v145_v50 = vld [vmem:[#allocation5 + $0x138] sm:$0xff]  ;;  %v3578_v52 = vpack.c.bf16 %v136_v46, %v132_v45  ;;  %v3548_v53 = vpack.c.bf16 %v143_v48, %v139_v47  ;;  %v138_v54 = vld [vmem:[#allocation5 + $0x100] sm:$0xff]  ;;  %v140_v56 = vld [vmem:[#allocation5 + $0x110] sm:$0xff] }
  0x67   :  { %3543 = vmatpush1.bf16.msra.mxu0 %v3542_v35  ;;  %v142_v55 = vld [vmem:[#allocation5 + $0x120] sm:$0xff]  ;;  %v3580_v57 = vpack.c.bf16 %v145_v50, %v141_v49  ;;  %v144_v58 = vld [vmem:[#allocation5 + $0x130] sm:$0xff]  ;;  %v147_v59 = vld [vmem:[#allocation5 + $0x148] sm:$0xff] }
  0x68   :  { %3575 = vmatpush1.bf16.msra.mxu1 %v3574_v39  ;;  %3545 = vmatprep.subr.bf16.mxu0 %v3544_v40  ;;  %v151_v60 = vld [vmem:[#allocation5 + $0x168] sm:$0xff]  ;;  %v149_v61 = vld [vmem:[#allocation5 + $0x158] sm:$0xff]  ;;  %v3550_v63 = vpack.c.bf16 %v142_v55, %v138_v54  ;;  %v3582_v1 = vpack.c.bf16 %v144_v58, %v140_v56  ;;  %v146_v3 = vld [vmem:[#allocation5 + $0x140] sm:$0xff] }
  0x69   :  { %3577 = vmatprep.subr.bf16.mxu1 %v3576_v44  ;;  %v153_v62 = vld [vmem:[#allocation5 + $0x178] sm:$0xff]  ;;  %v3552_v2 = vpack.c.bf16 %v151_v60, %v147_v59  ;;  %v150_v4 = vld [vmem:[#allocation5 + $0x160] sm:$0xff]  ;;  %v148_v5 = vld [vmem:[#allocation5 + $0x150] sm:$0xff] }
  0x6a   :  { %v3584_v6 = vpack.c.bf16 %v153_v62, %v149_v61  ;;  %v152_v7 = vld [vmem:[#allocation5 + $0x170] sm:$0xff]  ;;  %v155_v8 = vld [vmem:[#allocation5 + $0x188] sm:$0xff]  ;;  %v157_v10 = vld [vmem:[#allocation5 + $0x198] sm:$0xff]  ;;  %v3554_v12 = vpack.c.bf16 %v150_v4, %v146_v3 }
  0x6b   :  { %3547 = vmatpush1.bf16.msra.mxu0 %v3546_v51  ;;  %v159_v9 = vld [vmem:[#allocation5 + $0x1a8] sm:$0xff]  ;;  %v161_v11 = vld [vmem:[#allocation5 + $0x1b8] sm:$0xff]  ;;  %v3586_v13 = vpack.c.bf16 %v152_v7, %v148_v5  ;;  %v154_v15 = vld [vmem:[#allocation5 + $0x180] sm:$0xff] }
  0x6c   :  { %3579 = vmatpush1.bf16.msra.mxu1 %v3578_v52  ;;  %3549 = vmatprep.subr.bf16.mxu0 %v3548_v53  ;;  %v3556_v14 = vpack.c.bf16 %v159_v9, %v155_v8  ;;  %v158_v16 = vld [vmem:[#allocation5 + $0x1a0] sm:$0xff]  ;;  %v156_v17 = vld [vmem:[#allocation5 + $0x190] sm:$0xff]  ;;  %v3588_v18 = vpack.c.bf16 %v161_v11, %v157_v10  ;;  %v163_v20 = vld [vmem:[#allocation5 + $0x1c8] sm:$0xff] }
  0x6d   :  { %3581 = vmatprep.subr.bf16.mxu1 %v3580_v57  ;;  %v160_v19 = vld [vmem:[#allocation5 + $0x1b0] sm:$0xff]  ;;  %v167_v21 = vld [vmem:[#allocation5 + $0x1e8] sm:$0xff]  ;;  %v165_v22 = vld [vmem:[#allocation5 + $0x1d8] sm:$0xff]  ;;  %v3558_v24 = vpack.c.bf16 %v158_v16, %v154_v15 }
  0x6e   :  { %v169_v23 = vld [vmem:[#allocation5 + $0x1f8] sm:$0xff]  ;;  %v3590_v25 = vpack.c.bf16 %v160_v19, %v156_v17  ;;  %v3560_v26 = vpack.c.bf16 %v167_v21, %v163_v20  ;;  %v162_v27 = vld [vmem:[#allocation5 + $0x1c0] sm:$0xff]  ;;  %v164_v29 = vld [vmem:[#allocation5 + $0x1d0] sm:$0xff] }
  0x6f   :  { %3551 = vmatpush1.bf16.msra.mxu0 %v3550_v63  ;;  %v166_v28 = vld [vmem:[#allocation5 + $0x1e0] sm:$0xff]  ;;  %v3592_v30 = vpack.c.bf16 %v169_v23, %v165_v22  ;;  %v168_v31 = vld [vmem:[#allocation5 + $0x1f0] sm:$0xff]  ;;  %v419_v32 = vld [vmem:[#allocation7 + $0x8] sm:$0xff] }
  0x70   :  { %3583 = vmatpush1.bf16.msra.mxu1 %v3582_v1  ;;  %3553 = vmatprep.subr.bf16.mxu0 %v3552_v2  ;;  %v423_v33 = vld [vmem:[#allocation7 + $0x28] sm:$0xff]  ;;  %v421_v34 = vld [vmem:[#allocation7 + $0x18] sm:$0xff]  ;;  %v3562_v36 = vpack.c.bf16 %v166_v28, %v162_v27  ;;  %v3594_v37 = vpack.c.bf16 %v168_v31, %v164_v29  ;;  %v418_v39 = vld [vmem:[#allocation7] sm:$0xff] }
  0x71   :  { %3585 = vmatprep.subr.bf16.mxu1 %v3584_v6  ;;  %v425_v35 = vld [vmem:[#allocation7 + $0x38] sm:$0xff]  ;;  %v5764_v38 = vpack.c.bf16 %v423_v33, %v419_v32  ;;  %v422_v40 = vld [vmem:[#allocation7 + $0x20] sm:$0xff]  ;;  %v420_v42 = vld [vmem:[#allocation7 + $0x10] sm:$0xff] }
  0x72   :  { %v5766_v41 = vpack.c.bf16 %v425_v35, %v421_v34  ;;  %v424_v43 = vld [vmem:[#allocation7 + $0x30] sm:$0xff]  ;;  %v427_v44 = vld [vmem:[#allocation7 + $0x48] sm:$0xff]  ;;  %v98_v46 = vld [vmem:[#allocation2] sm:$0xff]  ;;  %v5768_v47 = vpack.c.bf16 %v422_v40, %v418_v39 }
  0x73   :  { %3555 = vmatpush1.bf16.msra.mxu0 %v3554_v12  ;;  %7081 = vst [vmem:[#allocation16_spill] sm:$0xff] %v5764_v38  ;;  %v431_v45 = vld [vmem:[#allocation7 + $0x68] sm:$0xff]  ;;  %v429_v48 = vld [vmem:[#allocation7 + $0x58] sm:$0xff]  ;;  %v5771_v50 = vpack.c.bf16 %v424_v43, %v420_v42  ;;  %v426_v51 = vld [vmem:[#allocation7 + $0x40] sm:$0xff] }
  0x74   :  { %3587 = vmatpush1.bf16.msra.mxu1 %v3586_v13  ;;  %3557 = vmatprep.subr.bf16.mxu0 %v3556_v14  ;;  %7082 = vst [vmem:[#allocation17_spill] sm:$0xff] %v5766_v41  ;;  %v433_v49 = vld [vmem:[#allocation7 + $0x78] sm:$0xff]  ;;  %v430_v52 = vld [vmem:[#allocation7 + $0x60] sm:$0xff]  ;;  %v5774_v53 = vpack.c.bf16 %v431_v45, %v427_v44  ;;  %v428_v54 = vld [vmem:[#allocation7 + $0x50] sm:$0xff] }
  0x75   :  { %3589 = vmatprep.subr.bf16.mxu1 %v3588_v18  ;;  %v432_v55 = vld [vmem:[#allocation7 + $0x70] sm:$0xff]  ;;  %v5776_v56 = vpack.c.bf16 %v433_v49, %v429_v48  ;;  %v435_v57 = vld [vmem:[#allocation7 + $0x88] sm:$0xff]  ;;  %v5779_v60 = vpack.c.bf16 %v430_v52, %v426_v51  ;;  %v437_v61 = vld [vmem:[#allocation7 + $0x98] sm:$0xff] }
  0x76   :  { %v439_v58 = vld [vmem:[#allocation7 + $0xa8] sm:$0xff]  ;;  %v441_v62 = vld [vmem:[#allocation7 + $0xb8] sm:$0xff]  ;;  %v5783_v63 = vpack.c.bf16 %v432_v55, %v428_v54  ;;  %v434_v1 = vld [vmem:[#allocation7 + $0x80] sm:$0xff] }
  0x77   :  { %3559 = vmatpush1.bf16.msra.mxu0 %v3558_v24  ;;  %v99_v59 = vld [vmem:[#allocation2 + $0x8] sm:$0xff]  ;;  %v438_v2 = vld [vmem:[#allocation7 + $0xa0] sm:$0xff]  ;;  %v5787_v3 = vpack.c.bf16 %v439_v58, %v435_v57  ;;  %v436_v4 = vld [vmem:[#allocation7 + $0x90] sm:$0xff]  ;;  %v5790_v6 = vpack.c.bf16 %v441_v62, %v437_v61 }
  0x78   :  { %3591 = vmatpush1.bf16.msra.mxu1 %v3590_v25  ;;  %3561 = vmatprep.subr.bf16.mxu0 %v3560_v26  ;;  %v440_v5 = vld [vmem:[#allocation7 + $0xb0] sm:$0xff]  ;;  %v443_v7 = vld [vmem:[#allocation7 + $0xc8] sm:$0xff]  ;;  %v5793_v10 = vpack.c.bf16 %v438_v2, %v434_v1  ;;  %v445_v11 = vld [vmem:[#allocation7 + $0xd8] sm:$0xff] }
  0x79   :  { %3593 = vmatprep.subr.bf16.mxu1 %v3592_v30  ;;  %v447_v8 = vld [vmem:[#allocation7 + $0xe8] sm:$0xff]  ;;  %v100_v9 = vld [vmem:[#allocation2 + $0x10] sm:$0xff]  ;;  %v449_v12 = vld [vmem:[#allocation7 + $0xf8] sm:$0xff]  ;;  %v5797_v13 = vpack.c.bf16 %v440_v5, %v436_v4 }
  0x7a   :  { %v442_v14 = vld [vmem:[#allocation7 + $0xc0] sm:$0xff]  ;;  %v5801_v16 = vpack.c.bf16 %v447_v8, %v443_v7  ;;  %v444_v17 = vld [vmem:[#allocation7 + $0xd0] sm:$0xff]  ;;  %v5804_v19 = vpack.c.bf16 %v449_v12, %v445_v11  ;;  %v451_v20 = vld [vmem:[#allocation7 + $0x108] sm:$0xff] }
  0x7b   :  { %3563 = vmatpush1.bf16.msra.mxu0 %v3562_v36  ;;  %v446_v15 = vld [vmem:[#allocation7 + $0xe0] sm:$0xff]  ;;  %v448_v18 = vld [vmem:[#allocation7 + $0xf0] sm:$0xff]  ;;  %v455_v21 = vld [vmem:[#allocation7 + $0x128] sm:$0xff] }
  0x7c   :  { %3595 = vmatpush1.bf16.msra.mxu1 %v3594_v37  ;;  %3597 = vmatprep.subr.bf16.mxu0 %v5764_v38  ;;  %v101_v22 = vld [vmem:[#allocation2 + $0x18] sm:$0xff]  ;;  %v5807_v23 = vpack.c.bf16 %v446_v15, %v442_v14  ;;  %v5811_v26 = vpack.c.bf16 %v448_v18, %v444_v17  ;;  %v450_v27 = vld [vmem:[#allocation7 + $0x100] sm:$0xff]  ;;  %v5815_v29 = vpack.c.bf16 %v455_v21, %v451_v20  ;;  %v452_v30 = vld [vmem:[#allocation7 + $0x110] sm:$0xff] }
  0x7d   :  { %3629 = vmatprep.subr.bf16.mxu1 %v5766_v41  ;;  %v453_v24 = vld [vmem:[#allocation7 + $0x118] sm:$0xff]  ;;  %v454_v28 = vld [vmem:[#allocation7 + $0x120] sm:$0xff]  ;;  %v456_v31 = vld [vmem:[#allocation7 + $0x130] sm:$0xff] }
  0x7e   :  { %257 = vmatmul.mubr.f32.vlgmr.msra.gmra.mrb[0].mxu0 %v98_v46  ;;  %v457_v25 = vld [vmem:[#allocation7 + $0x138] sm:$0xff]  ;;  %v459_v33 = vld [vmem:[#allocation7 + $0x148] sm:$0xff]  ;;  %v102_v35 = vld [vmem:[#allocation2 + $0x20] sm:$0xff]  ;;  %v5821_v36 = vpack.c.bf16 %v454_v28, %v450_v27  ;;  %v5825_v40 = vpack.c.bf16 %v456_v31, %v452_v30 }
  0x7f   :  { %370 = vmatmul.mubr.f32.vlgmr.msra.gmra.mrb[0].mxu1 %v98_v46  ;;  %3599 = vmatpush1.bf16.msra.mxu0 %v5768_v47  ;;  %v5818_v32 = vpack.c.bf16 %v457_v25, %v453_v24  ;;  %v463_v34 = vld [vmem:[#allocation7 + $0x168] sm:$0xff]  ;;  %v461_v37 = vld [vmem:[#allocation7 + $0x158] sm:$0xff]  ;;  %v458_v42 = vld [vmem:[#allocation7 + $0x140] sm:$0xff] }
  0x80   :  { %3631 = vmatpush1.bf16.msra.mxu1 %v5771_v50  ;;  %262 = vmatprep.mubr.f32.mxu0 %v6947_v0  ;;  %v465_v39 = vld [vmem:[#allocation7 + $0x178] sm:$0xff]  ;;  %v462_v43 = vld [vmem:[#allocation7 + $0x160] sm:$0xff]  ;;  %v5829_v44 = vpack.c.bf16 %v463_v34, %v459_v33  ;;  %v460_v45 = vld [vmem:[#allocation7 + $0x150] sm:$0xff] }
  0x81   :  { %375 = vmatprep.mubr.f32.mxu1 %v6947_v0  ;;  %3601 = vmatprep.subr.bf16.mxu0 %v5774_v53  ;;  %v464_v46 = vld [vmem:[#allocation7 + $0x170] sm:$0xff]  ;;  %v5832_v48 = vpack.c.bf16 %v465_v39, %v461_v37  ;;  %v467_v49 = vld [vmem:[#allocation7 + $0x188] sm:$0xff]  ;;  %v5835_v54 = vpack.c.bf16 %v462_v43, %v458_v42  ;;  %v469_v55 = vld [vmem:[#allocation7 + $0x198] sm:$0xff] }
  0x82   :  { %263 = vmatmul.mubr.f32.gmra.mrb[2].mxu0 %v99_v59  ;;  %3633 = vmatprep.subr.bf16.mxu1 %v5776_v56  ;;  %v471_v51 = vld [vmem:[#allocation7 + $0x1a8] sm:$0xff]  ;;  %v473_v57 = vld [vmem:[#allocation7 + $0x1b8] sm:$0xff]  ;;  %v5839_v58 = vpack.c.bf16 %v464_v46, %v460_v45  ;;  %v470_v61 = vld [vmem:[#allocation7 + $0x1a0] sm:$0xff] }
  0x83   :  { %376 = vmatmul.mubr.f32.gmra.mrb[2].mxu1 %v99_v59  ;;  %3603 = vmatpush1.bf16.msra.mxu0 %v5779_v60  ;;  %v103_v52 = vld [vmem:[#allocation2 + $0x28] sm:$0xff]  ;;  %v466_v59 = vld [vmem:[#allocation7 + $0x180] sm:$0xff]  ;;  %v5843_v62 = vpack.c.bf16 %v471_v51, %v467_v49  ;;  %v468_v1 = vld [vmem:[#allocation7 + $0x190] sm:$0xff]  ;;  %v5846_v4 = vpack.c.bf16 %v473_v57, %v469_v55 }
  0x84   :  { %3635 = vmatpush1.bf16.msra.mxu1 %v5783_v63  ;;  %268 = vmatprep.mubr.f32.mxu0 %v6947_v0  ;;  %v472_v2 = vld [vmem:[#allocation7 + $0x1b0] sm:$0xff]  ;;  %v475_v5 = vld [vmem:[#allocation7 + $0x1c8] sm:$0xff]  ;;  %v477_v11 = vld [vmem:[#allocation7 + $0x1d8] sm:$0xff] }
  0x85   :  { %381 = vmatprep.mubr.f32.mxu1 %v6947_v0  ;;  %3605 = vmatprep.subr.bf16.mxu0 %v5787_v3  ;;  %v479_v7 = vld [vmem:[#allocation7 + $0x1e8] sm:$0xff]  ;;  %v104_v8 = vld [vmem:[#allocation2 + $0x30] sm:$0xff]  ;;  %v481_v12 = vld [vmem:[#allocation7 + $0x1f8] sm:$0xff]  ;;  %v5853_v14 = vpack.c.bf16 %v472_v2, %v468_v1 }
  0x86   :  { %269 = vmatmul.mubr.f32.gmra.mrb[4].mxu0 %v100_v9  ;;  %3637 = vmatprep.subr.bf16.mxu1 %v5790_v6  ;;  %v474_v15 = vld [vmem:[#allocation7 + $0x1c0] sm:$0xff]  ;;  %v5857_v18 = vpack.c.bf16 %v479_v7, %v475_v5  ;;  %v476_v20 = vld [vmem:[#allocation7 + $0x1d0] sm:$0xff]  ;;  %v483_v24 = vld [vmem:[#allocation8 + $0x8] sm:$0xff] }
  0x87   :  { %382 = vmatmul.mubr.f32.gmra.mrb[4].mxu1 %v100_v9  ;;  %3607 = vmatpush1.bf16.msra.mxu0 %v5793_v10  ;;  %v5849_v9 = vpack.c.bf16 %v470_v61, %v466_v59  ;;  %v478_v17 = vld [vmem:[#allocation7 + $0x1e0] sm:$0xff]  ;;  %v480_v21 = vld [vmem:[#allocation7 + $0x1f0] sm:$0xff]  ;;  %v487_v25 = vld [vmem:[#allocation8 + $0x28] sm:$0xff] }
  0x88   :  { %3639 = vmatpush1.bf16.msra.mxu1 %v5797_v13  ;;  %274 = vmatprep.mubr.f32.mxu0 %v6947_v0  ;;  %v105_v27 = vld [vmem:[#allocation2 + $0x38] sm:$0xff]  ;;  %v5863_v28 = vpack.c.bf16 %v478_v17, %v474_v15  ;;  %v5867_v33 = vpack.c.bf16 %v480_v21, %v476_v20  ;;  %v482_v34 = vld [vmem:[#allocation8] sm:$0xff]  ;;  %v484_v37 = vld [vmem:[#allocation8 + $0x10] sm:$0xff]  ;;  %v5871_v39 = vpack.c.bf16 %v487_v25, %v483_v24 }
  0x89   :  { %387 = vmatprep.mubr.f32.mxu1 %v6947_v0  ;;  %3609 = vmatprep.subr.bf16.mxu0 %v5801_v16  ;;  %v485_v30 = vld [vmem:[#allocation8 + $0x18] sm:$0xff]  ;;  %v488_v42 = vld [vmem:[#allocation8 + $0x30] sm:$0xff]  ;;  %v491_v43 = vld [vmem:[#allocation8 + $0x48] sm:$0xff] }
  0x8a   :  { %275 = vmatmul.mubr.f32.gmra.mrb[6].mxu0 %v101_v22  ;;  %3641 = vmatprep.subr.bf16.mxu1 %v5804_v19  ;;  %v489_v31 = vld [vmem:[#allocation8 + $0x38] sm:$0xff]  ;;  %v495_v45 = vld [vmem:[#allocation8 + $0x68] sm:$0xff]  ;;  %v5881_v55 = vpack.c.bf16 %v488_v42, %v484_v37  ;;  %v490_v59 = vld [vmem:[#allocation8 + $0x40] sm:$0xff] }
  0x8b   :  { %388 = vmatmul.mubr.f32.gmra.mrb[6].mxu1 %v101_v22  ;;  %3611 = vmatpush1.bf16.msra.mxu0 %v5807_v23  ;;  %v5860_v22 = vpack.c.bf16 %v481_v12, %v477_v11  ;;  %v5874_v46 = vpack.c.bf16 %v489_v31, %v485_v30  ;;  %v493_v49 = vld [vmem:[#allocation8 + $0x58] sm:$0xff]  ;;  %v5883_v57 = vpack.c.bf16 %v495_v45, %v491_v43  ;;  %v494_v61 = vld [vmem:[#allocation8 + $0x60] sm:$0xff]  ;;  %v492_v1 = vld [vmem:[#allocation8 + $0x50] sm:$0xff] }
  0x8c   :  { %3643 = vmatpush1.bf16.msra.mxu1 %v5811_v26  ;;  %280 = vmatprep.mubr.f32.mxu0 %v6947_v0  ;;  %v497_v51 = vld [vmem:[#allocation8 + $0x78] sm:$0xff]  ;;  %v496_v5 = vld [vmem:[#allocation8 + $0x70] sm:$0xff]  ;;  %v499_v7 = vld [vmem:[#allocation8 + $0x88] sm:$0xff]  ;;  %v5893_v15 = vpack.c.bf16 %v494_v61, %v490_v59 }
  0x8d   :  { %393 = vmatprep.mubr.f32.mxu1 %v6947_v0  ;;  %3613 = vmatprep.subr.bf16.mxu0 %v5815_v29  ;;  %v5887_v2 = vpack.c.bf16 %v497_v51, %v493_v49  ;;  %v501_v11 = vld [vmem:[#allocation8 + $0x98] sm:$0xff]  ;;  %v5897_v17 = vpack.c.bf16 %v496_v5, %v492_v1  ;;  %v498_v21 = vld [vmem:[#allocation8 + $0x80] sm:$0xff]  ;;  %v500_v25 = vld [vmem:[#allocation8 + $0x90] sm:$0xff] }
  0x8e   :  { %281 = vmatmul.mubr.f32.gmra.mrb[8].mxu0 %v102_v35  ;;  %3645 = vmatprep.subr.bf16.mxu1 %v5818_v32  ;;  %v505_v12 = vld [vmem:[#allocation8 + $0xb8] sm:$0xff]  ;;  %v502_v24 = vld [vmem:[#allocation8 + $0xa0] sm:$0xff]  ;;  %v504_v30 = vld [vmem:[#allocation8 + $0xb0] sm:$0xff] }
  0x8f   :  { %394 = vmatmul.mubr.f32.gmra.mrb[8].mxu1 %v102_v35  ;;  %3615 = vmatpush1.bf16.msra.mxu0 %v5821_v36  ;;  %v486_v35 = vld [vmem:[#allocation8 + $0x20] sm:$0xff]  ;;  %v507_v31 = vld [vmem:[#allocation8 + $0xc8] sm:$0xff]  ;;  %v513_v37 = vld [vmem:[#allocation8 + $0xf8] sm:$0xff]  ;;  %v5907_v42 = vpack.c.bf16 %v502_v24, %v498_v21  ;;  %v5911_v43 = vpack.c.bf16 %v504_v30, %v500_v25 }
  0x90   :  { %3647 = vmatpush1.bf16.msra.mxu1 %v5825_v40  ;;  %286 = vmatprep.mubr.f32.mxu0 %v6947_v0  ;;  %v506_v49 = vld [vmem:[#allocation8 + $0xc0] sm:$0xff]  ;;  %v508_v59 = vld [vmem:[#allocation8 + $0xd0] sm:$0xff]  ;;  %v515_v5 = vld [vmem:[#allocation8 + $0x108] sm:$0xff] }
  0x91   :  { %399 = vmatprep.mubr.f32.mxu1 %v6947_v0  ;;  %3617 = vmatprep.subr.bf16.mxu0 %v5829_v44  ;;  %7083 = vst [vmem:[#allocation18_spill] sm:$0xff] %v5907_v42  ;;  %7084 = vst [vmem:[#allocation19_spill] sm:$0xff] %v5911_v43  ;;  %v510_v51 = vld [vmem:[#allocation8 + $0xe0] sm:$0xff]  ;;  %v512_v1 = vld [vmem:[#allocation8 + $0xf0] sm:$0xff] }
  0x92   :  { %287 = vmatmul.mubr.f32.gmra.mrb[10].mxu0 %v103_v52  ;;  %3649 = vmatprep.subr.bf16.mxu1 %v5832_v48  ;;  %v5923_v21 = vpack.c.bf16 %v512_v1, %v508_v59  ;;  %v514_v25 = vld [vmem:[#allocation8 + $0x100] sm:$0xff]  ;;  %v527_v59 = vld [vmem:[#allocation8 + $0x168] sm:$0xff]  ;;  %v525_v1 = vld [vmem:[#allocation8 + $0x158] sm:$0xff] }
  0x93   :  { %400 = vmatmul.mubr.f32.gmra.mrb[10].mxu1 %v103_v52  ;;  %3619 = vmatpush1.bf16.msra.mxu0 %v5835_v54  ;;  %v5877_v52 = vpack.c.bf16 %v486_v35, %v482_v34  ;;  %v511_v34 = vld [vmem:[#allocation8 + $0xe8] sm:$0xff]  ;;  %v509_v35 = vld [vmem:[#allocation8 + $0xd8] sm:$0xff]  ;;  %v518_v30 = vld [vmem:[#allocation8 + $0x120] sm:$0xff] }
  0x94   :  { %3651 = vmatpush1.bf16.msra.mxu1 %v5839_v58  ;;  %292 = vmatprep.mubr.f32.mxu0 %v6947_v0  ;;  %v5913_v45 = vpack.c.bf16 %v511_v34, %v507_v31  ;;  %v5916_v61 = vpack.c.bf16 %v513_v37, %v509_v35  ;;  %7088 = vst [vmem:[#allocation23_spill] sm:$0xff] %v5923_v21  ;;  %v516_v34 = vld [vmem:[#allocation8 + $0x110] sm:$0xff] }
  0x95   :  { %405 = vmatprep.mubr.f32.mxu1 %v6947_v0  ;;  %3621 = vmatprep.subr.bf16.mxu0 %v5843_v62  ;;  %v520_v35 = vld [vmem:[#allocation8 + $0x130] sm:$0xff]  ;;  %v5931_v37 = vpack.c.bf16 %v518_v30, %v514_v25 }
  0x96   :  { %293 = vmatmul.mubr.f32.gmra.mrb[12].mxu0 %v104_v8  ;;  %3653 = vmatprep.subr.bf16.mxu1 %v5846_v4  ;;  %7085 = vst [vmem:[#allocation20_spill] sm:$0xff] %v5913_v45  ;;  %7086 = vst [vmem:[#allocation21_spill] sm:$0xff] %v5916_v61 }
  0x97   :  { %406 = vmatmul.mubr.f32.gmra.mrb[12].mxu1 %v104_v8  ;;  %3623 = vmatpush1.bf16.msra.mxu0 %v5849_v9  ;;  %v503_v8 = vld [vmem:[#allocation8 + $0xa8] sm:$0xff]  ;;  %7091 = vst [vmem:[#allocation26_spill] sm:$0xff] %v5931_v37 }
  0x98   :  { %3655 = vmatpush1.bf16.msra.mxu1 %v5853_v14  ;;  %298 = vmatprep.mubr.f32.mxu0 %v6947_v0  ;;  %v5899_v20 = vpack.c.bf16 %v503_v8, %v499_v7  ;;  %v519_v7 = vld [vmem:[#allocation8 + $0x128] sm:$0xff]  ;;  %v517_v8 = vld [vmem:[#allocation8 + $0x118] sm:$0xff] }
  0x99   :  { %411 = vmatprep.mubr.f32.mxu1 %v6947_v0  ;;  %3625 = vmatprep.subr.bf16.mxu0 %v5857_v18  ;;  %v5925_v24 = vpack.c.bf16 %v519_v7, %v515_v5  ;;  %v529_v7 = vld [vmem:[#allocation8 + $0x178] sm:$0xff] }
  0x9a   :  { %299 = vmatmul.mubr.f32.gmra.mrb[14].mxu0 %v105_v27  ;;  %3657 = vmatprep.subr.bf16.mxu1 %v5860_v22  ;;  %v5942_v25 = vpack.c.bf16 %v529_v7, %v525_v1  ;;  %v537_v1 = vld [vmem:[#allocation8 + $0x1b8] sm:$0xff]  ;;  %v530_v7 = vld [vmem:[#allocation8 + $0x180] sm:$0xff] }
  0x9b   :  { %412 = vmatmul.mubr.f32.gmra.mrb[14].mxu1 %v105_v27  ;;  %3627 = vmatpush1.bf16.msra.mxu0 %v5863_v28  ;;  %v5902_v27 = vpack.c.bf16 %v505_v12, %v501_v11  ;;  %v521_v11 = vld [vmem:[#allocation8 + $0x138] sm:$0xff]  ;;  %v5919_v12 = vpack.c.bf16 %v510_v51, %v506_v49  ;;  %7089 = vst [vmem:[#allocation24_spill] sm:$0xff] %v5925_v24  ;;  %v523_v51 = vld [vmem:[#allocation8 + $0x148] sm:$0xff] }
  0x9c   :  { %3659 = vmatpush1.bf16.msra.mxu1 %v5867_v33  ;;  %696 = vmatprep.mubr.f32.mxu0 %v6947_v0  ;;  %v5928_v31 = vpack.c.bf16 %v521_v11, %v517_v8  ;;  %v5935_v49 = vpack.c.bf16 %v520_v35, %v516_v34  ;;  %v5940_v5 = vpack.c.bf16 %v527_v59, %v523_v51  ;;  %v522_v8 = vld [vmem:[#allocation8 + $0x140] sm:$0xff]  ;;  %v524_v34 = vld [vmem:[#allocation8 + $0x150] sm:$0xff]  ;;  %v535_v51 = vld [vmem:[#allocation8 + $0x1a8] sm:$0xff] }
  0x9d   :  { %767 = vmatprep.mubr.f32.mxu1 %v6947_v0  ;;  %3661 = vmatprep.subr.bf16.mxu0 %v5871_v39  ;;  %7087 = vst [vmem:[#allocation22_spill] sm:$0xff] %v5919_v12  ;;  %v526_v11 = vld [vmem:[#allocation8 + $0x160] sm:$0xff]  ;;  %7094 = vst [vmem:[#allocation29_spill] sm:$0xff] %v5942_v25  ;;  %v528_v35 = vld [vmem:[#allocation8 + $0x170] sm:$0xff] }
  0x9e   :  { %697 = vmatmul.mubr.f32.vlgmr.msra.gmra.mrb[0].mxu0 %v6947_v0  ;;  %3725 = vmatprep.subr.bf16.mxu1 %v5874_v46  ;;  %7090 = vst [vmem:[#allocation25_spill] sm:$0xff] %v5928_v31  ;;  %7092 = vst [vmem:[#allocation27_spill] sm:$0xff] %v5935_v49  ;;  %v5944_v30 = vpack.c.bf16 %v526_v11, %v522_v8  ;;  %v533_v59 = vld [vmem:[#allocation8 + $0x198] sm:$0xff]  ;;  %v534_v8 = vld [vmem:[#allocation8 + $0x1a0] sm:$0xff] }
  0x9f   :  { %768 = vmatmul.mubr.f32.vlgmr.msra.gmra.mrb[0].mxu1 %v6947_v0  ;;  %3663 = vmatpush1.bf16.msra.mxu0 %v5877_v52  ;;  %7093 = vst [vmem:[#allocation28_spill] sm:$0xff] %v5940_v5  ;;  %v5954_v11 = vpack.c.bf16 %v537_v1, %v533_v59  ;;  %v545_v59 = vld [vmem:[#allocation8 + $0x1f8] sm:$0xff]  ;;  %v538_v1 = vld [vmem:[#allocation8 + $0x1c0] sm:$0xff] }
  0xa0   :  { %3727 = vmatpush1.bf16.msra.mxu1 %v5881_v55  ;;  %3665 = vmatprep.subr.bf16.mxu0 %v5883_v57  ;;  %7095 = vst [vmem:[#allocation30_spill] sm:$0xff] %v5944_v30 }
  0xa1   :  { %3729 = vmatprep.subr.bf16.mxu1 %v5887_v2  ;;  %866 = vmatprep.mubr.f32.mxu0 %v6947_v0  ;;  %7098 = vst [vmem:[#allocation33_spill] sm:$0xff] %v5954_v11 }
  0xa2   :  { %937 = vmatprep.mubr.f32.mxu1 %v6947_v0  ;;  %v5947_v0 = vpack.c.bf16 %v528_v35, %v524_v34  ;;  %v532_v34 = vld [vmem:[#allocation8 + $0x190] sm:$0xff] }
  0xa3   :  { %3667 = vmatpush1.bf16.msra.mxu0 %v5893_v15  ;;  %v536_v35 = vld [vmem:[#allocation8 + $0x1b0] sm:$0xff] }
  0xa4   :  { %3731 = vmatpush1.bf16.msra.mxu1 %v5897_v17  ;;  %3669 = vmatprep.subr.bf16.mxu0 %v5899_v20  ;;  %7096 = vst [vmem:[#allocation31_spill] sm:$0xff] %v5947_v0 }
  0xa5   :  { %3733 = vmatprep.subr.bf16.mxu1 %v5902_v27 }
  0xa7   :  { %3671 = vmatpush1.bf16.msra.mxu0 %v5907_v42 }
  0xa8   :  { %3735 = vmatpush1.bf16.msra.mxu1 %v5911_v43  ;;  %3673 = vmatprep.subr.bf16.mxu0 %v5913_v45 }
  0xa9   :  { %3737 = vmatprep.subr.bf16.mxu1 %v5916_v61 }
  0xab   :  { %3675 = vmatpush1.bf16.msra.mxu0 %v5919_v12 }
  0xac   :  { %3739 = vmatpush1.bf16.msra.mxu1 %v5923_v21  ;;  %3677 = vmatprep.subr.bf16.mxu0 %v5925_v24  ;;  %v597_v24 = vld [vmem:[#allocation8 + $0x398] sm:$0xff] }
  0xad   :  { %3741 = vmatprep.subr.bf16.mxu1 %v5928_v31  ;;  %v5956_v31 = vpack.c.bf16 %v534_v8, %v530_v7  ;;  %v542_v7 = vld [vmem:[#allocation8 + $0x1e0] sm:$0xff]  ;;  %v601_v21 = vld [vmem:[#allocation8 + $0x3b8] sm:$0xff] }
  0xaf   :  { %3679 = vmatpush1.bf16.msra.mxu0 %v5931_v37  ;;  %7099 = vst [vmem:[#allocation34_spill] sm:$0xff] %v5956_v31 }
  0xb0   :  { %3743 = vmatpush1.bf16.msra.mxu1 %v5935_v49  ;;  %3681 = vmatprep.subr.bf16.mxu0 %v5940_v5  ;;  %v531_v49 = vld [vmem:[#allocation8 + $0x188] sm:$0xff]  ;;  %v5968_v5 = vpack.c.bf16 %v542_v7, %v538_v1  ;;  %v550_v1 = vld [vmem:[#allocation8 + $0x220] sm:$0xff] }
  0xb1   :  { %3745 = vmatprep.subr.bf16.mxu1 %v5942_v25  ;;  %v5952_v37 = vpack.c.bf16 %v535_v51, %v531_v49  ;;  %v5959_v25 = vpack.c.bf16 %v536_v35, %v532_v34  ;;  %v543_v49 = vld [vmem:[#allocation8 + $0x1e8] sm:$0xff]  ;;  %v541_v51 = vld [vmem:[#allocation8 + $0x1d8] sm:$0xff]  ;;  %v540_v34 = vld [vmem:[#allocation8 + $0x1d0] sm:$0xff] }
  0xb2   :  { %v5966_v8 = vpack.c.bf16 %v545_v59, %v541_v51  ;;  %7103 = vst [vmem:[#allocation38_spill] sm:$0xff] %v5968_v5  ;;  %v544_v35 = vld [vmem:[#allocation8 + $0x1f0] sm:$0xff]  ;;  %v553_v51 = vld [vmem:[#allocation8 + $0x238] sm:$0xff]  ;;  %v546_v59 = vld [vmem:[#allocation8 + $0x200] sm:$0xff] }
  0xb3   :  { %3683 = vmatpush1.bf16.msra.mxu0 %v5944_v30  ;;  %7097 = vst [vmem:[#allocation32_spill] sm:$0xff] %v5952_v37  ;;  %7100 = vst [vmem:[#allocation35_spill] sm:$0xff] %v5959_v25 }
  0xb4   :  { %3747 = vmatpush1.bf16.msra.mxu1 %v5947_v0  ;;  %3685 = vmatprep.subr.bf16.mxu0 %v5952_v37  ;;  %v539_v0 = vld [vmem:[#allocation8 + $0x1c8] sm:$0xff]  ;;  %7102 = vst [vmem:[#allocation37_spill] sm:$0xff] %v5966_v8  ;;  %v5980_v37 = vpack.c.bf16 %v550_v1, %v546_v59  ;;  %v558_v59 = vld [vmem:[#allocation8 + $0x260] sm:$0xff] }
  0xb5   :  { %3749 = vmatprep.subr.bf16.mxu1 %v5954_v11  ;;  %v5964_v30 = vpack.c.bf16 %v543_v49, %v539_v0  ;;  %v5971_v11 = vpack.c.bf16 %v544_v35, %v540_v34  ;;  %v551_v0 = vld [vmem:[#allocation8 + $0x228] sm:$0xff]  ;;  %v549_v49 = vld [vmem:[#allocation8 + $0x218] sm:$0xff]  ;;  %v548_v34 = vld [vmem:[#allocation8 + $0x210] sm:$0xff] }
  0xb6   :  { %v5978_v7 = vpack.c.bf16 %v553_v51, %v549_v49  ;;  %7107 = vst [vmem:[#allocation42_spill] sm:$0xff] %v5980_v37  ;;  %v552_v35 = vld [vmem:[#allocation8 + $0x230] sm:$0xff]  ;;  %v561_v49 = vld [vmem:[#allocation8 + $0x278] sm:$0xff]  ;;  %v554_v51 = vld [vmem:[#allocation8 + $0x240] sm:$0xff] }
  0xb7   :  { %3687 = vmatpush1.bf16.msra.mxu0 %v5956_v31  ;;  %7101 = vst [vmem:[#allocation36_spill] sm:$0xff] %v5964_v30  ;;  %7104 = vst [vmem:[#allocation39_spill] sm:$0xff] %v5971_v11 }
  0xb8   :  { %3751 = vmatpush1.bf16.msra.mxu1 %v5959_v25  ;;  %3689 = vmatprep.subr.bf16.mxu0 %v5964_v30  ;;  %v547_v25 = vld [vmem:[#allocation8 + $0x208] sm:$0xff]  ;;  %7106 = vst [vmem:[#allocation41_spill] sm:$0xff] %v5978_v7  ;;  %v5992_v30 = vpack.c.bf16 %v558_v59, %v554_v51  ;;  %v566_v51 = vld [vmem:[#allocation8 + $0x2a0] sm:$0xff] }
  0xb9   :  { %3753 = vmatprep.subr.bf16.mxu1 %v5966_v8  ;;  %v5976_v31 = vpack.c.bf16 %v551_v0, %v547_v25  ;;  %v5983_v8 = vpack.c.bf16 %v552_v35, %v548_v34  ;;  %v559_v25 = vld [vmem:[#allocation8 + $0x268] sm:$0xff]  ;;  %v557_v0 = vld [vmem:[#allocation8 + $0x258] sm:$0xff]  ;;  %v556_v34 = vld [vmem:[#allocation8 + $0x250] sm:$0xff] }
  0xba   :  { %v5990_v1 = vpack.c.bf16 %v561_v49, %v557_v0  ;;  %7111 = vst [vmem:[#allocation46_spill] sm:$0xff] %v5992_v30  ;;  %v560_v35 = vld [vmem:[#allocation8 + $0x270] sm:$0xff]  ;;  %v569_v0 = vld [vmem:[#allocation8 + $0x2b8] sm:$0xff]  ;;  %v562_v49 = vld [vmem:[#allocation8 + $0x280] sm:$0xff] }
  0xbb   :  { %3691 = vmatpush1.bf16.msra.mxu0 %v5968_v5  ;;  %7105 = vst [vmem:[#allocation40_spill] sm:$0xff] %v5976_v31  ;;  %7108 = vst [vmem:[#allocation43_spill] sm:$0xff] %v5983_v8 }
  0xbc   :  { %3755 = vmatpush1.bf16.msra.mxu1 %v5971_v11  ;;  %3693 = vmatprep.subr.bf16.mxu0 %v5976_v31  ;;  %v555_v11 = vld [vmem:[#allocation8 + $0x248] sm:$0xff]  ;;  %7110 = vst [vmem:[#allocation45_spill] sm:$0xff] %v5990_v1  ;;  %v6004_v31 = vpack.c.bf16 %v566_v51, %v562_v49  ;;  %v574_v49 = vld [vmem:[#allocation8 + $0x2e0] sm:$0xff] }
  0xbd   :  { %3757 = vmatprep.subr.bf16.mxu1 %v5978_v7  ;;  %v5988_v5 = vpack.c.bf16 %v559_v25, %v555_v11  ;;  %v5995_v7 = vpack.c.bf16 %v560_v35, %v556_v34  ;;  %v567_v11 = vld [vmem:[#allocation8 + $0x2a8] sm:$0xff]  ;;  %v565_v25 = vld [vmem:[#allocation8 + $0x298] sm:$0xff]  ;;  %v564_v34 = vld [vmem:[#allocation8 + $0x290] sm:$0xff] }
  0xbe   :  { %v6002_v59 = vpack.c.bf16 %v569_v0, %v565_v25  ;;  %7115 = vst [vmem:[#allocation50_spill] sm:$0xff] %v6004_v31  ;;  %v568_v35 = vld [vmem:[#allocation8 + $0x2b0] sm:$0xff]  ;;  %v577_v25 = vld [vmem:[#allocation8 + $0x2f8] sm:$0xff]  ;;  %v570_v0 = vld [vmem:[#allocation8 + $0x2c0] sm:$0xff] }
  0xbf   :  { %3695 = vmatpush1.bf16.msra.mxu0 %v5980_v37  ;;  %7109 = vst [vmem:[#allocation44_spill] sm:$0xff] %v5988_v5  ;;  %7112 = vst [vmem:[#allocation47_spill] sm:$0xff] %v5995_v7 }
  0xc0   :  { %3759 = vmatpush1.bf16.msra.mxu1 %v5983_v8  ;;  %3697 = vmatprep.subr.bf16.mxu0 %v5988_v5  ;;  %v563_v8 = vld [vmem:[#allocation8 + $0x288] sm:$0xff]  ;;  %7114 = vst [vmem:[#allocation49_spill] sm:$0xff] %v6002_v59  ;;  %v6016_v5 = vpack.c.bf16 %v574_v49, %v570_v0  ;;  %v582_v0 = vld [vmem:[#allocation8 + $0x320] sm:$0xff] }
  0xc1   :  { %3761 = vmatprep.subr.bf16.mxu1 %v5990_v1  ;;  %v6000_v37 = vpack.c.bf16 %v567_v11, %v563_v8  ;;  %v6007_v1 = vpack.c.bf16 %v568_v35, %v564_v34  ;;  %v575_v8 = vld [vmem:[#allocation8 + $0x2e8] sm:$0xff]  ;;  %v573_v11 = vld [vmem:[#allocation8 + $0x2d8] sm:$0xff]  ;;  %v572_v34 = vld [vmem:[#allocation8 + $0x2d0] sm:$0xff] }
  0xc2   :  { %v6014_v51 = vpack.c.bf16 %v577_v25, %v573_v11  ;;  %7119 = vst [vmem:[#allocation54_spill] sm:$0xff] %v6016_v5  ;;  %v576_v35 = vld [vmem:[#allocation8 + $0x2f0] sm:$0xff]  ;;  %v585_v11 = vld [vmem:[#allocation8 + $0x338] sm:$0xff]  ;;  %v578_v25 = vld [vmem:[#allocation8 + $0x300] sm:$0xff] }
  0xc3   :  { %3699 = vmatpush1.bf16.msra.mxu0 %v5992_v30  ;;  %7113 = vst [vmem:[#allocation48_spill] sm:$0xff] %v6000_v37  ;;  %7116 = vst [vmem:[#allocation51_spill] sm:$0xff] %v6007_v1 }
  0xc4   :  { %3763 = vmatpush1.bf16.msra.mxu1 %v5995_v7  ;;  %3701 = vmatprep.subr.bf16.mxu0 %v6000_v37  ;;  %v571_v7 = vld [vmem:[#allocation8 + $0x2c8] sm:$0xff]  ;;  %7118 = vst [vmem:[#allocation53_spill] sm:$0xff] %v6014_v51  ;;  %v6028_v37 = vpack.c.bf16 %v582_v0, %v578_v25  ;;  %v590_v25 = vld [vmem:[#allocation8 + $0x360] sm:$0xff] }
  0xc5   :  { %3765 = vmatprep.subr.bf16.mxu1 %v6002_v59  ;;  %v6012_v30 = vpack.c.bf16 %v575_v8, %v571_v7  ;;  %v6019_v59 = vpack.c.bf16 %v576_v35, %v572_v34  ;;  %v583_v7 = vld [vmem:[#allocation8 + $0x328] sm:$0xff]  ;;  %v581_v8 = vld [vmem:[#allocation8 + $0x318] sm:$0xff]  ;;  %v580_v34 = vld [vmem:[#allocation8 + $0x310] sm:$0xff] }
  0xc6   :  { %v6026_v49 = vpack.c.bf16 %v585_v11, %v581_v8  ;;  %7123 = vst [vmem:[#allocation58_spill] sm:$0xff] %v6028_v37  ;;  %v584_v35 = vld [vmem:[#allocation8 + $0x330] sm:$0xff]  ;;  %v593_v8 = vld [vmem:[#allocation8 + $0x378] sm:$0xff]  ;;  %v586_v11 = vld [vmem:[#allocation8 + $0x340] sm:$0xff] }
  0xc7   :  { %3703 = vmatpush1.bf16.msra.mxu0 %v6004_v31  ;;  %7117 = vst [vmem:[#allocation52_spill] sm:$0xff] %v6012_v30  ;;  %7120 = vst [vmem:[#allocation55_spill] sm:$0xff] %v6019_v59 }
  0xc8   :  { %3767 = vmatpush1.bf16.msra.mxu1 %v6007_v1  ;;  %3705 = vmatprep.subr.bf16.mxu0 %v6012_v30  ;;  %v579_v1 = vld [vmem:[#allocation8 + $0x308] sm:$0xff]  ;;  %7122 = vst [vmem:[#allocation57_spill] sm:$0xff] %v6026_v49  ;;  %v6040_v30 = vpack.c.bf16 %v590_v25, %v586_v11  ;;  %v596_v11 = vld [vmem:[#allocation8 + $0x390] sm:$0xff] }
  0xc9   :  { %3769 = vmatprep.subr.bf16.mxu1 %v6014_v51  ;;  %v6024_v31 = vpack.c.bf16 %v583_v7, %v579_v1  ;;  %v6031_v51 = vpack.c.bf16 %v584_v35, %v580_v34  ;;  %v591_v1 = vld [vmem:[#allocation8 + $0x368] sm:$0xff]  ;;  %v589_v7 = vld [vmem:[#allocation8 + $0x358] sm:$0xff]  ;;  %v588_v34 = vld [vmem:[#allocation8 + $0x350] sm:$0xff] }
  0xca   :  { %v6038_v0 = vpack.c.bf16 %v593_v8, %v589_v7  ;;  %7127 = vst [vmem:[#allocation62_spill] sm:$0xff] %v6040_v30  ;;  %v592_v35 = vld [vmem:[#allocation8 + $0x370] sm:$0xff]  ;;  %v594_v7 = vld [vmem:[#allocation8 + $0x380] sm:$0xff] }
  0xcb   :  { %3707 = vmatpush1.bf16.msra.mxu0 %v6016_v5  ;;  %7121 = vst [vmem:[#allocation56_spill] sm:$0xff] %v6024_v31  ;;  %7124 = vst [vmem:[#allocation59_spill] sm:$0xff] %v6031_v51  ;;  %v598_v8 = vld [vmem:[#allocation8 + $0x3a0] sm:$0xff] }
  0xcc   :  { %3771 = vmatpush1.bf16.msra.mxu1 %v6019_v59  ;;  %3709 = vmatprep.subr.bf16.mxu0 %v6024_v31  ;;  %v587_v59 = vld [vmem:[#allocation8 + $0x348] sm:$0xff]  ;;  %7126 = vst [vmem:[#allocation61_spill] sm:$0xff] %v6038_v0  ;;  %v6052_v25 = vpack.c.bf16 %v598_v8, %v594_v7  ;;  %v608_v7 = vld [vmem:[#allocation8 + $0x3f0] sm:$0xff] }
  0xcd   :  { %3773 = vmatprep.subr.bf16.mxu1 %v6026_v49  ;;  %v6036_v5 = vpack.c.bf16 %v591_v1, %v587_v59  ;;  %v595_v31 = vld [vmem:[#allocation8 + $0x388] sm:$0xff]  ;;  %v6049_v1 = vpack.c.bf16 %v601_v21, %v597_v24  ;;  %v605_v21 = vld [vmem:[#allocation8 + $0x3d8] sm:$0xff] }
  0xce   :  { %v599_v49 = vld [vmem:[#allocation8 + $0x3a8] sm:$0xff]  ;;  %7131 = vst [vmem:[#allocation66_spill] sm:$0xff] %v6052_v25  ;;  %v609_v24 = vld [vmem:[#allocation8 + $0x3f8] sm:$0xff] }
  0xcf   :  { %3711 = vmatpush1.bf16.msra.mxu0 %v6028_v37  ;;  %7125 = vst [vmem:[#allocation60_spill] sm:$0xff] %v6036_v5  ;;  %v6043_v37 = vpack.c.bf16 %v592_v35, %v588_v34  ;;  %v6047_v59 = vpack.c.bf16 %v599_v49, %v595_v31  ;;  %7130 = vst [vmem:[#allocation65_spill] sm:$0xff] %v6049_v1  ;;  %v600_v34 = vld [vmem:[#allocation8 + $0x3b0] sm:$0xff]  ;;  %v603_v35 = vld [vmem:[#allocation8 + $0x3c8] sm:$0xff] }
  0xd0   :  { %3775 = vmatpush1.bf16.msra.mxu1 %v6031_v51  ;;  %3713 = vmatprep.subr.bf16.mxu0 %v6036_v5  ;;  %v607_v5 = vld [vmem:[#allocation8 + $0x3e8] sm:$0xff]  ;;  %v602_v49 = vld [vmem:[#allocation8 + $0x3c0] sm:$0xff] }
  0xd1   :  { %7128 = vst [vmem:[#allocation63_spill] sm:$0xff] %v6043_v37  ;;  %3777 = vmatprep.subr.bf16.mxu1 %v6038_v0  ;;  %7129 = vst [vmem:[#allocation64_spill] sm:$0xff] %v6047_v59  ;;  %v6056_v0 = vpack.c.bf16 %v600_v34, %v596_v11  ;;  %v6058_v31 = vpack.c.bf16 %v607_v5, %v603_v35  ;;  %v606_v51 = vld [vmem:[#allocation8 + $0x3e0] sm:$0xff]  ;;  %v172_v5 = vlaneseq }
  0xd2   :  { %v6063_v8 = vpack.c.bf16 %v606_v51, %v602_v49 }
  0xd3   :  { %3715 = vmatpush1.bf16.msra.mxu0 %v6040_v30  ;;  %7132 = vst [vmem:[#allocation67_spill] sm:$0xff] %v6056_v0  ;;  %7133 = vst [vmem:[#allocation68_spill] sm:$0xff] %v6058_v31  ;;  %v6060_v30 = vpack.c.bf16 %v609_v24, %v605_v21  ;;  %v6074_v34 = vshrl.u32 %v172_v5, 7 }
  0xd4   :  { %3779 = vmatpush1.bf16.msra.mxu1 %v6043_v37  ;;  %3717 = vmatprep.subr.bf16.mxu0 %v6047_v59  ;;  %v604_v37 = vld [vmem:[#allocation8 + $0x3d0] sm:$0xff]  ;;  %7135 = vst [vmem:[#allocation70_spill] sm:$0xff] %v6063_v8 }
  0xd5   :  { %3781 = vmatprep.subr.bf16.mxu1 %v6049_v1  ;;  %7134 = vst [vmem:[#allocation69_spill] sm:$0xff] %v6060_v30  ;;  %v6067_v11 = vpack.c.bf16 %v608_v7, %v604_v37  ;;  %7137 = vst [vmem:[#allocation72_spill] sm:$0xff] %v6074_v34  ;;  %v7043_v51 = vsub.s32 0, %v6074_v34  ;;  %v170_v37 = vld [vmem:[%s6941_s3] sm:$0xf]  ;;  %v7044_v35 = vsub.s32 1, %v6074_v34 }
  0xd6   :  { %v7051_v7 = vsub.s32 3, %v6074_v34 }
  0xd7   :  { %3719 = vmatpush1.bf16.msra.mxu0 %v6052_v25  ;;  %7136 = vst [vmem:[#allocation71_spill] sm:$0xff] %v6067_v11  ;;  %v6083_v21 = vrot.slane %v170_v37, %v7043_v51  ;;  %v6087_v24 = vrot.slane %v170_v37, %v7044_v35  ;;  %v7060_v35 = vsub.s32 2, %v6074_v34 }
  0xd8   :  { %3783 = vmatpush1.bf16.msra.mxu1 %v6056_v0  ;;  %3721 = vmatprep.subr.bf16.mxu0 %v6058_v31  ;;  %v6094_v51 = vrot.slane %v170_v37, %v7051_v7 }
  0xd9   :  { %3785 = vmatprep.subr.bf16.mxu1 %v6060_v30  ;;  %7138 = vst [vmem:[#allocation73_spill] sm:$0xff] %v6083_v21  ;;  %7139 = vst [vmem:[#allocation74_spill] sm:$0xff] %v6087_v24 }
  0xda   :  { %7140 = vst [vmem:[#allocation75_spill] sm:$0xff] %v6094_v51 }
  0xdb   :  { %3723 = vmatpush1.bf16.msra.mxu0 %v6063_v8 }
  0xdc   :  { %3787 = vmatpush1.bf16.msra.mxu1 %v6067_v11  ;;  %3789 = vmatprep.subr.bf16.mxu0 %v5764_v38 }
  0xdd   :  { %3821 = vmatprep.subr.bf16.mxu1 %v5766_v41 }
 0x171   :  { %v698_v49 = vpop.f32.mrb[0].mxu0 }
 0x172   :  { %v5156_v5 = vadd.f32 %v698_v49, %v6083_v21  ;;  %v769_v41 = vpop.f32.mrb[0].mxu1  ;;  %v700_v38 = vpop.f32.mrb[1].mxu0  ;;  %v6100_v49 = vrot.slane %v170_v37, %v7060_v35  ;;  %v7156_v35 = vld [vmem:[#allocation37_spill] sm:$0xff] }
 0x173   :  { %v5157_v11 = vadd.f32 %v700_v38, %v6087_v24  ;;  %v771_v8 = vpop.f32.mrb[1].mxu1 }
 0x174   :  { %v3431_v30 = vmul.f32 -1.442695, %v5156_v5  ;;  %v5173_v0 = vadd.f32 %v771_v8, %v6094_v51  ;;  %v5172_v38 = vadd.f32 %v769_v41, %v6100_v49 }
 0x175   :  { %v3432_v31 = vmul.f32 -1.442695, %v5157_v11 }
 0x176   :  { %5233 = vpow2.f32 %v3431_v30  ;;  %v3433_v21 = vmul.f32 -1.442695, %v5173_v0 }
 0x177   :  { %5235 = vpow2.f32 %v3432_v31 }
 0x178   :  { %5237 = vpow2.f32 %v3433_v21  ;;  %v7145_v21 = vld [vmem:[#allocation26_spill] sm:$0xff] }
 0x179   :  { %5239 = vtanh.f32 %v5172_v38  ;;  %v7147_v38 = vld [vmem:[#allocation28_spill] sm:$0xff] }
 0x180   :  { %v5234_v24 = vpop.eup %5233 }
 0x181   :  { %v5236_v5 = vpop.eup %5235  ;;  %v781_v11 = vadd.f32 1.0, %v5234_v24 }
 0x182   :  { %v787_v7 = vadd.f32 1.0, %v5236_v5  ;;  %v5238_v30 = vpop.eup %5237  ;;  %v7148_v5 = vld [vmem:[#allocation29_spill] sm:$0xff] }
 0x183   :  { %5241 = vrcp.f32 %v781_v11  ;;  %v5240_v25 = vpop.eup %5239  ;;  %v794_v51 = vadd.f32 1.0, %v5238_v30  ;;  %v7149_v11 = vld [vmem:[#allocation30_spill] sm:$0xff]  ;;  %v7150_v30 = vld [vmem:[#allocation31_spill] sm:$0xff] }
 0x184   :  { %5243 = vrcp.f32 %v787_v7  ;;  %v7146_v7 = vld [vmem:[#allocation27_spill] sm:$0xff] }
 0x185   :  { %5245 = vrcp.f32 %v794_v51  ;;  %v7144_v51 = vld [vmem:[#allocation25_spill] sm:$0xff] }
 0x18d   :  { %v5242_v31 = vpop.eup %5241 }
 0x18e   :  { %v5244_v1 = vpop.eup %5243  ;;  %v798_v8 = vmul.f32 %v5242_v31, %v5240_v25  ;;  %v7141_v25 = vmov 0.0   ;;  %v7151_v31 = vld [vmem:[#allocation32_spill] sm:$0xff] }
 0x18f   :  { %v797_v34 = vmul.f32 0.0, %v5244_v1  ;;  %v5246_v41 = vpop.eup %5245  ;;  %v7142_v1 = vld [vmem:[#allocation23_spill] sm:$0xff] }
 0x191   :  { %v6103_v37 = vadd.f32 %v798_v8, %v797_v34  ;;  %v7143_v34 = vld [vmem:[#allocation24_spill] sm:$0xff]  ;;  %v7152_v8 = vld [vmem:[#allocation33_spill] sm:$0xff] }
 0x193   :  { %5247 = vtanh.f32 %v6103_v37 }
 0x19d   :  { %v5248_v0 = vpop.eup %5247 }
 0x19e   :  { %v801_v24 = vmul.f32 %v5248_v0, %v5246_v41  ;;  %v7153_v41 = vld [vmem:[#allocation34_spill] sm:$0xff]  ;;  %v7154_v0 = vld [vmem:[#allocation35_spill] sm:$0xff] }
 0x1a0   :  { %867 = vmatmul.mubr.f32.vlgmr.msra.gmra.mrb[16].mxu0 %v801_v24  ;;  %938 = vmatmul.mubr.f32.vlgmr.msra.gmra.mrb[16].mxu1 %v801_v24 }
 0x1a1   :  { %3791 = vmatpush1.bf16.msra.mxu0 %v5768_v47  ;;  %3823 = vmatpush1.bf16.msra.mxu1 %v5771_v50 }
 0x1a2   :  { %3793 = vmatprep.subr.bf16.mxu0 %v5774_v53  ;;  %3825 = vmatprep.subr.bf16.mxu1 %v5776_v56 }
 0x1a3   :  { %1032 = vmatprep.mubr.f32.mxu0 %v7141_v25  ;;  %1103 = vmatprep.mubr.f32.mxu1 %v7141_v25 }
 0x1a5   :  { %3795 = vmatpush1.bf16.msra.mxu0 %v5779_v60  ;;  %3827 = vmatpush1.bf16.msra.mxu1 %v5783_v63 }
 0x1a6   :  { %3797 = vmatprep.subr.bf16.mxu0 %v5787_v3  ;;  %3829 = vmatprep.subr.bf16.mxu1 %v5790_v6 }
 0x1a9   :  { %3799 = vmatpush1.bf16.msra.mxu0 %v5793_v10  ;;  %3831 = vmatpush1.bf16.msra.mxu1 %v5797_v13 }
 0x1aa   :  { %3801 = vmatprep.subr.bf16.mxu0 %v5801_v16  ;;  %3833 = vmatprep.subr.bf16.mxu1 %v5804_v19 }
 0x1ad   :  { %3803 = vmatpush1.bf16.msra.mxu0 %v5807_v23  ;;  %3835 = vmatpush1.bf16.msra.mxu1 %v5811_v26 }
 0x1ae   :  { %3805 = vmatprep.subr.bf16.mxu0 %v5815_v29  ;;  %3837 = vmatprep.subr.bf16.mxu1 %v5818_v32 }
 0x1b1   :  { %3807 = vmatpush1.bf16.msra.mxu0 %v5821_v36  ;;  %3839 = vmatpush1.bf16.msra.mxu1 %v5825_v40 }
 0x1b2   :  { %3809 = vmatprep.subr.bf16.mxu0 %v5829_v44  ;;  %3841 = vmatprep.subr.bf16.mxu1 %v5832_v48 }
 0x1b5   :  { %3811 = vmatpush1.bf16.msra.mxu0 %v5835_v54  ;;  %3843 = vmatpush1.bf16.msra.mxu1 %v5839_v58 }
 0x1b6   :  { %3813 = vmatprep.subr.bf16.mxu0 %v5843_v62  ;;  %3845 = vmatprep.subr.bf16.mxu1 %v5846_v4 }
 0x1b9   :  { %3815 = vmatpush1.bf16.msra.mxu0 %v5849_v9  ;;  %3847 = vmatpush1.bf16.msra.mxu1 %v5853_v14 }
 0x1ba   :  { %3817 = vmatprep.subr.bf16.mxu0 %v5857_v18  ;;  %3849 = vmatprep.subr.bf16.mxu1 %v5860_v22 }
 0x1bd   :  { %3819 = vmatpush1.bf16.msra.mxu0 %v5863_v28  ;;  %3851 = vmatpush1.bf16.msra.mxu1 %v5867_v33 }
 0x1be   :  { %3853 = vmatprep.subr.bf16.mxu0 %v5871_v39  ;;  %3917 = vmatprep.subr.bf16.mxu1 %v5874_v46 }
 0x1c0   :  { %1033 = vmatmul.mubr.f32.vlgmr.msra.gmra.mrb[2].mxu0 %v801_v24  ;;  %1104 = vmatmul.mubr.f32.vlgmr.msra.gmra.mrb[2].mxu1 %v801_v24  ;;  %v7155_v24 = vld [vmem:[#allocation36_spill] sm:$0xff] }
 0x1c1   :  { %3855 = vmatpush1.bf16.msra.mxu0 %v5877_v52  ;;  %3919 = vmatpush1.bf16.msra.mxu1 %v5881_v55 }
 0x1c2   :  { %3857 = vmatprep.subr.bf16.mxu0 %v5883_v57  ;;  %3921 = vmatprep.subr.bf16.mxu1 %v5887_v2 }
 0x1c5   :  { %3859 = vmatpush1.bf16.msra.mxu0 %v5893_v15  ;;  %3923 = vmatpush1.bf16.msra.mxu1 %v5897_v17 }
 0x1c6   :  { %3861 = vmatprep.subr.bf16.mxu0 %v5899_v20  ;;  %3925 = vmatprep.subr.bf16.mxu1 %v5902_v27 }
 0x1c9   :  { %3863 = vmatpush1.bf16.msra.mxu0 %v5907_v42  ;;  %3927 = vmatpush1.bf16.msra.mxu1 %v5911_v43 }
 0x1ca   :  { %3865 = vmatprep.subr.bf16.mxu0 %v5913_v45  ;;  %3929 = vmatprep.subr.bf16.mxu1 %v5916_v61 }
 0x1cd   :  { %3867 = vmatpush1.bf16.msra.mxu0 %v5919_v12  ;;  %3931 = vmatpush1.bf16.msra.mxu1 %v7142_v1 }
 0x1ce   :  { %3869 = vmatprep.subr.bf16.mxu0 %v7143_v34  ;;  %3933 = vmatprep.subr.bf16.mxu1 %v7144_v51 }
 0x1d1   :  { %3871 = vmatpush1.bf16.msra.mxu0 %v7145_v21  ;;  %3935 = vmatpush1.bf16.msra.mxu1 %v7146_v7  ;;  %v7157_v7 = vld [vmem:[#allocation38_spill] sm:$0xff] }
 0x1d2   :  { %3873 = vmatprep.subr.bf16.mxu0 %v7147_v38  ;;  %3937 = vmatprep.subr.bf16.mxu1 %v7148_v5  ;;  %v7158_v38 = vld [vmem:[#allocation39_spill] sm:$0xff]  ;;  %v7159_v5 = vld [vmem:[#allocation40_spill] sm:$0xff] }
 0x1d5   :  { %3875 = vmatpush1.bf16.msra.mxu0 %v7149_v11  ;;  %3939 = vmatpush1.bf16.msra.mxu1 %v7150_v30  ;;  %v7160_v11 = vld [vmem:[#allocation41_spill] sm:$0xff]  ;;  %v7161_v30 = vld [vmem:[#allocation42_spill] sm:$0xff] }
 0x1d6   :  { %3877 = vmatprep.subr.bf16.mxu0 %v7151_v31  ;;  %3941 = vmatprep.subr.bf16.mxu1 %v7152_v8  ;;  %v7162_v31 = vld [vmem:[#allocation43_spill] sm:$0xff]  ;;  %v7163_v8 = vld [vmem:[#allocation44_spill] sm:$0xff] }
 0x1d9   :  { %3879 = vmatpush1.bf16.msra.mxu0 %v7153_v41  ;;  %3943 = vmatpush1.bf16.msra.mxu1 %v7154_v0  ;;  %v7164_v41 = vld [vmem:[#allocation45_spill] sm:$0xff]  ;;  %v7165_v0 = vld [vmem:[#allocation46_spill] sm:$0xff] }
 0x1da   :  { %3881 = vmatprep.subr.bf16.mxu0 %v7155_v24  ;;  %3945 = vmatprep.subr.bf16.mxu1 %v7156_v35  ;;  %v7166_v24 = vld [vmem:[#allocation47_spill] sm:$0xff]  ;;  %v7167_v35 = vld [vmem:[#allocation48_spill] sm:$0xff] }
 0x1dd   :  { %3883 = vmatpush1.bf16.msra.mxu0 %v7157_v7  ;;  %3947 = vmatpush1.bf16.msra.mxu1 %v7158_v38  ;;  %v7168_v7 = vld [vmem:[#allocation49_spill] sm:$0xff]  ;;  %v7169_v38 = vld [vmem:[#allocation50_spill] sm:$0xff] }
 0x1de   :  { %3885 = vmatprep.subr.bf16.mxu0 %v7159_v5  ;;  %3949 = vmatprep.subr.bf16.mxu1 %v7160_v11  ;;  %v7170_v5 = vld [vmem:[#allocation51_spill] sm:$0xff]  ;;  %v7171_v11 = vld [vmem:[#allocation52_spill] sm:$0xff] }
 0x1e1   :  { %3887 = vmatpush1.bf16.msra.mxu0 %v7161_v30  ;;  %3951 = vmatpush1.bf16.msra.mxu1 %v7162_v31  ;;  %v7172_v30 = vld [vmem:[#allocation53_spill] sm:$0xff]  ;;  %v7173_v31 = vld [vmem:[#allocation54_spill] sm:$0xff] }
 0x1e2   :  { %3889 = vmatprep.subr.bf16.mxu0 %v7163_v8  ;;  %3953 = vmatprep.subr.bf16.mxu1 %v7164_v41  ;;  %v7174_v8 = vld [vmem:[#allocation55_spill] sm:$0xff]  ;;  %v7175_v41 = vld [vmem:[#allocation56_spill] sm:$0xff] }
 0x1e5   :  { %3891 = vmatpush1.bf16.msra.mxu0 %v7165_v0  ;;  %3955 = vmatpush1.bf16.msra.mxu1 %v7166_v24  ;;  %v7176_v0 = vld [vmem:[#allocation57_spill] sm:$0xff]  ;;  %v7177_v24 = vld [vmem:[#allocation58_spill] sm:$0xff] }
 0x1e6   :  { %3893 = vmatprep.subr.bf16.mxu0 %v7167_v35  ;;  %3957 = vmatprep.subr.bf16.mxu1 %v7168_v7  ;;  %v7178_v35 = vld [vmem:[#allocation59_spill] sm:$0xff]  ;;  %v7179_v7 = vld [vmem:[#allocation60_spill] sm:$0xff] }
 0x1e9   :  { %3895 = vmatpush1.bf16.msra.mxu0 %v7169_v38  ;;  %3959 = vmatpush1.bf16.msra.mxu1 %v7170_v5  ;;  %v7180_v38 = vld [vmem:[#allocation61_spill] sm:$0xff]  ;;  %v7181_v5 = vld [vmem:[#allocation62_spill] sm:$0xff] }
 0x1ea   :  { %3897 = vmatprep.subr.bf16.mxu0 %v7171_v11  ;;  %3961 = vmatprep.subr.bf16.mxu1 %v7172_v30  ;;  %v7182_v11 = vld [vmem:[#allocation63_spill] sm:$0xff] }
 0x1ed   :  { %3899 = vmatpush1.bf16.msra.mxu0 %v7173_v31  ;;  %3963 = vmatpush1.bf16.msra.mxu1 %v7174_v8  ;;  %v7183_v31 = vld [vmem:[#allocation65_spill] sm:$0xff]  ;;  %v7184_v8 = vld [vmem:[#allocation66_spill] sm:$0xff] }
 0x1ee   :  { %3901 = vmatprep.subr.bf16.mxu0 %v7175_v41  ;;  %3965 = vmatprep.subr.bf16.mxu1 %v7176_v0  ;;  %v7185_v41 = vld [vmem:[#allocation67_spill] sm:$0xff]  ;;  %v7186_v0 = vld [vmem:[#allocation68_spill] sm:$0xff] }
 0x1f1   :  { %3903 = vmatpush1.bf16.msra.mxu0 %v7177_v24  ;;  %3967 = vmatpush1.bf16.msra.mxu1 %v7178_v35  ;;  %v7187_v24 = vld [vmem:[#allocation69_spill] sm:$0xff]  ;;  %v7188_v35 = vld [vmem:[#allocation70_spill] sm:$0xff] }
 0x1f2   :  { %3905 = vmatprep.subr.bf16.mxu0 %v7179_v7  ;;  %3969 = vmatprep.subr.bf16.mxu1 %v7180_v38  ;;  %v7189_v7 = vld [vmem:[#allocation71_spill] sm:$0xff]  ;;  %v7190_v38 = vld [vmem:[#allocation16_spill] sm:$0xff] }
 0x1f5   :  { %3907 = vmatpush1.bf16.msra.mxu0 %v7181_v5  ;;  %3971 = vmatpush1.bf16.msra.mxu1 %v7182_v11  ;;  %v7191_v5 = vld [vmem:[#allocation17_spill] sm:$0xff] }
 0x1f6   :  { %3909 = vmatprep.subr.bf16.mxu0 %v6047_v59  ;;  %3973 = vmatprep.subr.bf16.mxu1 %v7183_v31  ;;  %v610_v31 = vld [vmem:[%s6943_s5] sm:$0xf]  ;;  %v7192_v59 = vld [vmem:[#allocation72_spill] sm:$0xff] }
 0x1f7   :  { %v7197_v34 = vsub.s32 3, %v7192_v59 }
 0x1f9   :  { %3911 = vmatpush1.bf16.msra.mxu0 %v7184_v8  ;;  %3975 = vmatpush1.bf16.msra.mxu1 %v7185_v41  ;;  %v7193_v8 = vsub.s32 0, %v7192_v59  ;;  %v6219_v1 = vrot.slane %v610_v31, %v7197_v34 }
 0x1fa   :  { %3913 = vmatprep.subr.bf16.mxu0 %v7186_v0  ;;  %3977 = vmatprep.subr.bf16.mxu1 %v7187_v24  ;;  %v7195_v0 = vsub.s32 1, %v7192_v59 }
 0x1fb   :  { %v6209_v11 = vrot.slane %v610_v31, %v7193_v8  ;;  %7198 = vst [vmem:[#allocation77_spill] sm:$0xff] %v6219_v1 }
 0x1fc   :  { %v6213_v41 = vrot.slane %v610_v31, %v7195_v0  ;;  %v7199_v0 = vsub.s32 2, %v7192_v59 }
 0x1fd   :  { %3915 = vmatpush1.bf16.msra.mxu0 %v7188_v35  ;;  %3979 = vmatpush1.bf16.msra.mxu1 %v7189_v7  ;;  %7194 = vst [vmem:[#allocation72_spill] sm:$0xff] %v6209_v11 }
 0x1fe   :  { %3981 = vmatprep.subr.bf16.mxu0 %v7190_v38  ;;  %4013 = vmatprep.subr.bf16.mxu1 %v7191_v5  ;;  %7196 = vst [vmem:[#allocation76_spill] sm:$0xff] %v6213_v41  ;;  %v6224_v12 = vrot.slane %v610_v31, %v7199_v0 }
 0x200   :  { %7200 = vst [vmem:[#allocation78_spill] sm:$0xff] %v6224_v12 }
 0x273   :  { %v868_v24 = vpop.f32.mrb[16].mxu0  ;;  %v939_v35 = vpop.f32.mrb[16].mxu1 }
 0x274   :  { %v869_v7 = vadd.f32 %v868_v24, %v6209_v11  ;;  %v870_v30 = vpop.f32.mrb[17].mxu0  ;;  %v941_v38 = vpop.f32.mrb[17].mxu1  ;;  %v940_v24 = vadd.f32 %v939_v35, %v6224_v12  ;;  %v7201_v35 = vld [vmem:[#allocation73_spill] sm:$0xff] }
 0x275   :  { %v871_v5 = vadd.f32 %v870_v30, %v6213_v41  ;;  %v942_v8 = vadd.f32 %v941_v38, %v6219_v1 }
 0x276   :  { %v3434_v21 = vmul.f32 -1.442695, %v869_v7 }
 0x277   :  { %v3435_v51 = vmul.f32 -1.442695, %v871_v5  ;;  %v3436_v61 = vmul.f32 -1.442695, %v942_v8 }
 0x278   :  { %5249 = vpow2.f32 %v3434_v21 }
 0x279   :  { %5251 = vpow2.f32 %v3435_v51 }
 0x27a   :  { %5253 = vpow2.f32 %v3436_v61 }
 0x27b   :  { %5255 = vtanh.f32 %v940_v24 }
 0x282   :  { %v5250_v11 = vpop.eup %5249 }
 0x283   :  { %v5252_v45 = vpop.eup %5251  ;;  %v947_v30 = vadd.f32 1.0, %v5250_v11 }
 0x284   :  { %v953_v7 = vadd.f32 1.0, %v5252_v45  ;;  %v5254_v34 = vpop.eup %5253  ;;  %v7202_v45 = vld [vmem:[#allocation74_spill] sm:$0xff] }
 0x285   :  { %5257 = vrcp.f32 %v947_v30  ;;  %v5256_v21 = vpop.eup %5255  ;;  %v960_v1 = vadd.f32 1.0, %v5254_v34 }
 0x286   :  { %5259 = vrcp.f32 %v953_v7 }
 0x287   :  { %5261 = vrcp.f32 %v960_v1 }
 0x28f   :  { %v5258_v51 = vpop.eup %5257 }
 0x290   :  { %v5260_v5 = vpop.eup %5259  ;;  %v964_v38 = vmul.f32 %v5258_v51, %v5256_v21  ;;  %v7203_v21 = vld [vmem:[#allocation75_spill] sm:$0xff] }
 0x291   :  { %v963_v59 = vmul.f32 0.0, %v5260_v5  ;;  %v5262_v51 = vpop.eup %5261 }
 0x293   :  { %v6227_v31 = vadd.f32 %v964_v38, %v963_v59  ;;  %v1034_v8 = vpop.f32.mrb[2].mxu0  ;;  %v1105_v0 = vpop.f32.mrb[2].mxu1 }
 0x294   :  { %v5158_v12 = vadd.f32 %v1034_v8, %v7201_v35  ;;  %v1036_v11 = vpop.f32.mrb[3].mxu0  ;;  %v1107_v61 = vpop.f32.mrb[3].mxu1  ;;  %v5174_v59 = vadd.f32 %v1105_v0, %v6100_v49 }
 0x295   :  { %5263 = vtanh.f32 %v6227_v31  ;;  %v5159_v24 = vadd.f32 %v1036_v11, %v7202_v45  ;;  %v5175_v34 = vadd.f32 %v1107_v61, %v7203_v21 }
 0x296   :  { %v3437_v30 = vmul.f32 -1.442695, %v5158_v12 }
 0x297   :  { %v3438_v7 = vmul.f32 -1.442695, %v5159_v24  ;;  %v3439_v38 = vmul.f32 -1.442695, %v5175_v34 }
 0x298   :  { %5265 = vpow2.f32 %v3437_v30 }
 0x299   :  { %5267 = vpow2.f32 %v3438_v7 }
 0x29a   :  { %5269 = vpow2.f32 %v3439_v38  ;;  %v7207_v38 = vld [vmem:[#allocation23_spill] sm:$0xff] }
 0x29b   :  { %5271 = vtanh.f32 %v5174_v59  ;;  %v7208_v59 = vld [vmem:[#allocation24_spill] sm:$0xff] }
 0x29f   :  { %v5264_v5 = vpop.eup %5263 }
 0x2a0   :  { %v967_v1 = vmul.f32 %v5264_v5, %v5262_v51 }
 0x2a2   :  { %v5266_v41 = vpop.eup %5265  ;;  %1202 = vmatprep.mubr.f32.mxu0 %v967_v1  ;;  %1273 = vmatprep.mubr.f32.mxu1 %v967_v1  ;;  %v7209_v1 = vld [vmem:[#allocation25_spill] sm:$0xff] }
 0x2a3   :  { %v5268_v8 = vpop.eup %5267  ;;  %v1117_v35 = vadd.f32 1.0, %v5266_v41 }
 0x2a4   :  { %v1123_v11 = vadd.f32 1.0, %v5268_v8  ;;  %v5270_v12 = vpop.eup %5269  ;;  %v7210_v8 = vld [vmem:[#allocation26_spill] sm:$0xff] }
 0x2a5   :  { %5273 = vrcp.f32 %v1117_v35  ;;  %v5272_v24 = vpop.eup %5271  ;;  %v1130_v21 = vadd.f32 1.0, %v5270_v12  ;;  %v7205_v35 = vld [vmem:[#allocation21_spill] sm:$0xff]  ;;  %v7212_v12 = vld [vmem:[#allocation28_spill] sm:$0xff] }
 0x2a6   :  { %5275 = vrcp.f32 %v1123_v11  ;;  %v7211_v11 = vld [vmem:[#allocation27_spill] sm:$0xff] }
 0x2a7   :  { %5277 = vrcp.f32 %v1130_v21  ;;  %v7206_v21 = vld [vmem:[#allocation22_spill] sm:$0xff] }
 0x2af   :  { %v5274_v30 = vpop.eup %5273 }
 0x2b0   :  { %v5276_v61 = vpop.eup %5275  ;;  %v1134_v7 = vmul.f32 %v5274_v30, %v5272_v24  ;;  %v7213_v24 = vld [vmem:[#allocation29_spill] sm:$0xff]  ;;  %v7214_v30 = vld [vmem:[#allocation30_spill] sm:$0xff] }
 0x2b1   :  { %v1133_v34 = vmul.f32 %v5276_v61, %v6103_v37  ;;  %v5278_v51 = vpop.eup %5277  ;;  %v7204_v37 = vld [vmem:[#allocation20_spill] sm:$0xff]  ;;  %v7215_v61 = vld [vmem:[#allocation31_spill] sm:$0xff] }
 0x2b3   :  { %v6235_v0 = vadd.f32 %v1134_v7, %v1133_v34  ;;  %v7216_v7 = vld [vmem:[#allocation32_spill] sm:$0xff]  ;;  %v7217_v34 = vld [vmem:[#allocation33_spill] sm:$0xff] }
 0x2b5   :  { %5279 = vtanh.f32 %v6235_v0 }
 0x2bf   :  { %v5280_v41 = vpop.eup %5279 }
 0x2c0   :  { %v1137_v5 = vmul.f32 %v5280_v41, %v5278_v51  ;;  %v7218_v51 = vld [vmem:[#allocation34_spill] sm:$0xff]  ;;  %v7219_v41 = vld [vmem:[#allocation35_spill] sm:$0xff] }
 0x2c2   :  { %1203 = vmatmul.mubr.f32.vlgmr.msra.gmra.mrb[18].mxu0 %v1137_v5  ;;  %1274 = vmatmul.mubr.f32.vlgmr.msra.gmra.mrb[18].mxu1 %v1137_v5 }
 0x2c3   :  { %3983 = vmatpush1.bf16.msra.mxu0 %v5768_v47  ;;  %4015 = vmatpush1.bf16.msra.mxu1 %v5771_v50 }
 0x2c4   :  { %3985 = vmatprep.subr.bf16.mxu0 %v5774_v53  ;;  %4017 = vmatprep.subr.bf16.mxu1 %v5776_v56 }
 0x2c5   :  { %1368 = vmatprep.mubr.f32.mxu0 %v7141_v25  ;;  %1439 = vmatprep.mubr.f32.mxu1 %v7141_v25 }
 0x2c7   :  { %3987 = vmatpush1.bf16.msra.mxu0 %v5779_v60  ;;  %4019 = vmatpush1.bf16.msra.mxu1 %v5783_v63 }
 0x2c8   :  { %3989 = vmatprep.subr.bf16.mxu0 %v5787_v3  ;;  %4021 = vmatprep.subr.bf16.mxu1 %v5790_v6 }
 0x2cb   :  { %3991 = vmatpush1.bf16.msra.mxu0 %v5793_v10  ;;  %4023 = vmatpush1.bf16.msra.mxu1 %v5797_v13 }
 0x2cc   :  { %3993 = vmatprep.subr.bf16.mxu0 %v5801_v16  ;;  %4025 = vmatprep.subr.bf16.mxu1 %v5804_v19 }
 0x2cf   :  { %3995 = vmatpush1.bf16.msra.mxu0 %v5807_v23  ;;  %4027 = vmatpush1.bf16.msra.mxu1 %v5811_v26 }
 0x2d0   :  { %3997 = vmatprep.subr.bf16.mxu0 %v5815_v29  ;;  %4029 = vmatprep.subr.bf16.mxu1 %v5818_v32 }
 0x2d3   :  { %3999 = vmatpush1.bf16.msra.mxu0 %v5821_v36  ;;  %4031 = vmatpush1.bf16.msra.mxu1 %v5825_v40 }
 0x2d4   :  { %4001 = vmatprep.subr.bf16.mxu0 %v5829_v44  ;;  %4033 = vmatprep.subr.bf16.mxu1 %v5832_v48 }
 0x2d7   :  { %4003 = vmatpush1.bf16.msra.mxu0 %v5835_v54  ;;  %4035 = vmatpush1.bf16.msra.mxu1 %v5839_v58 }
 0x2d8   :  { %4005 = vmatprep.subr.bf16.mxu0 %v5843_v62  ;;  %4037 = vmatprep.subr.bf16.mxu1 %v5846_v4 }
 0x2db   :  { %4007 = vmatpush1.bf16.msra.mxu0 %v5849_v9  ;;  %4039 = vmatpush1.bf16.msra.mxu1 %v5853_v14 }
 0x2dc   :  { %4009 = vmatprep.subr.bf16.mxu0 %v5857_v18  ;;  %4041 = vmatprep.subr.bf16.mxu1 %v5860_v22 }
 0x2df   :  { %4011 = vmatpush1.bf16.msra.mxu0 %v5863_v28  ;;  %4043 = vmatpush1.bf16.msra.mxu1 %v5867_v33 }
 0x2e0   :  { %4045 = vmatprep.subr.bf16.mxu0 %v5871_v39  ;;  %4109 = vmatprep.subr.bf16.mxu1 %v5874_v46 }
 0x2e2   :  { %1369 = vmatmul.mubr.f32.vlgmr.msra.gmra.mrb[4].mxu0 %v1137_v5  ;;  %1440 = vmatmul.mubr.f32.vlgmr.msra.gmra.mrb[4].mxu1 %v1137_v5  ;;  %v7220_v5 = vld [vmem:[#allocation36_spill] sm:$0xff] }
 0x2e3   :  { %4047 = vmatpush1.bf16.msra.mxu0 %v5877_v52  ;;  %4111 = vmatpush1.bf16.msra.mxu1 %v5881_v55 }
 0x2e4   :  { %4049 = vmatprep.subr.bf16.mxu0 %v5883_v57  ;;  %4113 = vmatprep.subr.bf16.mxu1 %v5887_v2 }
 0x2e7   :  { %4051 = vmatpush1.bf16.msra.mxu0 %v5893_v15  ;;  %4115 = vmatpush1.bf16.msra.mxu1 %v5897_v17 }
 0x2e8   :  { %4053 = vmatprep.subr.bf16.mxu0 %v5899_v20  ;;  %4117 = vmatprep.subr.bf16.mxu1 %v5902_v27 }
 0x2eb   :  { %4055 = vmatpush1.bf16.msra.mxu0 %v5907_v42  ;;  %4119 = vmatpush1.bf16.msra.mxu1 %v5911_v43 }
 0x2ec   :  { %4057 = vmatprep.subr.bf16.mxu0 %v7204_v37  ;;  %4121 = vmatprep.subr.bf16.mxu1 %v7205_v35 }
 0x2ef   :  { %4059 = vmatpush1.bf16.msra.mxu0 %v7206_v21  ;;  %4123 = vmatpush1.bf16.msra.mxu1 %v7207_v38  ;;  %v7259_v38 = vld [vmem:[#allocation76_spill] sm:$0xff] }
 0x2f0   :  { %4061 = vmatprep.subr.bf16.mxu0 %v7208_v59  ;;  %4125 = vmatprep.subr.bf16.mxu1 %v7209_v1  ;;  %v7258_v1 = vld [vmem:[#allocation72_spill] sm:$0xff] }
 0x2f3   :  { %4063 = vmatpush1.bf16.msra.mxu0 %v7210_v8  ;;  %4127 = vmatpush1.bf16.msra.mxu1 %v7211_v11  ;;  %v7221_v8 = vld [vmem:[#allocation37_spill] sm:$0xff]  ;;  %v7222_v11 = vld [vmem:[#allocation38_spill] sm:$0xff] }
 0x2f4   :  { %4065 = vmatprep.subr.bf16.mxu0 %v7212_v12  ;;  %4129 = vmatprep.subr.bf16.mxu1 %v7213_v24  ;;  %v7223_v12 = vld [vmem:[#allocation39_spill] sm:$0xff]  ;;  %v7224_v24 = vld [vmem:[#allocation40_spill] sm:$0xff] }
 0x2f7   :  { %4067 = vmatpush1.bf16.msra.mxu0 %v7214_v30  ;;  %4131 = vmatpush1.bf16.msra.mxu1 %v7215_v61  ;;  %v7225_v30 = vld [vmem:[#allocation41_spill] sm:$0xff]  ;;  %v7226_v61 = vld [vmem:[#allocation42_spill] sm:$0xff] }
 0x2f8   :  { %4069 = vmatprep.subr.bf16.mxu0 %v7216_v7  ;;  %4133 = vmatprep.subr.bf16.mxu1 %v7217_v34  ;;  %v7227_v7 = vld [vmem:[#allocation43_spill] sm:$0xff]  ;;  %v7228_v34 = vld [vmem:[#allocation44_spill] sm:$0xff] }
 0x2fb   :  { %4071 = vmatpush1.bf16.msra.mxu0 %v7218_v51  ;;  %4135 = vmatpush1.bf16.msra.mxu1 %v7219_v41  ;;  %v7229_v51 = vld [vmem:[#allocation45_spill] sm:$0xff]  ;;  %v7230_v41 = vld [vmem:[#allocation46_spill] sm:$0xff] }
 0x2fc   :  { %4073 = vmatprep.subr.bf16.mxu0 %v7220_v5  ;;  %4137 = vmatprep.subr.bf16.mxu1 %v7221_v8  ;;  %v7231_v5 = vld [vmem:[#allocation47_spill] sm:$0xff]  ;;  %v7232_v8 = vld [vmem:[#allocation48_spill] sm:$0xff] }
 0x2ff   :  { %4075 = vmatpush1.bf16.msra.mxu0 %v7222_v11  ;;  %4139 = vmatpush1.bf16.msra.mxu1 %v7223_v12  ;;  %v7233_v11 = vld [vmem:[#allocation49_spill] sm:$0xff]  ;;  %v7234_v12 = vld [vmem:[#allocation50_spill] sm:$0xff] }
 0x300   :  { %4077 = vmatprep.subr.bf16.mxu0 %v7224_v24  ;;  %4141 = vmatprep.subr.bf16.mxu1 %v7225_v30  ;;  %v7235_v24 = vld [vmem:[#allocation51_spill] sm:$0xff]  ;;  %v7236_v30 = vld [vmem:[#allocation52_spill] sm:$0xff] }
 0x303   :  { %4079 = vmatpush1.bf16.msra.mxu0 %v7226_v61  ;;  %4143 = vmatpush1.bf16.msra.mxu1 %v7227_v7  ;;  %v7237_v61 = vld [vmem:[#allocation53_spill] sm:$0xff]  ;;  %v7238_v7 = vld [vmem:[#allocation54_spill] sm:$0xff] }
 0x304   :  { %4081 = vmatprep.subr.bf16.mxu0 %v7228_v34  ;;  %4145 = vmatprep.subr.bf16.mxu1 %v7229_v51  ;;  %v7239_v34 = vld [vmem:[#allocation55_spill] sm:$0xff]  ;;  %v7240_v51 = vld [vmem:[#allocation56_spill] sm:$0xff] }
 0x307   :  { %4083 = vmatpush1.bf16.msra.mxu0 %v7230_v41  ;;  %4147 = vmatpush1.bf16.msra.mxu1 %v7231_v5  ;;  %v7241_v41 = vld [vmem:[#allocation57_spill] sm:$0xff]  ;;  %v7242_v5 = vld [vmem:[#allocation58_spill] sm:$0xff] }
 0x308   :  { %4085 = vmatprep.subr.bf16.mxu0 %v7232_v8  ;;  %4149 = vmatprep.subr.bf16.mxu1 %v7233_v11  ;;  %v7243_v8 = vld [vmem:[#allocation59_spill] sm:$0xff]  ;;  %v7244_v11 = vld [vmem:[#allocation60_spill] sm:$0xff] }
 0x30b   :  { %4087 = vmatpush1.bf16.msra.mxu0 %v7234_v12  ;;  %4151 = vmatpush1.bf16.msra.mxu1 %v7235_v24  ;;  %v7245_v12 = vld [vmem:[#allocation61_spill] sm:$0xff]  ;;  %v7246_v24 = vld [vmem:[#allocation62_spill] sm:$0xff] }
 0x30c   :  { %4089 = vmatprep.subr.bf16.mxu0 %v7236_v30  ;;  %4153 = vmatprep.subr.bf16.mxu1 %v7237_v61  ;;  %v7247_v30 = vld [vmem:[#allocation63_spill] sm:$0xff]  ;;  %v7248_v61 = vld [vmem:[#allocation64_spill] sm:$0xff] }
 0x30f   :  { %4091 = vmatpush1.bf16.msra.mxu0 %v7238_v7  ;;  %4155 = vmatpush1.bf16.msra.mxu1 %v7239_v34  ;;  %v7249_v7 = vld [vmem:[#allocation65_spill] sm:$0xff]  ;;  %v7250_v34 = vld [vmem:[#allocation66_spill] sm:$0xff] }
 0x310   :  { %4093 = vmatprep.subr.bf16.mxu0 %v7240_v51  ;;  %4157 = vmatprep.subr.bf16.mxu1 %v7241_v41  ;;  %v7251_v51 = vld [vmem:[#allocation67_spill] sm:$0xff]  ;;  %v7252_v41 = vld [vmem:[#allocation68_spill] sm:$0xff] }
 0x313   :  { %4095 = vmatpush1.bf16.msra.mxu0 %v7242_v5  ;;  %4159 = vmatpush1.bf16.msra.mxu1 %v7243_v8  ;;  %v7253_v5 = vld [vmem:[#allocation69_spill] sm:$0xff]  ;;  %v7254_v8 = vld [vmem:[#allocation70_spill] sm:$0xff] }
 0x314   :  { %4097 = vmatprep.subr.bf16.mxu0 %v7244_v11  ;;  %4161 = vmatprep.subr.bf16.mxu1 %v7245_v12  ;;  %v7255_v11 = vld [vmem:[#allocation71_spill] sm:$0xff]  ;;  %v7256_v12 = vld [vmem:[#allocation16_spill] sm:$0xff] }
 0x317   :  { %4099 = vmatpush1.bf16.msra.mxu0 %v7246_v24  ;;  %4163 = vmatpush1.bf16.msra.mxu1 %v7247_v30  ;;  %v7257_v24 = vld [vmem:[#allocation17_spill] sm:$0xff] }
 0x318   :  { %4101 = vmatprep.subr.bf16.mxu0 %v7248_v61  ;;  %4165 = vmatprep.subr.bf16.mxu1 %v7249_v7 }
 0x31b   :  { %4103 = vmatpush1.bf16.msra.mxu0 %v7250_v34  ;;  %4167 = vmatpush1.bf16.msra.mxu1 %v7251_v51 }
 0x31c   :  { %4105 = vmatprep.subr.bf16.mxu0 %v7252_v41  ;;  %4169 = vmatprep.subr.bf16.mxu1 %v7253_v5  ;;  %v7260_v5 = vld [vmem:[#allocation77_spill] sm:$0xff] }
 0x31f   :  { %4107 = vmatpush1.bf16.msra.mxu0 %v7254_v8  ;;  %4171 = vmatpush1.bf16.msra.mxu1 %v7255_v11  ;;  %v7261_v11 = vld [vmem:[#allocation78_spill] sm:$0xff] }
 0x320   :  { %4173 = vmatprep.subr.bf16.mxu0 %v7256_v12  ;;  %4205 = vmatprep.subr.bf16.mxu1 %v7257_v24 }
 0x395   :  { %v1204_v30 = vpop.f32.mrb[18].mxu0  ;;  %v1275_v61 = vpop.f32.mrb[18].mxu1 }
 0x396   :  { %v1205_v7 = vadd.f32 %v1204_v30, %v7258_v1  ;;  %v1206_v59 = vpop.f32.mrb[19].mxu0  ;;  %v1277_v34 = vpop.f32.mrb[19].mxu1  ;;  %v1276_v37 = vadd.f32 %v1275_v61, %v7261_v11  ;;  %v7262_v61 = vld [vmem:[#allocation73_spill] sm:$0xff] }
 0x397   :  { %v1207_v51 = vadd.f32 %v1206_v59, %v7259_v38  ;;  %v1278_v8 = vadd.f32 %v1277_v34, %v7260_v5 }
 0x398   :  { %v3440_v21 = vmul.f32 -1.442695, %v1205_v7 }
 0x399   :  { %v3441_v41 = vmul.f32 -1.442695, %v1207_v51  ;;  %v3442_v35 = vmul.f32 -1.442695, %v1278_v8 }
 0x39a   :  { %5281 = vpow2.f32 %v3440_v21 }
 0x39b   :  { %5283 = vpow2.f32 %v3441_v41 }
 0x39c   :  { %5285 = vpow2.f32 %v3442_v35 }
 0x39d   :  { %5287 = vtanh.f32 %v1276_v37 }
 0x3a4   :  { %v5282_v12 = vpop.eup %5281 }
 0x3a5   :  { %v5284_v43 = vpop.eup %5283  ;;  %v1283_v24 = vadd.f32 1.0, %v5282_v12 }
 0x3a6   :  { %v1289_v42 = vadd.f32 1.0, %v5284_v43  ;;  %v5286_v30 = vpop.eup %5285 }
 0x3a7   :  { %5289 = vrcp.f32 %v1283_v24  ;;  %v5288_v1 = vpop.eup %5287  ;;  %v1296_v21 = vadd.f32 1.0, %v5286_v30 }
 0x3a8   :  { %5291 = vrcp.f32 %v1289_v42 }
 0x3a9   :  { %5293 = vrcp.f32 %v1296_v21 }
 0x3b1   :  { %v5290_v59 = vpop.eup %5289 }
 0x3b2   :  { %v5292_v7 = vpop.eup %5291  ;;  %v1300_v51 = vmul.f32 %v5290_v59, %v5288_v1  ;;  %v7263_v1 = vld [vmem:[#allocation75_spill] sm:$0xff] }
 0x3b3   :  { %v1299_v41 = vmul.f32 %v5292_v7, %v6227_v31  ;;  %v5294_v31 = vpop.eup %5293 }
 0x3b5   :  { %v1370_v34 = vpop.f32.mrb[4].mxu0  ;;  %v1441_v8 = vpop.f32.mrb[4].mxu1  ;;  %v6341_v5 = vadd.f32 %v1300_v51, %v1299_v41 }
 0x3b6   :  { %v5160_v12 = vadd.f32 %v1370_v34, %v7262_v61  ;;  %v1372_v35 = vpop.f32.mrb[5].mxu0  ;;  %v1443_v37 = vpop.f32.mrb[5].mxu1  ;;  %v5176_v51 = vadd.f32 %v1441_v8, %v6100_v49 }
 0x3b7   :  { %v5161_v43 = vadd.f32 %v1372_v35, %v7202_v45  ;;  %5295 = vtanh.f32 %v6341_v5  ;;  %v5177_v30 = vadd.f32 %v1443_v37, %v7263_v1 }
 0x3b8   :  { %v3443_v42 = vmul.f32 -1.442695, %v5160_v12 }
 0x3b9   :  { %v3444_v24 = vmul.f32 -1.442695, %v5161_v43  ;;  %v3445_v7 = vmul.f32 -1.442695, %v5177_v30 }
 0x3ba   :  { %5297 = vpow2.f32 %v3443_v42 }
 0x3bb   :  { %5299 = vpow2.f32 %v3444_v24 }
 0x3bc   :  { %5301 = vpow2.f32 %v3445_v7 }
 0x3bd   :  { %5303 = vtanh.f32 %v5176_v51  ;;  %v7267_v51 = vld [vmem:[#allocation21_spill] sm:$0xff] }
 0x3c1   :  { %v5296_v59 = vpop.eup %5295 }
 0x3c2   :  { %v1303_v21 = vmul.f32 %v5296_v59, %v5294_v31 }
 0x3c4   :  { %v5298_v41 = vpop.eup %5297  ;;  %1538 = vmatprep.mubr.f32.mxu0 %v1303_v21  ;;  %1609 = vmatprep.mubr.f32.mxu1 %v1303_v21  ;;  %v7268_v21 = vld [vmem:[#allocation22_spill] sm:$0xff] }
 0x3c5   :  { %v5300_v34 = vpop.eup %5299  ;;  %v1453_v61 = vadd.f32 1.0, %v5298_v41  ;;  %v7269_v41 = vld [vmem:[#allocation23_spill] sm:$0xff] }
 0x3c6   :  { %v1459_v35 = vadd.f32 1.0, %v5300_v34  ;;  %v5302_v12 = vpop.eup %5301  ;;  %v7270_v34 = vld [vmem:[#allocation24_spill] sm:$0xff] }
 0x3c7   :  { %5305 = vrcp.f32 %v1453_v61  ;;  %v5304_v43 = vpop.eup %5303  ;;  %v1466_v1 = vadd.f32 1.0, %v5302_v12  ;;  %v7265_v61 = vld [vmem:[#allocation19_spill] sm:$0xff]  ;;  %v7272_v12 = vld [vmem:[#allocation26_spill] sm:$0xff] }
 0x3c8   :  { %5307 = vrcp.f32 %v1459_v35  ;;  %v7271_v35 = vld [vmem:[#allocation25_spill] sm:$0xff] }
 0x3c9   :  { %5309 = vrcp.f32 %v1466_v1  ;;  %v7266_v1 = vld [vmem:[#allocation20_spill] sm:$0xff] }
 0x3d1   :  { %v5306_v42 = vpop.eup %5305 }
 0x3d2   :  { %v5308_v37 = vpop.eup %5307  ;;  %v1470_v24 = vmul.f32 %v5306_v42, %v5304_v43  ;;  %v7273_v43 = vld [vmem:[#allocation27_spill] sm:$0xff]  ;;  %v7274_v42 = vld [vmem:[#allocation28_spill] sm:$0xff] }
 0x3d3   :  { %v1469_v30 = vmul.f32 %v5308_v37, %v6235_v0  ;;  %v5310_v31 = vpop.eup %5309  ;;  %v7264_v0 = vld [vmem:[#allocation18_spill] sm:$0xff]  ;;  %v7275_v37 = vld [vmem:[#allocation29_spill] sm:$0xff] }
 0x3d5   :  { %v6349_v8 = vadd.f32 %v1470_v24, %v1469_v30  ;;  %v7276_v24 = vld [vmem:[#allocation30_spill] sm:$0xff]  ;;  %v7277_v30 = vld [vmem:[#allocation31_spill] sm:$0xff] }
 0x3d7   :  { %5311 = vtanh.f32 %v6349_v8 }
 0x3e1   :  { %v5312_v59 = vpop.eup %5311 }
 0x3e2   :  { %v1473_v7 = vmul.f32 %v5312_v59, %v5310_v31  ;;  %v7278_v31 = vld [vmem:[#allocation32_spill] sm:$0xff]  ;;  %v7279_v59 = vld [vmem:[#allocation33_spill] sm:$0xff] }
 0x3e4   :  { %1539 = vmatmul.mubr.f32.vlgmr.msra.gmra.mrb[20].mxu0 %v1473_v7  ;;  %1610 = vmatmul.mubr.f32.vlgmr.msra.gmra.mrb[20].mxu1 %v1473_v7 }
 0x3e5   :  { %4175 = vmatpush1.bf16.msra.mxu0 %v5768_v47  ;;  %4207 = vmatpush1.bf16.msra.mxu1 %v5771_v50 }
 0x3e6   :  { %4177 = vmatprep.subr.bf16.mxu0 %v5774_v53  ;;  %4209 = vmatprep.subr.bf16.mxu1 %v5776_v56 }
 0x3e7   :  { %1704 = vmatprep.mubr.f32.mxu0 %v7141_v25  ;;  %1775 = vmatprep.mubr.f32.mxu1 %v7141_v25 }
 0x3e9   :  { %4179 = vmatpush1.bf16.msra.mxu0 %v5779_v60  ;;  %4211 = vmatpush1.bf16.msra.mxu1 %v5783_v63 }
 0x3ea   :  { %4181 = vmatprep.subr.bf16.mxu0 %v5787_v3  ;;  %4213 = vmatprep.subr.bf16.mxu1 %v5790_v6 }
 0x3ed   :  { %4183 = vmatpush1.bf16.msra.mxu0 %v5793_v10  ;;  %4215 = vmatpush1.bf16.msra.mxu1 %v5797_v13 }
 0x3ee   :  { %4185 = vmatprep.subr.bf16.mxu0 %v5801_v16  ;;  %4217 = vmatprep.subr.bf16.mxu1 %v5804_v19 }
 0x3f1   :  { %4187 = vmatpush1.bf16.msra.mxu0 %v5807_v23  ;;  %4219 = vmatpush1.bf16.msra.mxu1 %v5811_v26 }
 0x3f2   :  { %4189 = vmatprep.subr.bf16.mxu0 %v5815_v29  ;;  %4221 = vmatprep.subr.bf16.mxu1 %v5818_v32 }
 0x3f5   :  { %4191 = vmatpush1.bf16.msra.mxu0 %v5821_v36  ;;  %4223 = vmatpush1.bf16.msra.mxu1 %v5825_v40 }
 0x3f6   :  { %4193 = vmatprep.subr.bf16.mxu0 %v5829_v44  ;;  %4225 = vmatprep.subr.bf16.mxu1 %v5832_v48 }
 0x3f9   :  { %4195 = vmatpush1.bf16.msra.mxu0 %v5835_v54  ;;  %4227 = vmatpush1.bf16.msra.mxu1 %v5839_v58 }
 0x3fa   :  { %4197 = vmatprep.subr.bf16.mxu0 %v5843_v62  ;;  %4229 = vmatprep.subr.bf16.mxu1 %v5846_v4 }
 0x3fd   :  { %4199 = vmatpush1.bf16.msra.mxu0 %v5849_v9  ;;  %4231 = vmatpush1.bf16.msra.mxu1 %v5853_v14 }
 0x3fe   :  { %4201 = vmatprep.subr.bf16.mxu0 %v5857_v18  ;;  %4233 = vmatprep.subr.bf16.mxu1 %v5860_v22 }
 0x401   :  { %4203 = vmatpush1.bf16.msra.mxu0 %v5863_v28  ;;  %4235 = vmatpush1.bf16.msra.mxu1 %v5867_v33 }
 0x402   :  { %4237 = vmatprep.subr.bf16.mxu0 %v5871_v39  ;;  %4301 = vmatprep.subr.bf16.mxu1 %v5874_v46 }
 0x404   :  { %1705 = vmatmul.mubr.f32.vlgmr.msra.gmra.mrb[6].mxu0 %v1473_v7  ;;  %1776 = vmatmul.mubr.f32.vlgmr.msra.gmra.mrb[6].mxu1 %v1473_v7  ;;  %v7280_v7 = vld [vmem:[#allocation34_spill] sm:$0xff] }
 0x405   :  { %4239 = vmatpush1.bf16.msra.mxu0 %v5877_v52  ;;  %4303 = vmatpush1.bf16.msra.mxu1 %v5881_v55 }
 0x406   :  { %4241 = vmatprep.subr.bf16.mxu0 %v5883_v57  ;;  %4305 = vmatprep.subr.bf16.mxu1 %v5887_v2 }
 0x409   :  { %4243 = vmatpush1.bf16.msra.mxu0 %v5893_v15  ;;  %4307 = vmatpush1.bf16.msra.mxu1 %v5897_v17 }
 0x40a   :  { %4245 = vmatprep.subr.bf16.mxu0 %v5899_v20  ;;  %4309 = vmatprep.subr.bf16.mxu1 %v5902_v27 }
 0x40d   :  { %4247 = vmatpush1.bf16.msra.mxu0 %v7264_v0  ;;  %4311 = vmatpush1.bf16.msra.mxu1 %v7265_v61 }
 0x40e   :  { %4249 = vmatprep.subr.bf16.mxu0 %v7266_v1  ;;  %4313 = vmatprep.subr.bf16.mxu1 %v7267_v51 }
 0x411   :  { %4251 = vmatpush1.bf16.msra.mxu0 %v7268_v21  ;;  %4315 = vmatpush1.bf16.msra.mxu1 %v7269_v41  ;;  %v7320_v41 = vld [vmem:[#allocation72_spill] sm:$0xff] }
 0x412   :  { %4253 = vmatprep.subr.bf16.mxu0 %v7270_v34  ;;  %4317 = vmatprep.subr.bf16.mxu1 %v7271_v35  ;;  %v7281_v34 = vld [vmem:[#allocation35_spill] sm:$0xff]  ;;  %v7282_v35 = vld [vmem:[#allocation36_spill] sm:$0xff] }
 0x415   :  { %4255 = vmatpush1.bf16.msra.mxu0 %v7272_v12  ;;  %4319 = vmatpush1.bf16.msra.mxu1 %v7273_v43  ;;  %v7283_v12 = vld [vmem:[#allocation37_spill] sm:$0xff]  ;;  %v7284_v43 = vld [vmem:[#allocation38_spill] sm:$0xff] }
 0x416   :  { %4257 = vmatprep.subr.bf16.mxu0 %v7274_v42  ;;  %4321 = vmatprep.subr.bf16.mxu1 %v7275_v37  ;;  %v7285_v42 = vld [vmem:[#allocation39_spill] sm:$0xff]  ;;  %v7286_v37 = vld [vmem:[#allocation40_spill] sm:$0xff] }
 0x419   :  { %4259 = vmatpush1.bf16.msra.mxu0 %v7276_v24  ;;  %4323 = vmatpush1.bf16.msra.mxu1 %v7277_v30  ;;  %v7287_v24 = vld [vmem:[#allocation41_spill] sm:$0xff]  ;;  %v7288_v30 = vld [vmem:[#allocation42_spill] sm:$0xff] }
 0x41a   :  { %4261 = vmatprep.subr.bf16.mxu0 %v7278_v31  ;;  %4325 = vmatprep.subr.bf16.mxu1 %v7279_v59  ;;  %v7289_v31 = vld [vmem:[#allocation43_spill] sm:$0xff]  ;;  %v7290_v59 = vld [vmem:[#allocation44_spill] sm:$0xff] }
 0x41d   :  { %4263 = vmatpush1.bf16.msra.mxu0 %v7280_v7  ;;  %4327 = vmatpush1.bf16.msra.mxu1 %v7281_v34  ;;  %v7291_v7 = vld [vmem:[#allocation45_spill] sm:$0xff]  ;;  %v7292_v34 = vld [vmem:[#allocation46_spill] sm:$0xff] }
 0x41e   :  { %4265 = vmatprep.subr.bf16.mxu0 %v7282_v35  ;;  %4329 = vmatprep.subr.bf16.mxu1 %v7283_v12  ;;  %v7293_v35 = vld [vmem:[#allocation47_spill] sm:$0xff]  ;;  %v7294_v12 = vld [vmem:[#allocation48_spill] sm:$0xff] }
 0x421   :  { %4267 = vmatpush1.bf16.msra.mxu0 %v7284_v43  ;;  %4331 = vmatpush1.bf16.msra.mxu1 %v7285_v42  ;;  %v7295_v43 = vld [vmem:[#allocation49_spill] sm:$0xff]  ;;  %v7296_v42 = vld [vmem:[#allocation50_spill] sm:$0xff] }
 0x422   :  { %4269 = vmatprep.subr.bf16.mxu0 %v7286_v37  ;;  %4333 = vmatprep.subr.bf16.mxu1 %v7287_v24  ;;  %v7297_v37 = vld [vmem:[#allocation51_spill] sm:$0xff]  ;;  %v7298_v24 = vld [vmem:[#allocation52_spill] sm:$0xff] }
 0x425   :  { %4271 = vmatpush1.bf16.msra.mxu0 %v7288_v30  ;;  %4335 = vmatpush1.bf16.msra.mxu1 %v7289_v31  ;;  %v7299_v30 = vld [vmem:[#allocation53_spill] sm:$0xff]  ;;  %v7300_v31 = vld [vmem:[#allocation54_spill] sm:$0xff] }
 0x426   :  { %4273 = vmatprep.subr.bf16.mxu0 %v7290_v59  ;;  %4337 = vmatprep.subr.bf16.mxu1 %v7291_v7  ;;  %v7301_v59 = vld [vmem:[#allocation55_spill] sm:$0xff]  ;;  %v7302_v7 = vld [vmem:[#allocation56_spill] sm:$0xff] }
 0x429   :  { %4275 = vmatpush1.bf16.msra.mxu0 %v7292_v34  ;;  %4339 = vmatpush1.bf16.msra.mxu1 %v7293_v35  ;;  %v7303_v34 = vld [vmem:[#allocation57_spill] sm:$0xff]  ;;  %v7304_v35 = vld [vmem:[#allocation58_spill] sm:$0xff] }
 0x42a   :  { %4277 = vmatprep.subr.bf16.mxu0 %v7294_v12  ;;  %4341 = vmatprep.subr.bf16.mxu1 %v7295_v43  ;;  %v7305_v12 = vld [vmem:[#allocation59_spill] sm:$0xff]  ;;  %v7306_v43 = vld [vmem:[#allocation60_spill] sm:$0xff] }
 0x42d   :  { %4279 = vmatpush1.bf16.msra.mxu0 %v7296_v42  ;;  %4343 = vmatpush1.bf16.msra.mxu1 %v7297_v37  ;;  %v7307_v42 = vld [vmem:[#allocation61_spill] sm:$0xff]  ;;  %v7308_v37 = vld [vmem:[#allocation62_spill] sm:$0xff] }
 0x42e   :  { %4281 = vmatprep.subr.bf16.mxu0 %v7298_v24  ;;  %4345 = vmatprep.subr.bf16.mxu1 %v7299_v30  ;;  %v7309_v24 = vld [vmem:[#allocation63_spill] sm:$0xff]  ;;  %v7310_v30 = vld [vmem:[#allocation64_spill] sm:$0xff] }
 0x431   :  { %4283 = vmatpush1.bf16.msra.mxu0 %v7300_v31  ;;  %4347 = vmatpush1.bf16.msra.mxu1 %v7301_v59  ;;  %v7311_v31 = vld [vmem:[#allocation65_spill] sm:$0xff]  ;;  %v7312_v59 = vld [vmem:[#allocation66_spill] sm:$0xff] }
 0x432   :  { %4285 = vmatprep.subr.bf16.mxu0 %v7302_v7  ;;  %4349 = vmatprep.subr.bf16.mxu1 %v7303_v34  ;;  %v7313_v7 = vld [vmem:[#allocation67_spill] sm:$0xff]  ;;  %v7314_v34 = vld [vmem:[#allocation68_spill] sm:$0xff] }
 0x435   :  { %4287 = vmatpush1.bf16.msra.mxu0 %v7304_v35  ;;  %4351 = vmatpush1.bf16.msra.mxu1 %v7305_v12  ;;  %v7315_v35 = vld [vmem:[#allocation69_spill] sm:$0xff]  ;;  %v7316_v12 = vld [vmem:[#allocation70_spill] sm:$0xff] }
 0x436   :  { %4289 = vmatprep.subr.bf16.mxu0 %v7306_v43  ;;  %4353 = vmatprep.subr.bf16.mxu1 %v7307_v42  ;;  %v7317_v43 = vld [vmem:[#allocation71_spill] sm:$0xff]  ;;  %v7318_v42 = vld [vmem:[#allocation16_spill] sm:$0xff] }
 0x439   :  { %4291 = vmatpush1.bf16.msra.mxu0 %v7308_v37  ;;  %4355 = vmatpush1.bf16.msra.mxu1 %v7309_v24  ;;  %v7319_v37 = vld [vmem:[#allocation17_spill] sm:$0xff] }
 0x43a   :  { %4293 = vmatprep.subr.bf16.mxu0 %v7310_v30  ;;  %4357 = vmatprep.subr.bf16.mxu1 %v7311_v31 }
 0x43d   :  { %4295 = vmatpush1.bf16.msra.mxu0 %v7312_v59  ;;  %4359 = vmatpush1.bf16.msra.mxu1 %v7313_v7 }
 0x43e   :  { %4297 = vmatprep.subr.bf16.mxu0 %v7314_v34  ;;  %4361 = vmatprep.subr.bf16.mxu1 %v7315_v35  ;;  %v7321_v35 = vld [vmem:[#allocation77_spill] sm:$0xff] }
 0x441   :  { %4299 = vmatpush1.bf16.msra.mxu0 %v7316_v12  ;;  %4363 = vmatpush1.bf16.msra.mxu1 %v7317_v43 }
 0x442   :  { %4365 = vmatprep.subr.bf16.mxu0 %v7318_v42  ;;  %4397 = vmatprep.subr.bf16.mxu1 %v7319_v37 }
 0x4b7   :  { %v1540_v24 = vpop.f32.mrb[20].mxu0  ;;  %v1611_v30 = vpop.f32.mrb[20].mxu1 }
 0x4b8   :  { %v1541_v31 = vadd.f32 %v1540_v24, %v7320_v41  ;;  %v1542_v21 = vpop.f32.mrb[21].mxu0  ;;  %v1613_v59 = vpop.f32.mrb[21].mxu1  ;;  %v1612_v43 = vadd.f32 %v1611_v30, %v7261_v11  ;;  %v7322_v30 = vld [vmem:[#allocation73_spill] sm:$0xff] }
 0x4b9   :  { %v1543_v7 = vadd.f32 %v1542_v21, %v7259_v38  ;;  %v1614_v12 = vadd.f32 %v1613_v59, %v7321_v35 }
 0x4ba   :  { %v3446_v51 = vmul.f32 -1.442695, %v1541_v31 }
 0x4bb   :  { %v3447_v34 = vmul.f32 -1.442695, %v1543_v7  ;;  %v3448_v1 = vmul.f32 -1.442695, %v1614_v12 }
 0x4bc   :  { %5313 = vpow2.f32 %v3446_v51 }
 0x4bd   :  { %5315 = vpow2.f32 %v3447_v34 }
 0x4be   :  { %5317 = vpow2.f32 %v3448_v1 }
 0x4bf   :  { %5319 = vtanh.f32 %v1612_v43 }
 0x4c6   :  { %v5314_v42 = vpop.eup %5313 }
 0x4c7   :  { %v5316_v61 = vpop.eup %5315  ;;  %v1619_v37 = vadd.f32 1.0, %v5314_v42 }
 0x4c8   :  { %v1625_v0 = vadd.f32 1.0, %v5316_v61  ;;  %v5318_v24 = vpop.eup %5317 }
 0x4c9   :  { %5321 = vrcp.f32 %v1619_v37  ;;  %v5320_v41 = vpop.eup %5319  ;;  %v1632_v51 = vadd.f32 1.0, %v5318_v24 }
 0x4ca   :  { %5323 = vrcp.f32 %v1625_v0 }
 0x4cb   :  { %5325 = vrcp.f32 %v1632_v51 }
 0x4d3   :  { %v5322_v21 = vpop.eup %5321 }
 0x4d4   :  { %v5324_v31 = vpop.eup %5323  ;;  %v1636_v7 = vmul.f32 %v5322_v21, %v5320_v41  ;;  %v7323_v41 = vld [vmem:[#allocation75_spill] sm:$0xff] }
 0x4d5   :  { %v1635_v34 = vmul.f32 %v5324_v31, %v6341_v5  ;;  %v5326_v5 = vpop.eup %5325 }
 0x4d7   :  { %v1706_v59 = vpop.f32.mrb[6].mxu0  ;;  %v1777_v12 = vpop.f32.mrb[6].mxu1  ;;  %v6455_v35 = vadd.f32 %v1636_v7, %v1635_v34 }
 0x4d8   :  { %v5162_v42 = vadd.f32 %v1706_v59, %v7322_v30  ;;  %v1708_v1 = vpop.f32.mrb[7].mxu0  ;;  %v1779_v43 = vpop.f32.mrb[7].mxu1  ;;  %v5178_v7 = vadd.f32 %v1777_v12, %v6100_v49 }
 0x4d9   :  { %v5163_v61 = vadd.f32 %v1708_v1, %v7202_v45  ;;  %5327 = vtanh.f32 %v6455_v35  ;;  %v5179_v24 = vadd.f32 %v1779_v43, %v7323_v41 }
 0x4da   :  { %v3449_v0 = vmul.f32 -1.442695, %v5162_v42 }
 0x4db   :  { %v3450_v37 = vmul.f32 -1.442695, %v5163_v61  ;;  %v3451_v31 = vmul.f32 -1.442695, %v5179_v24 }
 0x4dc   :  { %5329 = vpow2.f32 %v3449_v0 }
 0x4dd   :  { %5331 = vpow2.f32 %v3450_v37 }
 0x4de   :  { %5333 = vpow2.f32 %v3451_v31 }
 0x4df   :  { %5335 = vtanh.f32 %v5178_v7  ;;  %v7327_v7 = vld [vmem:[#allocation21_spill] sm:$0xff] }
 0x4e3   :  { %v5328_v21 = vpop.eup %5327 }
 0x4e4   :  { %v1639_v51 = vmul.f32 %v5328_v21, %v5326_v5 }
 0x4e6   :  { %v5330_v34 = vpop.eup %5329  ;;  %1874 = vmatprep.mubr.f32.mxu0 %v1639_v51  ;;  %1945 = vmatprep.mubr.f32.mxu1 %v1639_v51  ;;  %v7328_v51 = vld [vmem:[#allocation22_spill] sm:$0xff] }
 0x4e7   :  { %v5332_v59 = vpop.eup %5331  ;;  %v1789_v30 = vadd.f32 1.0, %v5330_v34  ;;  %v7329_v34 = vld [vmem:[#allocation23_spill] sm:$0xff] }
 0x4e8   :  { %v1795_v1 = vadd.f32 1.0, %v5332_v59  ;;  %v5334_v42 = vpop.eup %5333  ;;  %v7330_v59 = vld [vmem:[#allocation24_spill] sm:$0xff] }
 0x4e9   :  { %5337 = vrcp.f32 %v1789_v30  ;;  %v5336_v61 = vpop.eup %5335  ;;  %v1802_v41 = vadd.f32 1.0, %v5334_v42  ;;  %v7325_v30 = vld [vmem:[#allocation19_spill] sm:$0xff]  ;;  %v7332_v42 = vld [vmem:[#allocation26_spill] sm:$0xff] }
 0x4ea   :  { %5339 = vrcp.f32 %v1795_v1  ;;  %v7331_v1 = vld [vmem:[#allocation25_spill] sm:$0xff] }
 0x4eb   :  { %5341 = vrcp.f32 %v1802_v41  ;;  %v7326_v41 = vld [vmem:[#allocation20_spill] sm:$0xff] }
 0x4f3   :  { %v5338_v0 = vpop.eup %5337 }
 0x4f4   :  { %v5340_v43 = vpop.eup %5339  ;;  %v1806_v37 = vmul.f32 %v5338_v0, %v5336_v61  ;;  %v7333_v61 = vld [vmem:[#allocation27_spill] sm:$0xff]  ;;  %v7334_v0 = vld [vmem:[#allocation28_spill] sm:$0xff] }
 0x4f5   :  { %v1805_v24 = vmul.f32 %v5340_v43, %v6349_v8  ;;  %v5342_v5 = vpop.eup %5341  ;;  %v7324_v8 = vld [vmem:[#allocation18_spill] sm:$0xff]  ;;  %v7335_v43 = vld [vmem:[#allocation29_spill] sm:$0xff] }
 0x4f7   :  { %v6463_v12 = vadd.f32 %v1806_v37, %v1805_v24  ;;  %v7336_v37 = vld [vmem:[#allocation30_spill] sm:$0xff]  ;;  %v7337_v24 = vld [vmem:[#allocation31_spill] sm:$0xff] }
 0x4f9   :  { %5343 = vtanh.f32 %v6463_v12 }
 0x503   :  { %v5344_v21 = vpop.eup %5343 }
 0x504   :  { %v1809_v31 = vmul.f32 %v5344_v21, %v5342_v5  ;;  %v7338_v5 = vld [vmem:[#allocation32_spill] sm:$0xff]  ;;  %v7339_v21 = vld [vmem:[#allocation33_spill] sm:$0xff] }
 0x506   :  { %1875 = vmatmul.mubr.f32.vlgmr.msra.gmra.mrb[22].mxu0 %v1809_v31  ;;  %1946 = vmatmul.mubr.f32.vlgmr.msra.gmra.mrb[22].mxu1 %v1809_v31 }
 0x507   :  { %4367 = vmatpush1.bf16.msra.mxu0 %v5768_v47  ;;  %4399 = vmatpush1.bf16.msra.mxu1 %v5771_v50 }
 0x508   :  { %4369 = vmatprep.subr.bf16.mxu0 %v5774_v53  ;;  %4401 = vmatprep.subr.bf16.mxu1 %v5776_v56 }
 0x509   :  { %2040 = vmatprep.mubr.f32.mxu0 %v7141_v25  ;;  %2111 = vmatprep.mubr.f32.mxu1 %v7141_v25 }
 0x50b   :  { %4371 = vmatpush1.bf16.msra.mxu0 %v5779_v60  ;;  %4403 = vmatpush1.bf16.msra.mxu1 %v5783_v63 }
 0x50c   :  { %4373 = vmatprep.subr.bf16.mxu0 %v5787_v3  ;;  %4405 = vmatprep.subr.bf16.mxu1 %v5790_v6 }
 0x50f   :  { %4375 = vmatpush1.bf16.msra.mxu0 %v5793_v10  ;;  %4407 = vmatpush1.bf16.msra.mxu1 %v5797_v13 }
 0x510   :  { %4377 = vmatprep.subr.bf16.mxu0 %v5801_v16  ;;  %4409 = vmatprep.subr.bf16.mxu1 %v5804_v19 }
 0x513   :  { %4379 = vmatpush1.bf16.msra.mxu0 %v5807_v23  ;;  %4411 = vmatpush1.bf16.msra.mxu1 %v5811_v26 }
 0x514   :  { %4381 = vmatprep.subr.bf16.mxu0 %v5815_v29  ;;  %4413 = vmatprep.subr.bf16.mxu1 %v5818_v32 }
 0x517   :  { %4383 = vmatpush1.bf16.msra.mxu0 %v5821_v36  ;;  %4415 = vmatpush1.bf16.msra.mxu1 %v5825_v40 }
 0x518   :  { %4385 = vmatprep.subr.bf16.mxu0 %v5829_v44  ;;  %4417 = vmatprep.subr.bf16.mxu1 %v5832_v48 }
 0x51b   :  { %4387 = vmatpush1.bf16.msra.mxu0 %v5835_v54  ;;  %4419 = vmatpush1.bf16.msra.mxu1 %v5839_v58 }
 0x51c   :  { %4389 = vmatprep.subr.bf16.mxu0 %v5843_v62  ;;  %4421 = vmatprep.subr.bf16.mxu1 %v5846_v4 }
 0x51f   :  { %4391 = vmatpush1.bf16.msra.mxu0 %v5849_v9  ;;  %4423 = vmatpush1.bf16.msra.mxu1 %v5853_v14 }
 0x520   :  { %4393 = vmatprep.subr.bf16.mxu0 %v5857_v18  ;;  %4425 = vmatprep.subr.bf16.mxu1 %v5860_v22 }
 0x523   :  { %4395 = vmatpush1.bf16.msra.mxu0 %v5863_v28  ;;  %4427 = vmatpush1.bf16.msra.mxu1 %v5867_v33 }
 0x524   :  { %4429 = vmatprep.subr.bf16.mxu0 %v5871_v39  ;;  %4493 = vmatprep.subr.bf16.mxu1 %v5874_v46 }
 0x526   :  { %2041 = vmatmul.mubr.f32.vlgmr.msra.gmra.mrb[8].mxu0 %v1809_v31  ;;  %2112 = vmatmul.mubr.f32.vlgmr.msra.gmra.mrb[8].mxu1 %v1809_v31  ;;  %v7340_v31 = vld [vmem:[#allocation34_spill] sm:$0xff] }
 0x527   :  { %4431 = vmatpush1.bf16.msra.mxu0 %v5877_v52  ;;  %4495 = vmatpush1.bf16.msra.mxu1 %v5881_v55 }
 0x528   :  { %4433 = vmatprep.subr.bf16.mxu0 %v5883_v57  ;;  %4497 = vmatprep.subr.bf16.mxu1 %v5887_v2 }
 0x52b   :  { %4435 = vmatpush1.bf16.msra.mxu0 %v5893_v15  ;;  %4499 = vmatpush1.bf16.msra.mxu1 %v5897_v17 }
 0x52c   :  { %4437 = vmatprep.subr.bf16.mxu0 %v5899_v20  ;;  %4501 = vmatprep.subr.bf16.mxu1 %v5902_v27 }
 0x52f   :  { %4439 = vmatpush1.bf16.msra.mxu0 %v7324_v8  ;;  %4503 = vmatpush1.bf16.msra.mxu1 %v7325_v30 }
 0x530   :  { %4441 = vmatprep.subr.bf16.mxu0 %v7326_v41  ;;  %4505 = vmatprep.subr.bf16.mxu1 %v7327_v7 }
 0x533   :  { %4443 = vmatpush1.bf16.msra.mxu0 %v7328_v51  ;;  %4507 = vmatpush1.bf16.msra.mxu1 %v7329_v34  ;;  %v7380_v34 = vld [vmem:[#allocation72_spill] sm:$0xff] }
 0x534   :  { %4445 = vmatprep.subr.bf16.mxu0 %v7330_v59  ;;  %4509 = vmatprep.subr.bf16.mxu1 %v7331_v1  ;;  %v7341_v59 = vld [vmem:[#allocation35_spill] sm:$0xff]  ;;  %v7342_v1 = vld [vmem:[#allocation36_spill] sm:$0xff] }
 0x537   :  { %4447 = vmatpush1.bf16.msra.mxu0 %v7332_v42  ;;  %4511 = vmatpush1.bf16.msra.mxu1 %v7333_v61  ;;  %v7343_v42 = vld [vmem:[#allocation37_spill] sm:$0xff]  ;;  %v7344_v61 = vld [vmem:[#allocation38_spill] sm:$0xff] }
 0x538   :  { %4449 = vmatprep.subr.bf16.mxu0 %v7334_v0  ;;  %4513 = vmatprep.subr.bf16.mxu1 %v7335_v43  ;;  %v7345_v0 = vld [vmem:[#allocation39_spill] sm:$0xff]  ;;  %v7346_v43 = vld [vmem:[#allocation40_spill] sm:$0xff] }
 0x53b   :  { %4451 = vmatpush1.bf16.msra.mxu0 %v7336_v37  ;;  %4515 = vmatpush1.bf16.msra.mxu1 %v7337_v24  ;;  %v7347_v37 = vld [vmem:[#allocation41_spill] sm:$0xff]  ;;  %v7348_v24 = vld [vmem:[#allocation42_spill] sm:$0xff] }
 0x53c   :  { %4453 = vmatprep.subr.bf16.mxu0 %v7338_v5  ;;  %4517 = vmatprep.subr.bf16.mxu1 %v7339_v21  ;;  %v7349_v5 = vld [vmem:[#allocation43_spill] sm:$0xff]  ;;  %v7350_v21 = vld [vmem:[#allocation44_spill] sm:$0xff] }
 0x53f   :  { %4455 = vmatpush1.bf16.msra.mxu0 %v7340_v31  ;;  %4519 = vmatpush1.bf16.msra.mxu1 %v7341_v59  ;;  %v7351_v31 = vld [vmem:[#allocation45_spill] sm:$0xff]  ;;  %v7352_v59 = vld [vmem:[#allocation46_spill] sm:$0xff] }
 0x540   :  { %4457 = vmatprep.subr.bf16.mxu0 %v7342_v1  ;;  %4521 = vmatprep.subr.bf16.mxu1 %v7343_v42  ;;  %v7353_v1 = vld [vmem:[#allocation47_spill] sm:$0xff]  ;;  %v7354_v42 = vld [vmem:[#allocation48_spill] sm:$0xff] }
 0x543   :  { %4459 = vmatpush1.bf16.msra.mxu0 %v7344_v61  ;;  %4523 = vmatpush1.bf16.msra.mxu1 %v7345_v0  ;;  %v7355_v61 = vld [vmem:[#allocation49_spill] sm:$0xff]  ;;  %v7356_v0 = vld [vmem:[#allocation50_spill] sm:$0xff] }
 0x544   :  { %4461 = vmatprep.subr.bf16.mxu0 %v7346_v43  ;;  %4525 = vmatprep.subr.bf16.mxu1 %v7347_v37  ;;  %v7357_v43 = vld [vmem:[#allocation51_spill] sm:$0xff]  ;;  %v7358_v37 = vld [vmem:[#allocation52_spill] sm:$0xff] }
 0x547   :  { %4463 = vmatpush1.bf16.msra.mxu0 %v7348_v24  ;;  %4527 = vmatpush1.bf16.msra.mxu1 %v7349_v5  ;;  %v7359_v24 = vld [vmem:[#allocation53_spill] sm:$0xff]  ;;  %v7360_v5 = vld [vmem:[#allocation54_spill] sm:$0xff] }
 0x548   :  { %4465 = vmatprep.subr.bf16.mxu0 %v7350_v21  ;;  %4529 = vmatprep.subr.bf16.mxu1 %v7351_v31  ;;  %v7361_v21 = vld [vmem:[#allocation55_spill] sm:$0xff]  ;;  %v7362_v31 = vld [vmem:[#allocation56_spill] sm:$0xff] }
 0x54b   :  { %4467 = vmatpush1.bf16.msra.mxu0 %v7352_v59  ;;  %4531 = vmatpush1.bf16.msra.mxu1 %v7353_v1  ;;  %v7363_v59 = vld [vmem:[#allocation57_spill] sm:$0xff]  ;;  %v7364_v1 = vld [vmem:[#allocation58_spill] sm:$0xff] }
 0x54c   :  { %4469 = vmatprep.subr.bf16.mxu0 %v7354_v42  ;;  %4533 = vmatprep.subr.bf16.mxu1 %v7355_v61  ;;  %v7365_v42 = vld [vmem:[#allocation59_spill] sm:$0xff]  ;;  %v7366_v61 = vld [vmem:[#allocation60_spill] sm:$0xff] }
 0x54f   :  { %4471 = vmatpush1.bf16.msra.mxu0 %v7356_v0  ;;  %4535 = vmatpush1.bf16.msra.mxu1 %v7357_v43  ;;  %v7367_v0 = vld [vmem:[#allocation61_spill] sm:$0xff]  ;;  %v7368_v43 = vld [vmem:[#allocation62_spill] sm:$0xff] }
 0x550   :  { %4473 = vmatprep.subr.bf16.mxu0 %v7358_v37  ;;  %4537 = vmatprep.subr.bf16.mxu1 %v7359_v24  ;;  %v7369_v37 = vld [vmem:[#allocation63_spill] sm:$0xff]  ;;  %v7370_v24 = vld [vmem:[#allocation64_spill] sm:$0xff] }
 0x553   :  { %4475 = vmatpush1.bf16.msra.mxu0 %v7360_v5  ;;  %4539 = vmatpush1.bf16.msra.mxu1 %v7361_v21  ;;  %v7371_v5 = vld [vmem:[#allocation65_spill] sm:$0xff]  ;;  %v7372_v21 = vld [vmem:[#allocation66_spill] sm:$0xff] }
 0x554   :  { %4477 = vmatprep.subr.bf16.mxu0 %v7362_v31  ;;  %4541 = vmatprep.subr.bf16.mxu1 %v7363_v59  ;;  %v7373_v31 = vld [vmem:[#allocation67_spill] sm:$0xff]  ;;  %v7374_v59 = vld [vmem:[#allocation68_spill] sm:$0xff] }
 0x557   :  { %4479 = vmatpush1.bf16.msra.mxu0 %v7364_v1  ;;  %4543 = vmatpush1.bf16.msra.mxu1 %v7365_v42  ;;  %v7375_v1 = vld [vmem:[#allocation69_spill] sm:$0xff]  ;;  %v7376_v42 = vld [vmem:[#allocation70_spill] sm:$0xff] }
 0x558   :  { %4481 = vmatprep.subr.bf16.mxu0 %v7366_v61  ;;  %4545 = vmatprep.subr.bf16.mxu1 %v7367_v0  ;;  %v7377_v61 = vld [vmem:[#allocation71_spill] sm:$0xff]  ;;  %v7378_v0 = vld [vmem:[#allocation16_spill] sm:$0xff] }
 0x55b   :  { %4483 = vmatpush1.bf16.msra.mxu0 %v7368_v43  ;;  %4547 = vmatpush1.bf16.msra.mxu1 %v7369_v37  ;;  %v7379_v43 = vld [vmem:[#allocation17_spill] sm:$0xff] }
 0x55c   :  { %4485 = vmatprep.subr.bf16.mxu0 %v7370_v24  ;;  %4549 = vmatprep.subr.bf16.mxu1 %v7371_v5 }
 0x55f   :  { %4487 = vmatpush1.bf16.msra.mxu0 %v7372_v21  ;;  %4551 = vmatpush1.bf16.msra.mxu1 %v7373_v31 }
 0x560   :  { %4489 = vmatprep.subr.bf16.mxu0 %v7374_v59  ;;  %4553 = vmatprep.subr.bf16.mxu1 %v7375_v1  ;;  %v7381_v1 = vld [vmem:[#allocation77_spill] sm:$0xff] }
 0x563   :  { %4491 = vmatpush1.bf16.msra.mxu0 %v7376_v42  ;;  %4555 = vmatpush1.bf16.msra.mxu1 %v7377_v61 }
 0x564   :  { %4557 = vmatprep.subr.bf16.mxu0 %v7378_v0  ;;  %4589 = vmatprep.subr.bf16.mxu1 %v7379_v43 }
 0x5d9   :  { %v1876_v37 = vpop.f32.mrb[22].mxu0  ;;  %v1947_v24 = vpop.f32.mrb[22].mxu1 }
 0x5da   :  { %v1877_v5 = vadd.f32 %v1876_v37, %v7380_v34  ;;  %v1878_v51 = vpop.f32.mrb[23].mxu0  ;;  %v1949_v21 = vpop.f32.mrb[23].mxu1  ;;  %v1948_v61 = vadd.f32 %v1947_v24, %v7261_v11  ;;  %v7382_v24 = vld [vmem:[#allocation73_spill] sm:$0xff] }
 0x5db   :  { %v1879_v31 = vadd.f32 %v1878_v51, %v7259_v38  ;;  %v1950_v42 = vadd.f32 %v1949_v21, %v7381_v1 }
 0x5dc   :  { %v3452_v7 = vmul.f32 -1.442695, %v1877_v5 }
 0x5dd   :  { %v3453_v59 = vmul.f32 -1.442695, %v1879_v31  ;;  %v3454_v41 = vmul.f32 -1.442695, %v1950_v42 }
 0x5de   :  { %5345 = vpow2.f32 %v3452_v7 }
 0x5df   :  { %5347 = vpow2.f32 %v3453_v59 }
 0x5e0   :  { %5349 = vpow2.f32 %v3454_v41 }
 0x5e1   :  { %5351 = vtanh.f32 %v1948_v61 }
 0x5e8   :  { %v5346_v0 = vpop.eup %5345 }
 0x5e9   :  { %v5348_v30 = vpop.eup %5347  ;;  %v1955_v43 = vadd.f32 1.0, %v5346_v0 }
 0x5ea   :  { %v1961_v8 = vadd.f32 1.0, %v5348_v30  ;;  %v5350_v37 = vpop.eup %5349 }
 0x5eb   :  { %5353 = vrcp.f32 %v1955_v43  ;;  %v5352_v34 = vpop.eup %5351  ;;  %v1968_v7 = vadd.f32 1.0, %v5350_v37 }
 0x5ec   :  { %5355 = vrcp.f32 %v1961_v8 }
 0x5ed   :  { %5357 = vrcp.f32 %v1968_v7 }
 0x5f5   :  { %v5354_v51 = vpop.eup %5353 }
 0x5f6   :  { %v5356_v5 = vpop.eup %5355  ;;  %v1972_v31 = vmul.f32 %v5354_v51, %v5352_v34  ;;  %v7383_v34 = vld [vmem:[#allocation75_spill] sm:$0xff] }
 0x5f7   :  { %v1971_v59 = vmul.f32 %v5356_v5, %v6455_v35  ;;  %v5358_v35 = vpop.eup %5357 }
 0x5f9   :  { %v2042_v21 = vpop.f32.mrb[8].mxu0  ;;  %v2113_v42 = vpop.f32.mrb[8].mxu1  ;;  %v6569_v1 = vadd.f32 %v1972_v31, %v1971_v59 }
 0x5fa   :  { %v5164_v0 = vadd.f32 %v2042_v21, %v7382_v24  ;;  %v2044_v41 = vpop.f32.mrb[9].mxu0  ;;  %v2115_v61 = vpop.f32.mrb[9].mxu1  ;;  %v5180_v31 = vadd.f32 %v2113_v42, %v6100_v49 }
 0x5fb   :  { %v5165_v30 = vadd.f32 %v2044_v41, %v7202_v45  ;;  %5359 = vtanh.f32 %v6569_v1  ;;  %v5181_v37 = vadd.f32 %v2115_v61, %v7383_v34 }
 0x5fc   :  { %v3455_v8 = vmul.f32 -1.442695, %v5164_v0 }
 0x5fd   :  { %v3456_v43 = vmul.f32 -1.442695, %v5165_v30  ;;  %v3457_v5 = vmul.f32 -1.442695, %v5181_v37 }
 0x5fe   :  { %5361 = vpow2.f32 %v3455_v8 }
 0x5ff   :  { %5363 = vpow2.f32 %v3456_v43 }
 0x600   :  { %5365 = vpow2.f32 %v3457_v5 }
 0x601   :  { %5367 = vtanh.f32 %v5180_v31  ;;  %v7387_v31 = vld [vmem:[#allocation21_spill] sm:$0xff] }
 0x605   :  { %v5360_v51 = vpop.eup %5359 }
 0x606   :  { %v1975_v7 = vmul.f32 %v5360_v51, %v5358_v35 }
 0x608   :  { %v5362_v59 = vpop.eup %5361  ;;  %2210 = vmatprep.mubr.f32.mxu0 %v1975_v7  ;;  %2281 = vmatprep.mubr.f32.mxu1 %v1975_v7  ;;  %v7388_v7 = vld [vmem:[#allocation22_spill] sm:$0xff] }
 0x609   :  { %v5364_v21 = vpop.eup %5363  ;;  %v2125_v24 = vadd.f32 1.0, %v5362_v59  ;;  %v7389_v59 = vld [vmem:[#allocation23_spill] sm:$0xff] }
 0x60a   :  { %v2131_v41 = vadd.f32 1.0, %v5364_v21  ;;  %v5366_v0 = vpop.eup %5365  ;;  %v7390_v21 = vld [vmem:[#allocation24_spill] sm:$0xff] }
 0x60b   :  { %5369 = vrcp.f32 %v2125_v24  ;;  %v5368_v30 = vpop.eup %5367  ;;  %v2138_v34 = vadd.f32 1.0, %v5366_v0  ;;  %v7385_v24 = vld [vmem:[#allocation19_spill] sm:$0xff]  ;;  %v7392_v0 = vld [vmem:[#allocation26_spill] sm:$0xff] }
 0x60c   :  { %5371 = vrcp.f32 %v2131_v41  ;;  %v7391_v41 = vld [vmem:[#allocation25_spill] sm:$0xff] }
 0x60d   :  { %5373 = vrcp.f32 %v2138_v34  ;;  %v7386_v34 = vld [vmem:[#allocation20_spill] sm:$0xff] }
 0x615   :  { %v5370_v8 = vpop.eup %5369 }
 0x616   :  { %v5372_v61 = vpop.eup %5371  ;;  %v2142_v43 = vmul.f32 %v5370_v8, %v5368_v30  ;;  %v7393_v30 = vld [vmem:[#allocation27_spill] sm:$0xff]  ;;  %v7394_v8 = vld [vmem:[#allocation28_spill] sm:$0xff] }
 0x617   :  { %v2141_v37 = vmul.f32 %v5372_v61, %v6463_v12  ;;  %v5374_v35 = vpop.eup %5373  ;;  %v7384_v12 = vld [vmem:[#allocation18_spill] sm:$0xff]  ;;  %v7395_v61 = vld [vmem:[#allocation29_spill] sm:$0xff] }
 0x619   :  { %v6577_v42 = vadd.f32 %v2142_v43, %v2141_v37  ;;  %v7396_v43 = vld [vmem:[#allocation30_spill] sm:$0xff]  ;;  %v7397_v37 = vld [vmem:[#allocation31_spill] sm:$0xff] }
 0x61b   :  { %5375 = vtanh.f32 %v6577_v42 }
 0x625   :  { %v5376_v51 = vpop.eup %5375 }
 0x626   :  { %v2145_v5 = vmul.f32 %v5376_v51, %v5374_v35  ;;  %v7398_v35 = vld [vmem:[#allocation32_spill] sm:$0xff]  ;;  %v7399_v51 = vld [vmem:[#allocation33_spill] sm:$0xff] }
 0x628   :  { %2211 = vmatmul.mubr.f32.vlgmr.msra.gmra.mrb[24].mxu0 %v2145_v5  ;;  %2282 = vmatmul.mubr.f32.vlgmr.msra.gmra.mrb[24].mxu1 %v2145_v5 }
 0x629   :  { %4559 = vmatpush1.bf16.msra.mxu0 %v5768_v47  ;;  %4591 = vmatpush1.bf16.msra.mxu1 %v5771_v50 }
 0x62a   :  { %4561 = vmatprep.subr.bf16.mxu0 %v5774_v53  ;;  %4593 = vmatprep.subr.bf16.mxu1 %v5776_v56 }
 0x62b   :  { %2376 = vmatprep.mubr.f32.mxu0 %v7141_v25  ;;  %2447 = vmatprep.mubr.f32.mxu1 %v7141_v25 }
 0x62d   :  { %4563 = vmatpush1.bf16.msra.mxu0 %v5779_v60  ;;  %4595 = vmatpush1.bf16.msra.mxu1 %v5783_v63 }
 0x62e   :  { %4565 = vmatprep.subr.bf16.mxu0 %v5787_v3  ;;  %4597 = vmatprep.subr.bf16.mxu1 %v5790_v6 }
 0x631   :  { %4567 = vmatpush1.bf16.msra.mxu0 %v5793_v10  ;;  %4599 = vmatpush1.bf16.msra.mxu1 %v5797_v13 }
 0x632   :  { %4569 = vmatprep.subr.bf16.mxu0 %v5801_v16  ;;  %4601 = vmatprep.subr.bf16.mxu1 %v5804_v19 }
 0x635   :  { %4571 = vmatpush1.bf16.msra.mxu0 %v5807_v23  ;;  %4603 = vmatpush1.bf16.msra.mxu1 %v5811_v26 }
 0x636   :  { %4573 = vmatprep.subr.bf16.mxu0 %v5815_v29  ;;  %4605 = vmatprep.subr.bf16.mxu1 %v5818_v32 }
 0x639   :  { %4575 = vmatpush1.bf16.msra.mxu0 %v5821_v36  ;;  %4607 = vmatpush1.bf16.msra.mxu1 %v5825_v40 }
 0x63a   :  { %4577 = vmatprep.subr.bf16.mxu0 %v5829_v44  ;;  %4609 = vmatprep.subr.bf16.mxu1 %v5832_v48 }
 0x63d   :  { %4579 = vmatpush1.bf16.msra.mxu0 %v5835_v54  ;;  %4611 = vmatpush1.bf16.msra.mxu1 %v5839_v58 }
 0x63e   :  { %4581 = vmatprep.subr.bf16.mxu0 %v5843_v62  ;;  %4613 = vmatprep.subr.bf16.mxu1 %v5846_v4 }
 0x641   :  { %4583 = vmatpush1.bf16.msra.mxu0 %v5849_v9  ;;  %4615 = vmatpush1.bf16.msra.mxu1 %v5853_v14 }
 0x642   :  { %4585 = vmatprep.subr.bf16.mxu0 %v5857_v18  ;;  %4617 = vmatprep.subr.bf16.mxu1 %v5860_v22 }
 0x645   :  { %4587 = vmatpush1.bf16.msra.mxu0 %v5863_v28  ;;  %4619 = vmatpush1.bf16.msra.mxu1 %v5867_v33 }
 0x646   :  { %4621 = vmatprep.subr.bf16.mxu0 %v5871_v39  ;;  %4685 = vmatprep.subr.bf16.mxu1 %v5874_v46 }
 0x648   :  { %2377 = vmatmul.mubr.f32.vlgmr.msra.gmra.mrb[10].mxu0 %v2145_v5  ;;  %2448 = vmatmul.mubr.f32.vlgmr.msra.gmra.mrb[10].mxu1 %v2145_v5  ;;  %v7400_v5 = vld [vmem:[#allocation34_spill] sm:$0xff] }
 0x649   :  { %4623 = vmatpush1.bf16.msra.mxu0 %v5877_v52  ;;  %4687 = vmatpush1.bf16.msra.mxu1 %v5881_v55 }
 0x64a   :  { %4625 = vmatprep.subr.bf16.mxu0 %v5883_v57  ;;  %4689 = vmatprep.subr.bf16.mxu1 %v5887_v2 }
 0x64d   :  { %4627 = vmatpush1.bf16.msra.mxu0 %v5893_v15  ;;  %4691 = vmatpush1.bf16.msra.mxu1 %v5897_v17 }
 0x64e   :  { %4629 = vmatprep.subr.bf16.mxu0 %v5899_v20  ;;  %4693 = vmatprep.subr.bf16.mxu1 %v5902_v27 }
 0x651   :  { %4631 = vmatpush1.bf16.msra.mxu0 %v7384_v12  ;;  %4695 = vmatpush1.bf16.msra.mxu1 %v7385_v24 }
 0x652   :  { %4633 = vmatprep.subr.bf16.mxu0 %v7386_v34  ;;  %4697 = vmatprep.subr.bf16.mxu1 %v7387_v31 }
 0x655   :  { %4635 = vmatpush1.bf16.msra.mxu0 %v7388_v7  ;;  %4699 = vmatpush1.bf16.msra.mxu1 %v7389_v59  ;;  %v7440_v59 = vld [vmem:[#allocation72_spill] sm:$0xff] }
 0x656   :  { %4637 = vmatprep.subr.bf16.mxu0 %v7390_v21  ;;  %4701 = vmatprep.subr.bf16.mxu1 %v7391_v41  ;;  %v7401_v21 = vld [vmem:[#allocation35_spill] sm:$0xff]  ;;  %v7402_v41 = vld [vmem:[#allocation36_spill] sm:$0xff] }
 0x659   :  { %4639 = vmatpush1.bf16.msra.mxu0 %v7392_v0  ;;  %4703 = vmatpush1.bf16.msra.mxu1 %v7393_v30  ;;  %v7403_v0 = vld [vmem:[#allocation37_spill] sm:$0xff]  ;;  %v7404_v30 = vld [vmem:[#allocation38_spill] sm:$0xff] }
 0x65a   :  { %4641 = vmatprep.subr.bf16.mxu0 %v7394_v8  ;;  %4705 = vmatprep.subr.bf16.mxu1 %v7395_v61  ;;  %v7405_v8 = vld [vmem:[#allocation39_spill] sm:$0xff]  ;;  %v7406_v61 = vld [vmem:[#allocation40_spill] sm:$0xff] }
 0x65d   :  { %4643 = vmatpush1.bf16.msra.mxu0 %v7396_v43  ;;  %4707 = vmatpush1.bf16.msra.mxu1 %v7397_v37  ;;  %v7407_v43 = vld [vmem:[#allocation41_spill] sm:$0xff]  ;;  %v7408_v37 = vld [vmem:[#allocation42_spill] sm:$0xff] }
 0x65e   :  { %4645 = vmatprep.subr.bf16.mxu0 %v7398_v35  ;;  %4709 = vmatprep.subr.bf16.mxu1 %v7399_v51  ;;  %v7409_v35 = vld [vmem:[#allocation43_spill] sm:$0xff]  ;;  %v7410_v51 = vld [vmem:[#allocation44_spill] sm:$0xff] }
 0x661   :  { %4647 = vmatpush1.bf16.msra.mxu0 %v7400_v5  ;;  %4711 = vmatpush1.bf16.msra.mxu1 %v7401_v21  ;;  %v7411_v5 = vld [vmem:[#allocation45_spill] sm:$0xff]  ;;  %v7412_v21 = vld [vmem:[#allocation46_spill] sm:$0xff] }
 0x662   :  { %4649 = vmatprep.subr.bf16.mxu0 %v7402_v41  ;;  %4713 = vmatprep.subr.bf16.mxu1 %v7403_v0  ;;  %v7413_v41 = vld [vmem:[#allocation47_spill] sm:$0xff]  ;;  %v7414_v0 = vld [vmem:[#allocation48_spill] sm:$0xff] }
 0x665   :  { %4651 = vmatpush1.bf16.msra.mxu0 %v7404_v30  ;;  %4715 = vmatpush1.bf16.msra.mxu1 %v7405_v8  ;;  %v7415_v30 = vld [vmem:[#allocation49_spill] sm:$0xff]  ;;  %v7416_v8 = vld [vmem:[#allocation50_spill] sm:$0xff] }
 0x666   :  { %4653 = vmatprep.subr.bf16.mxu0 %v7406_v61  ;;  %4717 = vmatprep.subr.bf16.mxu1 %v7407_v43  ;;  %v7417_v61 = vld [vmem:[#allocation51_spill] sm:$0xff]  ;;  %v7418_v43 = vld [vmem:[#allocation52_spill] sm:$0xff] }
 0x669   :  { %4655 = vmatpush1.bf16.msra.mxu0 %v7408_v37  ;;  %4719 = vmatpush1.bf16.msra.mxu1 %v7409_v35  ;;  %v7419_v37 = vld [vmem:[#allocation53_spill] sm:$0xff]  ;;  %v7420_v35 = vld [vmem:[#allocation54_spill] sm:$0xff] }
 0x66a   :  { %4657 = vmatprep.subr.bf16.mxu0 %v7410_v51  ;;  %4721 = vmatprep.subr.bf16.mxu1 %v7411_v5  ;;  %v7421_v51 = vld [vmem:[#allocation55_spill] sm:$0xff]  ;;  %v7422_v5 = vld [vmem:[#allocation56_spill] sm:$0xff] }
 0x66d   :  { %4659 = vmatpush1.bf16.msra.mxu0 %v7412_v21  ;;  %4723 = vmatpush1.bf16.msra.mxu1 %v7413_v41  ;;  %v7423_v21 = vld [vmem:[#allocation57_spill] sm:$0xff]  ;;  %v7424_v41 = vld [vmem:[#allocation58_spill] sm:$0xff] }
 0x66e   :  { %4661 = vmatprep.subr.bf16.mxu0 %v7414_v0  ;;  %4725 = vmatprep.subr.bf16.mxu1 %v7415_v30  ;;  %v7425_v0 = vld [vmem:[#allocation59_spill] sm:$0xff]  ;;  %v7426_v30 = vld [vmem:[#allocation60_spill] sm:$0xff] }
 0x671   :  { %4663 = vmatpush1.bf16.msra.mxu0 %v7416_v8  ;;  %4727 = vmatpush1.bf16.msra.mxu1 %v7417_v61  ;;  %v7427_v8 = vld [vmem:[#allocation61_spill] sm:$0xff]  ;;  %v7428_v61 = vld [vmem:[#allocation62_spill] sm:$0xff] }
 0x672   :  { %4665 = vmatprep.subr.bf16.mxu0 %v7418_v43  ;;  %4729 = vmatprep.subr.bf16.mxu1 %v7419_v37  ;;  %v7429_v43 = vld [vmem:[#allocation63_spill] sm:$0xff]  ;;  %v7430_v37 = vld [vmem:[#allocation64_spill] sm:$0xff] }
 0x675   :  { %4667 = vmatpush1.bf16.msra.mxu0 %v7420_v35  ;;  %4731 = vmatpush1.bf16.msra.mxu1 %v7421_v51  ;;  %v7431_v35 = vld [vmem:[#allocation65_spill] sm:$0xff]  ;;  %v7432_v51 = vld [vmem:[#allocation66_spill] sm:$0xff] }
 0x676   :  { %4669 = vmatprep.subr.bf16.mxu0 %v7422_v5  ;;  %4733 = vmatprep.subr.bf16.mxu1 %v7423_v21  ;;  %v7433_v5 = vld [vmem:[#allocation67_spill] sm:$0xff]  ;;  %v7434_v21 = vld [vmem:[#allocation68_spill] sm:$0xff] }
 0x679   :  { %4671 = vmatpush1.bf16.msra.mxu0 %v7424_v41  ;;  %4735 = vmatpush1.bf16.msra.mxu1 %v7425_v0  ;;  %v7435_v41 = vld [vmem:[#allocation69_spill] sm:$0xff]  ;;  %v7436_v0 = vld [vmem:[#allocation70_spill] sm:$0xff] }
 0x67a   :  { %4673 = vmatprep.subr.bf16.mxu0 %v7426_v30  ;;  %4737 = vmatprep.subr.bf16.mxu1 %v7427_v8  ;;  %v7437_v30 = vld [vmem:[#allocation71_spill] sm:$0xff]  ;;  %v7438_v8 = vld [vmem:[#allocation16_spill] sm:$0xff] }
 0x67d   :  { %4675 = vmatpush1.bf16.msra.mxu0 %v7428_v61  ;;  %4739 = vmatpush1.bf16.msra.mxu1 %v7429_v43  ;;  %v7439_v61 = vld [vmem:[#allocation17_spill] sm:$0xff] }
 0x67e   :  { %4677 = vmatprep.subr.bf16.mxu0 %v7430_v37  ;;  %4741 = vmatprep.subr.bf16.mxu1 %v7431_v35 }
 0x681   :  { %4679 = vmatpush1.bf16.msra.mxu0 %v7432_v51  ;;  %4743 = vmatpush1.bf16.msra.mxu1 %v7433_v5 }
 0x682   :  { %4681 = vmatprep.subr.bf16.mxu0 %v7434_v21  ;;  %4745 = vmatprep.subr.bf16.mxu1 %v7435_v41  ;;  %v7441_v41 = vld [vmem:[#allocation77_spill] sm:$0xff] }
 0x685   :  { %4683 = vmatpush1.bf16.msra.mxu0 %v7436_v0  ;;  %4747 = vmatpush1.bf16.msra.mxu1 %v7437_v30 }
 0x686   :  { %4749 = vmatprep.subr.bf16.mxu0 %v7438_v8  ;;  %4781 = vmatprep.subr.bf16.mxu1 %v7439_v61 }
 0x6fb   :  { %v2212_v43 = vpop.f32.mrb[24].mxu0  ;;  %v2283_v37 = vpop.f32.mrb[24].mxu1 }
 0x6fc   :  { %v2213_v35 = vadd.f32 %v2212_v43, %v7440_v59  ;;  %v2214_v7 = vpop.f32.mrb[25].mxu0  ;;  %v2285_v51 = vpop.f32.mrb[25].mxu1  ;;  %v2284_v30 = vadd.f32 %v2283_v37, %v7261_v11  ;;  %v7442_v37 = vld [vmem:[#allocation73_spill] sm:$0xff] }
 0x6fd   :  { %v2215_v5 = vadd.f32 %v2214_v7, %v7259_v38  ;;  %v2286_v0 = vadd.f32 %v2285_v51, %v7441_v41 }
 0x6fe   :  { %v3458_v31 = vmul.f32 -1.442695, %v2213_v35 }
 0x6ff   :  { %v3459_v21 = vmul.f32 -1.442695, %v2215_v5  ;;  %v3460_v34 = vmul.f32 -1.442695, %v2286_v0 }
 0x700   :  { %5377 = vpow2.f32 %v3458_v31 }
 0x701   :  { %5379 = vpow2.f32 %v3459_v21 }
 0x702   :  { %5381 = vpow2.f32 %v3460_v34 }
 0x703   :  { %5383 = vtanh.f32 %v2284_v30 }
 0x70a   :  { %v5378_v8 = vpop.eup %5377 }
 0x70b   :  { %v5380_v24 = vpop.eup %5379  ;;  %v2291_v61 = vadd.f32 1.0, %v5378_v8 }
 0x70c   :  { %v2297_v12 = vadd.f32 1.0, %v5380_v24  ;;  %v5382_v43 = vpop.eup %5381 }
 0x70d   :  { %5385 = vrcp.f32 %v2291_v61  ;;  %v5384_v59 = vpop.eup %5383  ;;  %v2304_v31 = vadd.f32 1.0, %v5382_v43 }
 0x70e   :  { %5387 = vrcp.f32 %v2297_v12 }
 0x70f   :  { %5389 = vrcp.f32 %v2304_v31 }
 0x717   :  { %v5386_v7 = vpop.eup %5385 }
 0x718   :  { %v5388_v35 = vpop.eup %5387  ;;  %v2308_v5 = vmul.f32 %v5386_v7, %v5384_v59  ;;  %v7443_v59 = vld [vmem:[#allocation75_spill] sm:$0xff] }
 0x719   :  { %v2307_v21 = vmul.f32 %v5388_v35, %v6569_v1  ;;  %v5390_v1 = vpop.eup %5389 }
 0x71b   :  { %v2378_v51 = vpop.f32.mrb[10].mxu0  ;;  %v2449_v0 = vpop.f32.mrb[10].mxu1  ;;  %v6683_v41 = vadd.f32 %v2308_v5, %v2307_v21 }
 0x71c   :  { %v5166_v8 = vadd.f32 %v2378_v51, %v7442_v37  ;;  %v2380_v34 = vpop.f32.mrb[11].mxu0  ;;  %v2451_v30 = vpop.f32.mrb[11].mxu1  ;;  %v5182_v5 = vadd.f32 %v2449_v0, %v6100_v49 }
 0x71d   :  { %v5167_v24 = vadd.f32 %v2380_v34, %v7202_v45  ;;  %5391 = vtanh.f32 %v6683_v41  ;;  %v5183_v43 = vadd.f32 %v2451_v30, %v7443_v59 }
 0x71e   :  { %v3461_v12 = vmul.f32 -1.442695, %v5166_v8 }
 0x71f   :  { %v3462_v61 = vmul.f32 -1.442695, %v5167_v24  ;;  %v3463_v35 = vmul.f32 -1.442695, %v5183_v43 }
 0x720   :  { %5393 = vpow2.f32 %v3461_v12 }
 0x721   :  { %5395 = vpow2.f32 %v3462_v61 }
 0x722   :  { %5397 = vpow2.f32 %v3463_v35 }
 0x723   :  { %5399 = vtanh.f32 %v5182_v5  ;;  %v7447_v5 = vld [vmem:[#allocation21_spill] sm:$0xff] }
 0x727   :  { %v5392_v7 = vpop.eup %5391 }
 0x728   :  { %v2311_v31 = vmul.f32 %v5392_v7, %v5390_v1 }
 0x72a   :  { %v5394_v21 = vpop.eup %5393  ;;  %2546 = vmatprep.mubr.f32.mxu0 %v2311_v31  ;;  %2617 = vmatprep.mubr.f32.mxu1 %v2311_v31  ;;  %v7448_v31 = vld [vmem:[#allocation22_spill] sm:$0xff] }
 0x72b   :  { %v5396_v51 = vpop.eup %5395  ;;  %v2461_v37 = vadd.f32 1.0, %v5394_v21  ;;  %v7449_v21 = vld [vmem:[#allocation23_spill] sm:$0xff] }
 0x72c   :  { %v2467_v34 = vadd.f32 1.0, %v5396_v51  ;;  %v5398_v8 = vpop.eup %5397  ;;  %v7450_v51 = vld [vmem:[#allocation24_spill] sm:$0xff] }
 0x72d   :  { %5401 = vrcp.f32 %v2461_v37  ;;  %v5400_v24 = vpop.eup %5399  ;;  %v2474_v59 = vadd.f32 1.0, %v5398_v8  ;;  %v7445_v37 = vld [vmem:[#allocation19_spill] sm:$0xff]  ;;  %v7452_v8 = vld [vmem:[#allocation26_spill] sm:$0xff] }
 0x72e   :  { %5403 = vrcp.f32 %v2467_v34  ;;  %v7451_v34 = vld [vmem:[#allocation25_spill] sm:$0xff] }
 0x72f   :  { %5405 = vrcp.f32 %v2474_v59  ;;  %v7446_v59 = vld [vmem:[#allocation20_spill] sm:$0xff] }
 0x737   :  { %v5402_v12 = vpop.eup %5401 }
 0x738   :  { %v5404_v30 = vpop.eup %5403  ;;  %v2478_v61 = vmul.f32 %v5402_v12, %v5400_v24  ;;  %v7453_v24 = vld [vmem:[#allocation27_spill] sm:$0xff]  ;;  %v7454_v12 = vld [vmem:[#allocation28_spill] sm:$0xff] }
 0x739   :  { %v2477_v43 = vmul.f32 %v5404_v30, %v6577_v42  ;;  %v5406_v1 = vpop.eup %5405  ;;  %v7444_v42 = vld [vmem:[#allocation18_spill] sm:$0xff]  ;;  %v7455_v30 = vld [vmem:[#allocation29_spill] sm:$0xff] }
 0x73b   :  { %v6691_v0 = vadd.f32 %v2478_v61, %v2477_v43  ;;  %v7456_v61 = vld [vmem:[#allocation30_spill] sm:$0xff]  ;;  %v7457_v43 = vld [vmem:[#allocation31_spill] sm:$0xff] }
 0x73d   :  { %5407 = vtanh.f32 %v6691_v0 }
 0x747   :  { %v5408_v7 = vpop.eup %5407 }
 0x748   :  { %v2481_v35 = vmul.f32 %v5408_v7, %v5406_v1  ;;  %v7458_v1 = vld [vmem:[#allocation32_spill] sm:$0xff]  ;;  %v7459_v7 = vld [vmem:[#allocation33_spill] sm:$0xff] }
 0x74a   :  { %2547 = vmatmul.mubr.f32.vlgmr.msra.gmra.mrb[26].mxu0 %v2481_v35  ;;  %2618 = vmatmul.mubr.f32.vlgmr.msra.gmra.mrb[26].mxu1 %v2481_v35 }
 0x74b   :  { %4751 = vmatpush1.bf16.msra.mxu0 %v5768_v47  ;;  %4783 = vmatpush1.bf16.msra.mxu1 %v5771_v50 }
 0x74c   :  { %4753 = vmatprep.subr.bf16.mxu0 %v5774_v53  ;;  %4785 = vmatprep.subr.bf16.mxu1 %v5776_v56 }
 0x74d   :  { %2712 = vmatprep.mubr.f32.mxu0 %v7141_v25  ;;  %2783 = vmatprep.mubr.f32.mxu1 %v7141_v25 }
 0x74f   :  { %4755 = vmatpush1.bf16.msra.mxu0 %v5779_v60  ;;  %4787 = vmatpush1.bf16.msra.mxu1 %v5783_v63 }
 0x750   :  { %4757 = vmatprep.subr.bf16.mxu0 %v5787_v3  ;;  %4789 = vmatprep.subr.bf16.mxu1 %v5790_v6 }
 0x753   :  { %4759 = vmatpush1.bf16.msra.mxu0 %v5793_v10  ;;  %4791 = vmatpush1.bf16.msra.mxu1 %v5797_v13 }
 0x754   :  { %4761 = vmatprep.subr.bf16.mxu0 %v5801_v16  ;;  %4793 = vmatprep.subr.bf16.mxu1 %v5804_v19 }
 0x757   :  { %4763 = vmatpush1.bf16.msra.mxu0 %v5807_v23  ;;  %4795 = vmatpush1.bf16.msra.mxu1 %v5811_v26 }
 0x758   :  { %4765 = vmatprep.subr.bf16.mxu0 %v5815_v29  ;;  %4797 = vmatprep.subr.bf16.mxu1 %v5818_v32 }
 0x75b   :  { %4767 = vmatpush1.bf16.msra.mxu0 %v5821_v36  ;;  %4799 = vmatpush1.bf16.msra.mxu1 %v5825_v40 }
 0x75c   :  { %4769 = vmatprep.subr.bf16.mxu0 %v5829_v44  ;;  %4801 = vmatprep.subr.bf16.mxu1 %v5832_v48 }
 0x75f   :  { %4771 = vmatpush1.bf16.msra.mxu0 %v5835_v54  ;;  %4803 = vmatpush1.bf16.msra.mxu1 %v5839_v58 }
 0x760   :  { %4773 = vmatprep.subr.bf16.mxu0 %v5843_v62  ;;  %4805 = vmatprep.subr.bf16.mxu1 %v5846_v4 }
 0x763   :  { %4775 = vmatpush1.bf16.msra.mxu0 %v5849_v9  ;;  %4807 = vmatpush1.bf16.msra.mxu1 %v5853_v14 }
 0x764   :  { %4777 = vmatprep.subr.bf16.mxu0 %v5857_v18  ;;  %4809 = vmatprep.subr.bf16.mxu1 %v5860_v22 }
 0x767   :  { %4779 = vmatpush1.bf16.msra.mxu0 %v5863_v28  ;;  %4811 = vmatpush1.bf16.msra.mxu1 %v5867_v33 }
 0x768   :  { %4813 = vmatprep.subr.bf16.mxu0 %v5871_v39  ;;  %4877 = vmatprep.subr.bf16.mxu1 %v5874_v46 }
 0x76a   :  { %2713 = vmatmul.mubr.f32.vlgmr.msra.gmra.mrb[12].mxu0 %v2481_v35  ;;  %2784 = vmatmul.mubr.f32.vlgmr.msra.gmra.mrb[12].mxu1 %v2481_v35  ;;  %v7460_v35 = vld [vmem:[#allocation34_spill] sm:$0xff] }
 0x76b   :  { %4815 = vmatpush1.bf16.msra.mxu0 %v5877_v52  ;;  %4879 = vmatpush1.bf16.msra.mxu1 %v5881_v55 }
 0x76c   :  { %4817 = vmatprep.subr.bf16.mxu0 %v5883_v57  ;;  %4881 = vmatprep.subr.bf16.mxu1 %v5887_v2 }
 0x76f   :  { %4819 = vmatpush1.bf16.msra.mxu0 %v5893_v15  ;;  %4883 = vmatpush1.bf16.msra.mxu1 %v5897_v17 }
 0x770   :  { %4821 = vmatprep.subr.bf16.mxu0 %v5899_v20  ;;  %4885 = vmatprep.subr.bf16.mxu1 %v5902_v27 }
 0x773   :  { %4823 = vmatpush1.bf16.msra.mxu0 %v7444_v42  ;;  %4887 = vmatpush1.bf16.msra.mxu1 %v7445_v37 }
 0x774   :  { %4825 = vmatprep.subr.bf16.mxu0 %v7446_v59  ;;  %4889 = vmatprep.subr.bf16.mxu1 %v7447_v5 }
 0x777   :  { %4827 = vmatpush1.bf16.msra.mxu0 %v7448_v31  ;;  %4891 = vmatpush1.bf16.msra.mxu1 %v7449_v21  ;;  %v7500_v21 = vld [vmem:[#allocation72_spill] sm:$0xff] }
 0x778   :  { %4829 = vmatprep.subr.bf16.mxu0 %v7450_v51  ;;  %4893 = vmatprep.subr.bf16.mxu1 %v7451_v34  ;;  %v7461_v51 = vld [vmem:[#allocation35_spill] sm:$0xff]  ;;  %v7462_v34 = vld [vmem:[#allocation36_spill] sm:$0xff] }
 0x77b   :  { %4831 = vmatpush1.bf16.msra.mxu0 %v7452_v8  ;;  %4895 = vmatpush1.bf16.msra.mxu1 %v7453_v24  ;;  %v7463_v8 = vld [vmem:[#allocation37_spill] sm:$0xff]  ;;  %v7464_v24 = vld [vmem:[#allocation38_spill] sm:$0xff] }
 0x77c   :  { %4833 = vmatprep.subr.bf16.mxu0 %v7454_v12  ;;  %4897 = vmatprep.subr.bf16.mxu1 %v7455_v30  ;;  %v7465_v12 = vld [vmem:[#allocation39_spill] sm:$0xff]  ;;  %v7466_v30 = vld [vmem:[#allocation40_spill] sm:$0xff] }
 0x77f   :  { %4835 = vmatpush1.bf16.msra.mxu0 %v7456_v61  ;;  %4899 = vmatpush1.bf16.msra.mxu1 %v7457_v43  ;;  %v7467_v61 = vld [vmem:[#allocation41_spill] sm:$0xff]  ;;  %v7468_v43 = vld [vmem:[#allocation42_spill] sm:$0xff] }
 0x780   :  { %4837 = vmatprep.subr.bf16.mxu0 %v7458_v1  ;;  %4901 = vmatprep.subr.bf16.mxu1 %v7459_v7  ;;  %v7469_v1 = vld [vmem:[#allocation43_spill] sm:$0xff]  ;;  %v7470_v7 = vld [vmem:[#allocation44_spill] sm:$0xff] }
 0x783   :  { %4839 = vmatpush1.bf16.msra.mxu0 %v7460_v35  ;;  %4903 = vmatpush1.bf16.msra.mxu1 %v7461_v51  ;;  %v7471_v35 = vld [vmem:[#allocation45_spill] sm:$0xff]  ;;  %v7472_v51 = vld [vmem:[#allocation46_spill] sm:$0xff] }
 0x784   :  { %4841 = vmatprep.subr.bf16.mxu0 %v7462_v34  ;;  %4905 = vmatprep.subr.bf16.mxu1 %v7463_v8  ;;  %v7473_v34 = vld [vmem:[#allocation47_spill] sm:$0xff]  ;;  %v7474_v8 = vld [vmem:[#allocation48_spill] sm:$0xff] }
 0x787   :  { %4843 = vmatpush1.bf16.msra.mxu0 %v7464_v24  ;;  %4907 = vmatpush1.bf16.msra.mxu1 %v7465_v12  ;;  %v7475_v24 = vld [vmem:[#allocation49_spill] sm:$0xff]  ;;  %v7476_v12 = vld [vmem:[#allocation50_spill] sm:$0xff] }
 0x788   :  { %4845 = vmatprep.subr.bf16.mxu0 %v7466_v30  ;;  %4909 = vmatprep.subr.bf16.mxu1 %v7467_v61  ;;  %v7477_v30 = vld [vmem:[#allocation51_spill] sm:$0xff]  ;;  %v7478_v61 = vld [vmem:[#allocation52_spill] sm:$0xff] }
 0x78b   :  { %4847 = vmatpush1.bf16.msra.mxu0 %v7468_v43  ;;  %4911 = vmatpush1.bf16.msra.mxu1 %v7469_v1  ;;  %v7479_v43 = vld [vmem:[#allocation53_spill] sm:$0xff]  ;;  %v7480_v1 = vld [vmem:[#allocation54_spill] sm:$0xff] }
 0x78c   :  { %4849 = vmatprep.subr.bf16.mxu0 %v7470_v7  ;;  %4913 = vmatprep.subr.bf16.mxu1 %v7471_v35  ;;  %v7481_v7 = vld [vmem:[#allocation55_spill] sm:$0xff]  ;;  %v7482_v35 = vld [vmem:[#allocation56_spill] sm:$0xff] }
 0x78f   :  { %4851 = vmatpush1.bf16.msra.mxu0 %v7472_v51  ;;  %4915 = vmatpush1.bf16.msra.mxu1 %v7473_v34  ;;  %v7483_v51 = vld [vmem:[#allocation57_spill] sm:$0xff]  ;;  %v7484_v34 = vld [vmem:[#allocation58_spill] sm:$0xff] }
 0x790   :  { %4853 = vmatprep.subr.bf16.mxu0 %v7474_v8  ;;  %4917 = vmatprep.subr.bf16.mxu1 %v7475_v24  ;;  %v7485_v8 = vld [vmem:[#allocation59_spill] sm:$0xff]  ;;  %v7486_v24 = vld [vmem:[#allocation60_spill] sm:$0xff] }
 0x793   :  { %4855 = vmatpush1.bf16.msra.mxu0 %v7476_v12  ;;  %4919 = vmatpush1.bf16.msra.mxu1 %v7477_v30  ;;  %v7487_v12 = vld [vmem:[#allocation61_spill] sm:$0xff]  ;;  %v7488_v30 = vld [vmem:[#allocation62_spill] sm:$0xff] }
 0x794   :  { %4857 = vmatprep.subr.bf16.mxu0 %v7478_v61  ;;  %4921 = vmatprep.subr.bf16.mxu1 %v7479_v43  ;;  %v7489_v61 = vld [vmem:[#allocation63_spill] sm:$0xff]  ;;  %v7490_v43 = vld [vmem:[#allocation64_spill] sm:$0xff] }
 0x797   :  { %4859 = vmatpush1.bf16.msra.mxu0 %v7480_v1  ;;  %4923 = vmatpush1.bf16.msra.mxu1 %v7481_v7  ;;  %v7491_v1 = vld [vmem:[#allocation65_spill] sm:$0xff]  ;;  %v7492_v7 = vld [vmem:[#allocation66_spill] sm:$0xff] }
 0x798   :  { %4861 = vmatprep.subr.bf16.mxu0 %v7482_v35  ;;  %4925 = vmatprep.subr.bf16.mxu1 %v7483_v51  ;;  %v7493_v35 = vld [vmem:[#allocation67_spill] sm:$0xff]  ;;  %v7494_v51 = vld [vmem:[#allocation68_spill] sm:$0xff] }
 0x79b   :  { %4863 = vmatpush1.bf16.msra.mxu0 %v7484_v34  ;;  %4927 = vmatpush1.bf16.msra.mxu1 %v7485_v8  ;;  %v7495_v34 = vld [vmem:[#allocation69_spill] sm:$0xff]  ;;  %v7496_v8 = vld [vmem:[#allocation70_spill] sm:$0xff] }
 0x79c   :  { %4865 = vmatprep.subr.bf16.mxu0 %v7486_v24  ;;  %4929 = vmatprep.subr.bf16.mxu1 %v7487_v12  ;;  %v7497_v24 = vld [vmem:[#allocation71_spill] sm:$0xff]  ;;  %v7498_v12 = vld [vmem:[#allocation16_spill] sm:$0xff] }
 0x79f   :  { %4867 = vmatpush1.bf16.msra.mxu0 %v7488_v30  ;;  %4931 = vmatpush1.bf16.msra.mxu1 %v7489_v61  ;;  %v7499_v30 = vld [vmem:[#allocation17_spill] sm:$0xff] }
 0x7a0   :  { %4869 = vmatprep.subr.bf16.mxu0 %v7490_v43  ;;  %4933 = vmatprep.subr.bf16.mxu1 %v7491_v1 }
 0x7a3   :  { %4871 = vmatpush1.bf16.msra.mxu0 %v7492_v7  ;;  %4935 = vmatpush1.bf16.msra.mxu1 %v7493_v35 }
 0x7a4   :  { %4873 = vmatprep.subr.bf16.mxu0 %v7494_v51  ;;  %4937 = vmatprep.subr.bf16.mxu1 %v7495_v34  ;;  %v7501_v34 = vld [vmem:[#allocation77_spill] sm:$0xff] }
 0x7a7   :  { %4875 = vmatpush1.bf16.msra.mxu0 %v7496_v8  ;;  %4939 = vmatpush1.bf16.msra.mxu1 %v7497_v24 }
 0x7a8   :  { %4941 = vmatprep.subr.bf16.mxu0 %v7498_v12  ;;  %4973 = vmatprep.subr.bf16.mxu1 %v7499_v30 }
 0x81d   :  { %v2548_v61 = vpop.f32.mrb[26].mxu0  ;;  %v2619_v43 = vpop.f32.mrb[26].mxu1 }
 0x81e   :  { %v2549_v1 = vadd.f32 %v2548_v61, %v7500_v21  ;;  %v2550_v31 = vpop.f32.mrb[27].mxu0  ;;  %v2621_v7 = vpop.f32.mrb[27].mxu1  ;;  %v2620_v24 = vadd.f32 %v2619_v43, %v7261_v11  ;;  %v7502_v43 = vld [vmem:[#allocation73_spill] sm:$0xff] }
 0x81f   :  { %v2551_v35 = vadd.f32 %v2550_v31, %v7259_v38  ;;  %v2622_v8 = vadd.f32 %v2621_v7, %v7501_v34 }
 0x820   :  { %v3464_v5 = vmul.f32 -1.442695, %v2549_v1 }
 0x821   :  { %v3465_v51 = vmul.f32 -1.442695, %v2551_v35  ;;  %v3466_v59 = vmul.f32 -1.442695, %v2622_v8 }
 0x822   :  { %5409 = vpow2.f32 %v3464_v5 }
 0x823   :  { %5411 = vpow2.f32 %v3465_v51 }
 0x824   :  { %5413 = vpow2.f32 %v3466_v59 }
 0x825   :  { %5415 = vtanh.f32 %v2620_v24 }
 0x82c   :  { %v5410_v12 = vpop.eup %5409 }
 0x82d   :  { %v5412_v37 = vpop.eup %5411  ;;  %v2627_v30 = vadd.f32 1.0, %v5410_v12 }
 0x82e   :  { %v2633_v42 = vadd.f32 1.0, %v5412_v37  ;;  %v5414_v61 = vpop.eup %5413 }
 0x82f   :  { %5417 = vrcp.f32 %v2627_v30  ;;  %v5416_v21 = vpop.eup %5415  ;;  %v2640_v5 = vadd.f32 1.0, %v5414_v61 }
 0x830   :  { %5419 = vrcp.f32 %v2633_v42 }
 0x831   :  { %5421 = vrcp.f32 %v2640_v5 }
 0x839   :  { %v5418_v31 = vpop.eup %5417 }
 0x83a   :  { %v5420_v1 = vpop.eup %5419  ;;  %v2644_v35 = vmul.f32 %v5418_v31, %v5416_v21  ;;  %v7503_v21 = vld [vmem:[#allocation75_spill] sm:$0xff] }
 0x83b   :  { %v2643_v51 = vmul.f32 %v5420_v1, %v6683_v41  ;;  %v5422_v41 = vpop.eup %5421 }
 0x83d   :  { %v2714_v7 = vpop.f32.mrb[12].mxu0  ;;  %v2785_v8 = vpop.f32.mrb[12].mxu1  ;;  %v6797_v34 = vadd.f32 %v2644_v35, %v2643_v51 }
 0x83e   :  { %v5168_v12 = vadd.f32 %v2714_v7, %v7502_v43  ;;  %v2716_v59 = vpop.f32.mrb[13].mxu0  ;;  %v2787_v24 = vpop.f32.mrb[13].mxu1  ;;  %v5184_v35 = vadd.f32 %v2785_v8, %v6100_v49 }
 0x83f   :  { %v5169_v37 = vadd.f32 %v2716_v59, %v7202_v45  ;;  %5423 = vtanh.f32 %v6797_v34  ;;  %v5185_v61 = vadd.f32 %v2787_v24, %v7503_v21 }
 0x840   :  { %v3467_v42 = vmul.f32 -1.442695, %v5168_v12 }
 0x841   :  { %v3468_v30 = vmul.f32 -1.442695, %v5169_v37  ;;  %v3469_v1 = vmul.f32 -1.442695, %v5185_v61 }
 0x842   :  { %5425 = vpow2.f32 %v3467_v42 }
 0x843   :  { %5427 = vpow2.f32 %v3468_v30 }
 0x844   :  { %5429 = vpow2.f32 %v3469_v1 }
 0x845   :  { %5431 = vtanh.f32 %v5184_v35  ;;  %v7547_v35 = vld [vmem:[#allocation61_spill] sm:$0xff] }
 0x849   :  { %v5424_v31 = vpop.eup %5423 }
 0x84a   :  { %v2647_v5 = vmul.f32 %v5424_v31, %v5422_v41 }
 0x84c   :  { %v5426_v51 = vpop.eup %5425  ;;  %2882 = vmatprep.mubr.f32.mxu0 %v2647_v5  ;;  %2953 = vmatprep.mubr.f32.mxu1 %v2647_v5  ;;  %v7548_v5 = vld [vmem:[#allocation62_spill] sm:$0xff] }
 0x84d   :  { %v5428_v7 = vpop.eup %5427  ;;  %v2797_v43 = vadd.f32 1.0, %v5426_v51  ;;  %v7549_v51 = vld [vmem:[#allocation63_spill] sm:$0xff] }
 0x84e   :  { %v2803_v59 = vadd.f32 1.0, %v5428_v7  ;;  %v5430_v12 = vpop.eup %5429  ;;  %v7550_v7 = vld [vmem:[#allocation64_spill] sm:$0xff] }
 0x84f   :  { %5433 = vrcp.f32 %v2797_v43  ;;  %v5432_v37 = vpop.eup %5431  ;;  %v2810_v21 = vadd.f32 1.0, %v5430_v12  ;;  %v7545_v43 = vld [vmem:[#allocation59_spill] sm:$0xff]  ;;  %v7552_v12 = vld [vmem:[#allocation66_spill] sm:$0xff] }
 0x850   :  { %5435 = vrcp.f32 %v2803_v59  ;;  %v7551_v59 = vld [vmem:[#allocation65_spill] sm:$0xff] }
 0x851   :  { %5437 = vrcp.f32 %v2810_v21  ;;  %v7546_v21 = vld [vmem:[#allocation60_spill] sm:$0xff] }
 0x859   :  { %v5434_v42 = vpop.eup %5433 }
 0x85a   :  { %v5436_v24 = vpop.eup %5435  ;;  %v2814_v30 = vmul.f32 %v5434_v42, %v5432_v37  ;;  %v7553_v37 = vld [vmem:[#allocation67_spill] sm:$0xff]  ;;  %v7554_v42 = vld [vmem:[#allocation68_spill] sm:$0xff] }
 0x85b   :  { %v2813_v61 = vmul.f32 %v5436_v24, %v6691_v0  ;;  %v5438_v41 = vpop.eup %5437  ;;  %v7544_v0 = vld [vmem:[#allocation58_spill] sm:$0xff]  ;;  %v7555_v24 = vld [vmem:[#allocation69_spill] sm:$0xff] }
 0x85d   :  { %v6805_v8 = vadd.f32 %v2814_v30, %v2813_v61  ;;  %v7556_v30 = vld [vmem:[#allocation70_spill] sm:$0xff]  ;;  %v7557_v61 = vld [vmem:[#allocation71_spill] sm:$0xff] }
 0x85f   :  { %5439 = vtanh.f32 %v6805_v8 }
 0x869   :  { %v5440_v31 = vpop.eup %5439 }
 0x86a   :  { %v2817_v1 = vmul.f32 %v5440_v31, %v5438_v41 }
 0x86c   :  { %2883 = vmatmul.mubr.f32.vlgmr.msra.gmra.mrb[28].mxu0 %v2817_v1  ;;  %2954 = vmatmul.mubr.f32.vlgmr.msra.gmra.mrb[28].mxu1 %v2817_v1 }
 0x86d   :  { %4943 = vmatpush1.bf16.msra.mxu0 %v5768_v47  ;;  %4975 = vmatpush1.bf16.msra.mxu1 %v5771_v50  ;;  %v7504_v47 = vld [vmem:[#allocation18_spill] sm:$0xff]  ;;  %v7505_v50 = vld [vmem:[#allocation19_spill] sm:$0xff] }
 0x86e   :  { %4945 = vmatprep.subr.bf16.mxu0 %v5774_v53  ;;  %4977 = vmatprep.subr.bf16.mxu1 %v5776_v56  ;;  %v7506_v53 = vld [vmem:[#allocation20_spill] sm:$0xff]  ;;  %v7507_v56 = vld [vmem:[#allocation21_spill] sm:$0xff] }
 0x86f   :  { %3048 = vmatprep.mubr.f32.mxu0 %v7141_v25  ;;  %3119 = vmatprep.mubr.f32.mxu1 %v7141_v25 }
 0x871   :  { %4947 = vmatpush1.bf16.msra.mxu0 %v5779_v60  ;;  %4979 = vmatpush1.bf16.msra.mxu1 %v5783_v63  ;;  %v7508_v60 = vld [vmem:[#allocation22_spill] sm:$0xff]  ;;  %v7509_v63 = vld [vmem:[#allocation23_spill] sm:$0xff] }
 0x872   :  { %4949 = vmatprep.subr.bf16.mxu0 %v5787_v3  ;;  %4981 = vmatprep.subr.bf16.mxu1 %v5790_v6  ;;  %v7510_v3 = vld [vmem:[#allocation24_spill] sm:$0xff]  ;;  %v7511_v6 = vld [vmem:[#allocation25_spill] sm:$0xff] }
 0x875   :  { %4951 = vmatpush1.bf16.msra.mxu0 %v5793_v10  ;;  %4983 = vmatpush1.bf16.msra.mxu1 %v5797_v13  ;;  %v7512_v10 = vld [vmem:[#allocation26_spill] sm:$0xff]  ;;  %v7513_v13 = vld [vmem:[#allocation27_spill] sm:$0xff] }
 0x876   :  { %4953 = vmatprep.subr.bf16.mxu0 %v5801_v16  ;;  %4985 = vmatprep.subr.bf16.mxu1 %v5804_v19  ;;  %v7514_v16 = vld [vmem:[#allocation28_spill] sm:$0xff]  ;;  %v7515_v19 = vld [vmem:[#allocation29_spill] sm:$0xff] }
 0x879   :  { %4955 = vmatpush1.bf16.msra.mxu0 %v5807_v23  ;;  %4987 = vmatpush1.bf16.msra.mxu1 %v5811_v26  ;;  %v7516_v23 = vld [vmem:[#allocation30_spill] sm:$0xff]  ;;  %v7517_v26 = vld [vmem:[#allocation31_spill] sm:$0xff] }
 0x87a   :  { %4957 = vmatprep.subr.bf16.mxu0 %v5815_v29  ;;  %4989 = vmatprep.subr.bf16.mxu1 %v5818_v32  ;;  %v7518_v29 = vld [vmem:[#allocation32_spill] sm:$0xff]  ;;  %v7519_v32 = vld [vmem:[#allocation33_spill] sm:$0xff] }
 0x87d   :  { %4959 = vmatpush1.bf16.msra.mxu0 %v5821_v36  ;;  %4991 = vmatpush1.bf16.msra.mxu1 %v5825_v40  ;;  %v7520_v36 = vld [vmem:[#allocation34_spill] sm:$0xff]  ;;  %v7521_v40 = vld [vmem:[#allocation35_spill] sm:$0xff] }
 0x87e   :  { %4961 = vmatprep.subr.bf16.mxu0 %v5829_v44  ;;  %4993 = vmatprep.subr.bf16.mxu1 %v5832_v48  ;;  %v7522_v44 = vld [vmem:[#allocation36_spill] sm:$0xff]  ;;  %v7523_v48 = vld [vmem:[#allocation37_spill] sm:$0xff] }
 0x881   :  { %4963 = vmatpush1.bf16.msra.mxu0 %v5835_v54  ;;  %4995 = vmatpush1.bf16.msra.mxu1 %v5839_v58  ;;  %v7524_v54 = vld [vmem:[#allocation38_spill] sm:$0xff]  ;;  %v7525_v58 = vld [vmem:[#allocation39_spill] sm:$0xff] }
 0x882   :  { %4965 = vmatprep.subr.bf16.mxu0 %v5843_v62  ;;  %4997 = vmatprep.subr.bf16.mxu1 %v5846_v4  ;;  %v7526_v62 = vld [vmem:[#allocation40_spill] sm:$0xff]  ;;  %v7527_v4 = vld [vmem:[#allocation41_spill] sm:$0xff] }
 0x885   :  { %4967 = vmatpush1.bf16.msra.mxu0 %v5849_v9  ;;  %4999 = vmatpush1.bf16.msra.mxu1 %v5853_v14  ;;  %v7528_v9 = vld [vmem:[#allocation42_spill] sm:$0xff]  ;;  %v7529_v14 = vld [vmem:[#allocation43_spill] sm:$0xff] }
 0x886   :  { %4969 = vmatprep.subr.bf16.mxu0 %v5857_v18  ;;  %5001 = vmatprep.subr.bf16.mxu1 %v5860_v22  ;;  %v7530_v18 = vld [vmem:[#allocation44_spill] sm:$0xff]  ;;  %v7531_v22 = vld [vmem:[#allocation45_spill] sm:$0xff] }
 0x889   :  { %4971 = vmatpush1.bf16.msra.mxu0 %v5863_v28  ;;  %5003 = vmatpush1.bf16.msra.mxu1 %v5867_v33  ;;  %v7532_v28 = vld [vmem:[#allocation46_spill] sm:$0xff]  ;;  %v7533_v33 = vld [vmem:[#allocation47_spill] sm:$0xff] }
 0x88a   :  { %5005 = vmatprep.subr.bf16.mxu0 %v5871_v39  ;;  %5069 = vmatprep.subr.bf16.mxu1 %v5874_v46  ;;  %v7534_v39 = vld [vmem:[#allocation48_spill] sm:$0xff]  ;;  %v7535_v46 = vld [vmem:[#allocation49_spill] sm:$0xff] }
 0x88c   :  { %3049 = vmatmul.mubr.f32.vlgmr.msra.gmra.mrb[14].mxu0 %v2817_v1  ;;  %3120 = vmatmul.mubr.f32.vlgmr.msra.gmra.mrb[14].mxu1 %v2817_v1  ;;  %v7558_v1 = vld [vmem:[#allocation72_spill] sm:$0xff] }
 0x88d   :  { %5007 = vmatpush1.bf16.msra.mxu0 %v5877_v52  ;;  %5071 = vmatpush1.bf16.msra.mxu1 %v5881_v55  ;;  %v7536_v52 = vld [vmem:[#allocation50_spill] sm:$0xff]  ;;  %v7537_v55 = vld [vmem:[#allocation51_spill] sm:$0xff] }
 0x88e   :  { %5009 = vmatprep.subr.bf16.mxu0 %v5883_v57  ;;  %5073 = vmatprep.subr.bf16.mxu1 %v5887_v2  ;;  %v7538_v57 = vld [vmem:[#allocation52_spill] sm:$0xff]  ;;  %v7539_v2 = vld [vmem:[#allocation53_spill] sm:$0xff] }
 0x891   :  { %5011 = vmatpush1.bf16.msra.mxu0 %v5893_v15  ;;  %5075 = vmatpush1.bf16.msra.mxu1 %v5897_v17  ;;  %v7540_v15 = vld [vmem:[#allocation54_spill] sm:$0xff]  ;;  %v7541_v17 = vld [vmem:[#allocation55_spill] sm:$0xff] }
 0x892   :  { %5013 = vmatprep.subr.bf16.mxu0 %v5899_v20  ;;  %5077 = vmatprep.subr.bf16.mxu1 %v5902_v27  ;;  %v7542_v20 = vld [vmem:[#allocation56_spill] sm:$0xff]  ;;  %v7543_v27 = vld [vmem:[#allocation57_spill] sm:$0xff] }
 0x895   :  { %5015 = vmatpush1.bf16.msra.mxu0 %v7504_v47  ;;  %5079 = vmatpush1.bf16.msra.mxu1 %v7505_v50 }
 0x896   :  { %5017 = vmatprep.subr.bf16.mxu0 %v7506_v53  ;;  %5081 = vmatprep.subr.bf16.mxu1 %v7507_v56 }
 0x899   :  { %5019 = vmatpush1.bf16.msra.mxu0 %v7508_v60  ;;  %5083 = vmatpush1.bf16.msra.mxu1 %v7509_v63 }
 0x89a   :  { %5021 = vmatprep.subr.bf16.mxu0 %v7510_v3  ;;  %5085 = vmatprep.subr.bf16.mxu1 %v7511_v6  ;;  %v7559_v3 = vld [vmem:[#allocation77_spill] sm:$0xff] }
 0x89d   :  { %5023 = vmatpush1.bf16.msra.mxu0 %v7512_v10  ;;  %5087 = vmatpush1.bf16.msra.mxu1 %v7513_v13 }
 0x89e   :  { %5025 = vmatprep.subr.bf16.mxu0 %v7514_v16  ;;  %5089 = vmatprep.subr.bf16.mxu1 %v7515_v19 }
 0x8a1   :  { %5027 = vmatpush1.bf16.msra.mxu0 %v7516_v23  ;;  %5091 = vmatpush1.bf16.msra.mxu1 %v7517_v26 }
 0x8a2   :  { %5029 = vmatprep.subr.bf16.mxu0 %v7518_v29  ;;  %5093 = vmatprep.subr.bf16.mxu1 %v7519_v32 }
 0x8a5   :  { %5031 = vmatpush1.bf16.msra.mxu0 %v7520_v36  ;;  %5095 = vmatpush1.bf16.msra.mxu1 %v7521_v40 }
 0x8a6   :  { %5033 = vmatprep.subr.bf16.mxu0 %v7522_v44  ;;  %5097 = vmatprep.subr.bf16.mxu1 %v7523_v48 }
 0x8a9   :  { %5035 = vmatpush1.bf16.msra.mxu0 %v7524_v54  ;;  %5099 = vmatpush1.bf16.msra.mxu1 %v7525_v58 }
 0x8aa   :  { %5037 = vmatprep.subr.bf16.mxu0 %v7526_v62  ;;  %5101 = vmatprep.subr.bf16.mxu1 %v7527_v4 }
 0x8ad   :  { %5039 = vmatpush1.bf16.msra.mxu0 %v7528_v9  ;;  %5103 = vmatpush1.bf16.msra.mxu1 %v7529_v14  ;;  %v7560_v9 = vld [vmem:[#allocation73_spill] sm:$0xff] }
 0x8ae   :  { %5041 = vmatprep.subr.bf16.mxu0 %v7530_v18  ;;  %5105 = vmatprep.subr.bf16.mxu1 %v7531_v22 }
 0x8b1   :  { %5043 = vmatpush1.bf16.msra.mxu0 %v7532_v28  ;;  %5107 = vmatpush1.bf16.msra.mxu1 %v7533_v33 }
 0x8b2   :  { %5045 = vmatprep.subr.bf16.mxu0 %v7534_v39  ;;  %5109 = vmatprep.subr.bf16.mxu1 %v7535_v46  ;;  %v7561_v46 = vld [vmem:[#allocation75_spill] sm:$0xff] }
 0x8b5   :  { %5047 = vmatpush1.bf16.msra.mxu0 %v7536_v52  ;;  %5111 = vmatpush1.bf16.msra.mxu1 %v7537_v55 }
 0x8b6   :  { %5049 = vmatprep.subr.bf16.mxu0 %v7538_v57  ;;  %5113 = vmatprep.subr.bf16.mxu1 %v7539_v2 }
 0x8b9   :  { %5051 = vmatpush1.bf16.msra.mxu0 %v7540_v15  ;;  %5115 = vmatpush1.bf16.msra.mxu1 %v7541_v17 }
 0x8ba   :  { %5053 = vmatprep.subr.bf16.mxu0 %v7542_v20  ;;  %5117 = vmatprep.subr.bf16.mxu1 %v7543_v27 }
 0x8bd   :  { %5055 = vmatpush1.bf16.msra.mxu0 %v7544_v0  ;;  %5119 = vmatpush1.bf16.msra.mxu1 %v7545_v43 }
 0x8be   :  { %5057 = vmatprep.subr.bf16.mxu0 %v7546_v21  ;;  %5121 = vmatprep.subr.bf16.mxu1 %v7547_v35 }
 0x8c1   :  { %5059 = vmatpush1.bf16.msra.mxu0 %v7548_v5  ;;  %5123 = vmatpush1.bf16.msra.mxu1 %v7549_v51 }
 0x8c2   :  { %5061 = vmatprep.subr.bf16.mxu0 %v7550_v7  ;;  %5125 = vmatprep.subr.bf16.mxu1 %v7551_v59 }
 0x8c5   :  { %5063 = vmatpush1.bf16.msra.mxu0 %v7552_v12  ;;  %5127 = vmatpush1.bf16.msra.mxu1 %v7553_v37 }
 0x8c6   :  { %5065 = vmatprep.subr.bf16.mxu0 %v7554_v42  ;;  %5129 = vmatprep.subr.bf16.mxu1 %v7555_v24  ;;  %v3320_v42 = vld [vmem:[#allocation10] sm:$0xff]  ;;  %v3321_v24 = vld [vmem:[#allocation10 + $0x8] sm:$0xff] }
 0x8c9   :  { %5067 = vmatpush1.bf16.msra.mxu0 %v7556_v30  ;;  %5131 = vmatpush1.bf16.msra.mxu1 %v7557_v61  ;;  %v5133_v30 = vpack.c.bf16 %v3321_v24, %v3320_v42  ;;  %v5639_v61 = vmov 0.0|0.0  }
 0x8ca   :  { %5132 = vmatprep.subr.bf16.mxu0 %v5639_v61 }
 0x93f   :  { %v2884_v41 = vpop.f32.mrb[28].mxu0  ;;  %v2955_v31 = vpop.f32.mrb[28].mxu1 }
 0x940   :  { %v2885_v47 = vadd.f32 %v2884_v41, %v7558_v1  ;;  %v2886_v50 = vpop.f32.mrb[29].mxu0  ;;  %v2957_v53 = vpop.f32.mrb[29].mxu1  ;;  %v2956_v13 = vadd.f32 %v2955_v31, %v7261_v11  ;;  %v3322_v41 = vld [vmem:[#allocation10 + $0x10] sm:$0xff]  ;;  %v3323_v31 = vld [vmem:[#allocation10 + $0x18] sm:$0xff] }
 0x941   :  { %v2887_v56 = vadd.f32 %v2886_v50, %v7259_v38  ;;  %v2958_v6 = vadd.f32 %v2957_v53, %v7559_v3  ;;  %v3325_v50 = vld [vmem:[#allocation10 + $0x28] sm:$0xff] }
 0x942   :  { %v3470_v60 = vmul.f32 -1.442695, %v2885_v47  ;;  %v5136_v47 = vpack.c.bf16 %v3323_v31, %v3322_v41 }
 0x943   :  { %v3471_v63 = vmul.f32 -1.442695, %v2887_v56  ;;  %v3472_v10 = vmul.f32 -1.442695, %v2958_v6  ;;  %v3326_v56 = vld [vmem:[#allocation10 + $0x30] sm:$0xff]  ;;  %v3328_v6 = vld [vmem:[#allocation10 + $0x40] sm:$0xff] }
 0x944   :  { %5441 = vpow2.f32 %v3470_v60  ;;  %v3327_v60 = vld [vmem:[#allocation10 + $0x38] sm:$0xff] }
 0x945   :  { %5443 = vpow2.f32 %v3471_v63  ;;  %v5142_v63 = vpack.c.bf16 %v3327_v60, %v3326_v56 }
 0x946   :  { %5445 = vpow2.f32 %v3472_v10  ;;  %v3329_v10 = vld [vmem:[#allocation10 + $0x48] sm:$0xff] }
 0x947   :  { %5447 = vtanh.f32 %v2956_v13  ;;  %v5145_v13 = vpack.c.bf16 %v3329_v10, %v3328_v6 }
 0x94e   :  { %v5442_v16 = vpop.eup %5441 }
 0x94f   :  { %v5444_v19 = vpop.eup %5443  ;;  %v2963_v23 = vadd.f32 1.0, %v5442_v16  ;;  %v3330_v16 = vld [vmem:[#allocation10 + $0x50] sm:$0xff] }
 0x950   :  { %v2969_v26 = vadd.f32 1.0, %v5444_v19  ;;  %v5446_v29 = vpop.eup %5445  ;;  %v3331_v19 = vld [vmem:[#allocation10 + $0x58] sm:$0xff] }
 0x951   :  { %5449 = vrcp.f32 %v2963_v23  ;;  %v5448_v32 = vpop.eup %5447  ;;  %v2976_v48 = vadd.f32 1.0, %v5446_v29  ;;  %v3332_v23 = vld [vmem:[#allocation10 + $0x60] sm:$0xff]  ;;  %v3333_v29 = vld [vmem:[#allocation10 + $0x68] sm:$0xff] }
 0x952   :  { %5451 = vrcp.f32 %v2969_v26  ;;  %v5148_v26 = vpack.c.bf16 %v3331_v19, %v3330_v16 }
 0x953   :  { %5453 = vrcp.f32 %v2976_v48 }
 0x95b   :  { %v5450_v36 = vpop.eup %5449 }
 0x95c   :  { %v5452_v40 = vpop.eup %5451  ;;  %v2980_v44 = vmul.f32 %v5450_v36, %v5448_v32  ;;  %v5151_v32 = vpack.c.bf16 %v3333_v29, %v3332_v23  ;;  %v3334_v36 = vld [vmem:[#allocation10 + $0x70] sm:$0xff] }
 0x95d   :  { %v2979_v54 = vmul.f32 %v5452_v40, %v6797_v34  ;;  %v5454_v34 = vpop.eup %5453  ;;  %v3335_v40 = vld [vmem:[#allocation10 + $0x78] sm:$0xff] }
 0x95f   :  { %v3050_v58 = vpop.f32.mrb[14].mxu0  ;;  %v3121_v62 = vpop.f32.mrb[14].mxu1  ;;  %v6909_v4 = vadd.f32 %v2980_v44, %v2979_v54  ;;  %v5154_v44 = vpack.c.bf16 %v3335_v40, %v3334_v36 }
 0x960   :  { %v5170_v14 = vadd.f32 %v3050_v58, %v7560_v9  ;;  %v3052_v18 = vpop.f32.mrb[15].mxu0  ;;  %v3123_v22 = vpop.f32.mrb[15].mxu1  ;;  %v5186_v2 = vadd.f32 %v3121_v62, %v6100_v49 }
 0x961   :  { %v5171_v28 = vadd.f32 %v3052_v18, %v7202_v45  ;;  %5455 = vtanh.f32 %v6909_v4  ;;  %v5187_v52 = vadd.f32 %v3123_v22, %v7561_v46 }
 0x962   :  { %v3473_v33 = vmul.f32 -1.442695, %v5170_v14 }
 0x963   :  { %v3474_v39 = vmul.f32 -1.442695, %v5171_v28  ;;  %v3475_v57 = vmul.f32 -1.442695, %v5187_v52 }
 0x964   :  { %5457 = vpow2.f32 %v3473_v33 }
 0x965   :  { %5459 = vpow2.f32 %v3474_v39 }
 0x966   :  { %5461 = vpow2.f32 %v3475_v57 }
 0x967   :  { %5463 = vtanh.f32 %v5186_v2 }
 0x96b   :  { %v5456_v55 = vpop.eup %5455 }
 0x96c   :  { %v2983_v15 = vmul.f32 %v5456_v55, %v5454_v34 }
 0x96e   :  { %v5458_v17 = vpop.eup %5457  ;;  %3218 = vmatprep.mubr.f32.mxu0 %v2983_v15  ;;  %3289 = vmatprep.mubr.f32.mxu1 %v2983_v15 }
 0x96f   :  { %v5460_v20 = vpop.eup %5459  ;;  %v3133_v27 = vadd.f32 1.0, %v5458_v17 }
 0x970   :  { %v3139_v45 = vadd.f32 1.0, %v5460_v20  ;;  %v5462_v0 = vpop.eup %5461 }
 0x971   :  { %5465 = vrcp.f32 %v3133_v27  ;;  %v5464_v43 = vpop.eup %5463  ;;  %v3146_v51 = vadd.f32 1.0, %v5462_v0 }
 0x972   :  { %5467 = vrcp.f32 %v3139_v45  ;;  %v3479_v45 = vld [vmem:[%s6945_s7] ss:$0 sm:$0xff] }
 0x973   :  { %5469 = vrcp.f32 %v3146_v51 }
 0x97b   :  { %v5466_v21 = vpop.eup %5465 }
 0x97c   :  { %v5468_v35 = vpop.eup %5467  ;;  %v3150_v5 = vmul.f32 %v5466_v21, %v5464_v43 }
 0x97d   :  { %v3149_v7 = vmul.f32 %v5468_v35, %v6805_v8  ;;  %v5470_v59 = vpop.eup %5469  ;;  %v3324_v8 = vld [vmem:[#allocation10 + $0x20] sm:$0xff] }
 0x97e   :  { %v5139_v53 = vpack.c.bf16 %v3325_v50, %v3324_v8 }
 0x97f   :  { %v3151_v49 = vadd.f32 %v3150_v5, %v3149_v7 }
 0x981   :  { %5471 = vtanh.f32 %v3151_v49 }
 0x98b   :  { %v5472_v12 = vpop.eup %5471 }
 0x98c   :  { %v3153_v37 = vmul.f32 %v5472_v12, %v5470_v59 }
 0x98e   :  { %3219 = vmatmul.mubr.f32.vlgmr.msra.gmra.mrb[30].mxu0 %v3153_v37  ;;  %3290 = vmatmul.mubr.f32.vlgmr.msra.gmra.mrb[30].mxu1 %v3153_v37 }
 0x98f   :  { %5134 = vmatpush3.bf16.msra.mxu0 %v5133_v30  ;;  %3529 = vmatprep.mubr.msk.f32.mxu0 %vm5640_vm0, %v7141_v25 }
 0x990   :  { %5135 = vmatprep.subr.bf16.mxu0 %v5639_v61 }
 0x993   :  { %5137 = vmatpush3.bf16.msra.mxu0 %v5136_v47 }
 0x994   :  { %5138 = vmatprep.subr.bf16.mxu0 %v5639_v61 }
 0x997   :  { %5140 = vmatpush3.bf16.msra.mxu0 %v5139_v53 }
 0x998   :  { %5141 = vmatprep.subr.bf16.mxu0 %v5639_v61 }
 0x99b   :  { %5143 = vmatpush3.bf16.msra.mxu0 %v5142_v63 }
 0x99c   :  { %5144 = vmatprep.subr.bf16.mxu0 %v5639_v61 }
 0x99f   :  { %5146 = vmatpush3.bf16.msra.mxu0 %v5145_v13 }
 0x9a0   :  { %5147 = vmatprep.subr.bf16.mxu0 %v5639_v61 }
 0x9a3   :  { %5149 = vmatpush3.bf16.msra.mxu0 %v5148_v26 }
 0x9a4   :  { %5150 = vmatprep.subr.bf16.mxu0 %v5639_v61 }
 0x9a7   :  { %5152 = vmatpush3.bf16.msra.mxu0 %v5151_v32 }
 0x9a8   :  { %5153 = vmatprep.subr.bf16.mxu0 %v5639_v61 }
 0x9ab   :  { %5155 = vmatpush3.bf16.msra.mxu0 %v5154_v44 }
 0xa61   :  { %v3220_v48 = vpop.f32.mrb[30].mxu0  ;;  %v3291_v54 = vpop.f32.mrb[30].mxu1 }
 0xa62   :  { %v3221_v58 = vadd.f32 %v3220_v48, %v7558_v1  ;;  %v3222_v62 = vpop.f32.mrb[31].mxu0  ;;  %v3293_v9 = vpop.f32.mrb[31].mxu1  ;;  %v3292_v33 = vadd.f32 %v3291_v54, %v7261_v11 }
 0xa63   :  { %v3223_v14 = vadd.f32 %v3222_v62, %v7259_v38  ;;  %v3294_v25 = vadd.f32 %v3293_v9, %v7559_v3 }
 0xa64   :  { %v3476_v18 = vmul.f32 -1.442695, %v3221_v58 }
 0xa65   :  { %v3477_v22 = vmul.f32 -1.442695, %v3223_v14  ;;  %v3478_v28 = vmul.f32 -1.442695, %v3294_v25 }
 0xa66   :  { %5473 = vpow2.f32 %v3476_v18 }
 0xa67   :  { %5475 = vpow2.f32 %v3477_v22 }
 0xa68   :  { %5477 = vpow2.f32 %v3478_v28 }
 0xa69   :  { %5479 = vtanh.f32 %v3292_v33 }
 0xa70   :  { %v5474_v39 = vpop.eup %5473 }
 0xa71   :  { %v5476_v46 = vpop.eup %5475  ;;  %v3299_v52 = vadd.f32 1.0, %v5474_v39 }
 0xa72   :  { %v3305_v34 = vadd.f32 1.0, %v5476_v46  ;;  %v5478_v1 = vpop.eup %5477 }
 0xa73   :  { %5481 = vrcp.f32 %v3299_v52  ;;  %v5480_v55 = vpop.eup %5479  ;;  %v3312_v15 = vadd.f32 1.0, %v5478_v1 }
 0xa74   :  { %5483 = vrcp.f32 %v3305_v34 }
 0xa75   :  { %5485 = vrcp.f32 %v3312_v15 }
 0xa7d   :  { %v5482_v38 = vpop.eup %5481 }
 0xa7e   :  { %v5484_v57 = vpop.eup %5483  ;;  %v3316_v2 = vmul.f32 %v5482_v38, %v5480_v55 }
 0xa7f   :  { %v3315_v17 = vmul.f32 %v5484_v57, %v6909_v4  ;;  %v5486_v11 = vpop.eup %5485 }
 0xa81   :  { %v3317_v3 = vadd.f32 %v3316_v2, %v3315_v17 }
 0xa83   :  { %5487 = vtanh.f32 %v3317_v3 }
 0xa8d   :  { %v5488_v20 = vpop.eup %5487 }
 0xa8e   :  { %v3319_v27 = vmul.f32 %v5488_v20, %v5486_v11 }
 0xa90   :  { %3530 = vmatmul.mubr.f32.vlgmr.msra.gmra.mrb[32].mxu0 %v3319_v27 }
 0xb63   :  { %v3409_v0 = vpop.f32.mrb[32].mxu0 }
 0xb64   :  { %v3410_v43 = vadd.f32 %v3479_v45, %v3409_v0  ;;  %v3531_v21 = vpop.f32.mrb[33].mxu0 }
 0xb66   :  { %3413 = vst [vmem:[#allocation11] sm:$0xff] %v3410_v43 }
 0xb67   :  { %5610 = shalt.err (!%p5607_p2)
}
 0xb68   :  { %s5611_s1 = scalar_lea.hbm %s6946_s8, 128 }
 0xb69   :  { %p5612_p3 = scmp.ne.s32.totalorder %s6946_s8, %s5611_s1  ;;  %p5615_p4 = scmp.lt.u32.totalorder %s5611_s1, %s6946_s8 }
 0xb6b   :  { %p5617_p5 = pnand %p5615_p4, %p5612_p3 }
 0xb6d   :  { %5620 = shalt.err (!%p5617_p5)
}
 0xb6e   :  { %3423 = dma.vmem_to_hbm [thread:$0]  %s3421_s26, 128, %s6946_s8, [#allocation4]  }
 0xb6f   :  { %5627 = dma.done.wait [#allocation4], 128  }
 0xb70   :  { %5628 = vsyncadd [#allocation4], 4294967168 }
 0xb71   :  { %3427 = vsyncpa [#allocation3], 1 }
 0xb72   :  { %3428 = vsyncpa [#allocation6], 1 }
 0xb73   :  { %3429 = vsyncpa [#allocation9], 1 }
 0xb74   :  { %3430 = vsyncpa [#allocation4], 1 }

</bundles_post_ra>
